<compile_context>
chip_gen: v7x
topology: tpu7x:2x2x1
jax: 0.10.0
libtpu: 0.0.40
codegen_flags: <defaults>
</compile_context>

<pallas_src>
import functools

import jax
import jax.numpy as jnp
from jax.experimental import pallas as pl
from jax.experimental.pallas import tpu as pltpu


ACT_DTYPE = jnp.bfloat16   # inter-layer activation streaming dtype (halves HBM traffic)


# ----------------------------- helpers --------------------------------------

def _gelu(x):
    # TODO(synk): PyTorch F.gelu defaults to exact erf GELU; the tanh approximation is
    # used here (EUP-friendly and guaranteed to lower in Mosaic).
    return jax.nn.gelu(x, approximate=True)


@functools.lru_cache(maxsize=1)
def _vmem_capacity_bytes():
    try:
        return int(pltpu.get_tpu_info().vmem_capacity_bytes)
    except Exception:
        return 64 << 20      # v7x per-core physical VMEM (smallest across v5e/v6e/v7x)


def _compiler_params(block_bytes):
    """Parallel grid axis (batch -> megacore on v7x) + generation-aware VMEM guard."""
    limit = None
    need = 2 * block_bytes + (2 << 20)           # double-buffered blocks + slack
    if need > (24 << 20):                        # only raise above the default scope
        limit = int(min(need, int(0.85 * _vmem_capacity_bytes())))
    return pltpu.CompilerParams(dimension_semantics=("parallel",),
                                vmem_limit_bytes=limit)


def _full_spec(shape):
    zeros = (0,) * len(shape)
    return pl.BlockSpec(shape, lambda b: zeros)


def _batch_spec(c, n):
    # (1, c, n) block per batch element; c and n equal the full dims -> always legal.
    return pl.BlockSpec((1, c, n), lambda b: (b, 0, 0))


def _dft_matrices(H, W, modes1, modes2, dtype=jnp.float32):
    """Truncated real DFT matrices exactly reproducing rfft2 corner-slice / irfft2 of a
    zero-padded corner spectrum (norm='backward').

    forward:  fhat (C, 2M) = v (C, HW) @ dft_fwd (HW, 2M)      [Re | Im columns]
    inverse:  y (C, HW)    = [YRe | YIm] (C, 2M) @ dft_inv (2M, HW)
    """
    k1 = jnp.concatenate([jnp.arange(modes1), jnp.arange(H - modes1, H)]).astype(jnp.float32)
    k2 = jnp.arange(modes2, dtype=jnp.float32)
    h = jnp.arange(H, dtype=jnp.float32)
    w = jnp.arange(W, dtype=jnp.float32)
    theta = (2.0 * jnp.pi) * (k1[:, None, None, None] * h[None, None, :, None] / H
                              + k2[None, :, None, None] * w[None, None, None, :] / W)
    M = 2 * modes1 * modes2
    theta = theta.reshape(M, H * W)                       # mode-major (m1, m2), n = h*W+w
    cos, sin = jnp.cos(theta), jnp.sin(theta)
    # forward: exp(-i theta)
    dft_fwd = jnp.concatenate([cos.T, -sin.T], axis=1).astype(dtype)          # (HW, 2M)
    # inverse: Re( sum_m Y[m] * c_m * exp(+i theta) ) / (H*W);  c=1 for k2=0 (and
    # Nyquist), 2 otherwise (hermitian double-counting of the dropped half-spectrum).
    c = jnp.where((k2 == 0) | jnp.logical_and(W % 2 == 0, k2 == W // 2), 1.0, 2.0)
    c = (jnp.tile(c, 2 * modes1) / (H * W))[:, None]                          # (M, 1)
    dft_inv = jnp.concatenate([c * cos, -(c * sin)], axis=0).astype(dtype)    # (2M, HW)
    return dft_fwd, dft_inv


def mix_modes(fhat, wr, wi):
    """Per-mode complex channel mixing, kept as a tiny XLA einsum between kernels
    (a 1-row-per-mode matvec maps poorly onto the MXU).  fhat (B, Ci, 2M) [Re|Im],
    wr/wi (Ci, Co, M) -> (B, Co, 2M)."""
    M = wr.shape[-1]
    fre, fim = fhat[..., :M], fhat[..., M:]
    yre = jnp.einsum('bcm,com->bom', fre, wr) - jnp.einsum('bcm,com->bom', fim, wi)
    yim = jnp.einsum('bcm,com->bom', fre, wi) + jnp.einsum('bcm,com->bom', fim, wr)
    return jnp.concatenate([yre, yim], axis=-1)


# ----------------------------- Pallas kernels ------------------------------

def _probe_kernel(x_ref, w0_ref, b0_ref, dff_ref, fhat_ref):
    # Recompute the lift (fc0) on the fly and emit only its truncated forward DFT
    # (the lifted field itself never touches HBM).
    v = jnp.dot(w0_ref[...], x_ref[0].astype(jnp.float32),
                preferred_element_type=jnp.float32) + b0_ref[...]
    fhat_ref[0] = jnp.dot(v, dff_ref[...], preferred_element_type=jnp.float32)


def _lift_layer_kernel(x_ref, w0_ref, b0_ref, mix_ref, dfi_ref, pw_ref, pb_ref, dff_ref,
                       v_ref, fhat_ref):
    # Fused: lift (fc0) + Fourier layer 0 (inverse DFT of the mixed modes + 1x1 conv +
    # bias + GELU) + forward DFT of the result for the NEXT layer's spectral branch.
    v0 = jnp.dot(w0_ref[...], x_ref[0].astype(jnp.float32),
                 preferred_element_type=jnp.float32) + b0_ref[...]
    spec = jnp.dot(mix_ref[0], dfi_ref[...], preferred_element_type=jnp.float32)
    v1 = _gelu(jnp.dot(pw_ref[...], v0, preferred_element_type=jnp.float32)
               + pb_ref[...] + spec)
    v_ref[0] = v1.astype(v_ref.dtype)
    fhat_ref[0] = jnp.dot(v1, dff_ref[...], preferred_element_type=jnp.float32)


def _mid_layer_kernel(v_in_ref, mix_ref, dfi_ref, pw_ref, pb_ref, dff_ref,
                      v_ref, fhat_ref):
    # Fused Fourier layer: inverse DFT + 1x1 conv + bias + GELU + forward DFT.
    spec = jnp.dot(mix_ref[0], dfi_ref[...], preferred_element_type=jnp.float32)
    v = v_in_ref[0].astype(jnp.float32)
    vn = _gelu(jnp.dot(pw_ref[...], v, preferred_element_type=jnp.float32)
               + pb_ref[...] + spec)
    v_ref[0] = vn.astype(v_ref.dtype)
    fhat_ref[0] = jnp.dot(vn, dff_ref[...], preferred_element_type=jnp.float32)


def _tail_kernel(v_in_ref, mix_ref, dfi_ref, pw_ref, pb_ref, w1_ref, b1_ref,
                 w2_ref, b2_ref, o_ref):
    # Fused: last Fourier layer (no activation) + fc1 + GELU + fc2.
    spec = jnp.dot(mix_ref[0], dfi_ref[...], preferred_element_type=jnp.float32)
    v = v_in_ref[0].astype(jnp.float32)
    h = jnp.dot(pw_ref[...], v, preferred_element_type=jnp.float32) + pb_ref[...] + spec
    h = _gelu(jnp.dot(w1_ref[...], h, preferred_element_type=jnp.float32) + b1_ref[...])
    y = jnp.dot(w2_ref[...], h, preferred_element_type=jnp.float32) + b2_ref[...]
    o_ref[0] = y.astype(o_ref.dtype)


# ----------------------------- kernel wrappers ------------------------------

def pallas_mode_probe(xin, w0, b0, dft_fwd):
    B, Cin, HW = xin.shape
    width = w0.shape[0]
    M2 = dft_fwd.shape[1]
    block_bytes = 4 * (Cin * HW + width * Cin + width + HW * M2
                       + 2 * width * HW + 2 * width * M2)
    return pl.pallas_call(
        _probe_kernel,
        out_shape=jax.ShapeDtypeStruct((B, width, M2), jnp.float32),
        grid=(B,),
        in_specs=[_batch_spec(Cin, HW), _full_spec((width, Cin)),
                  _full_spec((width, 1)), _full_spec((HW, M2))],
        out_specs=_batch_spec(width, M2),
        compiler_params=_compiler_params(block_bytes),
    )(xin, w0, b0, dft_fwd)


def pallas_lift_fourier_layer(xin, w0, b0, mixed, dft_inv, pw_w, pw_b, dft_fwd):
    B, Cin, HW = xin.shape
    width = w0.shape[0]
    M2 = dft_fwd.shape[1]
    # blocks + in-kernel intermediates (lift, spec, pre-GELU, fhat), per review
    block_bytes = (4 * (Cin * HW + width * Cin + width + width * M2 + M2 * HW
                        + width * width + width + HW * M2)
                   + 2 * width * HW
                   + 4 * (4 * width * HW + 2 * width * M2))
    out_shape = (jax.ShapeDtypeStruct((B, width, HW), ACT_DTYPE),
                 jax.ShapeDtypeStruct((B, width, M2), jnp.float32))
    return pl.pallas_call(
        _lift_layer_kernel,
        out_shape=out_shape,
        grid=(B,),
        in_specs=[_batch_spec(Cin, HW), _full_spec((width, Cin)), _full_spec((width, 1)),
                  _batch_spec(width, M2), _full_spec((M2, HW)),
                  _full_spec((width, width)), _full_spec((width, 1)),
                  _full_spec((HW, M2))],
        out_specs=(_batch_spec(width, HW), _batch_spec(width, M2)),
        compiler_params=_compiler_params(block_bytes),
    )(xin, w0, b0, mixed, dft_inv, pw_w, pw_b, dft_fwd)


def pallas_mid_fourier_layer(v, mixed, dft_inv, pw_w, pw_b, dft_fwd):
    B, width, HW = v.shape
    M2 = dft_fwd.shape[1]
    block_bytes = (2 * 2 * width * HW
                   + 4 * (width * M2 + M2 * HW + width * width + width + HW * M2)
                   + 4 * (3 * width * HW + 2 * width * M2))
    out_shape = (jax.ShapeDtypeStruct((B, width, HW), ACT_DTYPE),
                 jax.ShapeDtypeStruct((B, width, M2), jnp.float32))
    return pl.pallas_call(
        _mid_layer_kernel,
        out_shape=out_shape,
        grid=(B,),
        in_specs=[_batch_spec(width, HW), _batch_spec(width, M2), _full_spec((M2, HW)),
                  _full_spec((width, width)), _full_spec((width, 1)),
                  _full_spec((HW, M2))],
        out_specs=(_batch_spec(width, HW), _batch_spec(width, M2)),
        compiler_params=_compiler_params(block_bytes),
    )(v, mixed, dft_inv, pw_w, pw_b, dft_fwd)


def pallas_fourier_tail(v, mixed, dft_inv, pw_w, pw_b, fc1_w, fc1_b, fc2_w, fc2_b):
    B, width, HW = v.shape
    M2 = dft_inv.shape[0]
    C1 = fc1_w.shape[0]
    Co = fc2_w.shape[0]
    # includes the fused (C1, HW) hidden activation, per review
    block_bytes = (2 * width * HW
                   + 4 * (width * M2 + M2 * HW + width * width + C1 * width
                          + Co * C1 + Co * HW)
                   + 4 * (2 * width * HW + C1 * HW))
    return pl.pallas_call(
        _tail_kernel,
        out_shape=jax.ShapeDtypeStruct((B, Co, HW), jnp.float32),
        grid=(B,),
        in_specs=[_batch_spec(width, HW), _batch_spec(width, M2), _full_spec((M2, HW)),
                  _full_spec((width, width)), _full_spec((width, 1)),
                  _full_spec((C1, width)), _full_spec((C1, 1)),
                  _full_spec((Co, C1)), _full_spec((Co, 1))],
        out_specs=_batch_spec(Co, HW),
        compiler_params=_compiler_params(block_bytes),
    )(v, mixed, dft_inv, pw_w, pw_b, fc1_w, fc1_b, fc2_w, fc2_b)


# ------------------------------- FNO2d body ----------------------------------

def fno2d_step(xin, w_lift, b_lift, params, dft_fwd, dft_inv):
    """One FNO2d forward pass on channel-major (B, C, HW) slabs -> (B, 3, HW)."""
    layers = params['layers']
    n_layers = len(layers)

    fhat = pallas_mode_probe(xin, w_lift, b_lift, dft_fwd)
    mixed = mix_modes(fhat, layers[0]['wr'], layers[0]['wi'])
    v, fhat = pallas_lift_fourier_layer(xin, w_lift, b_lift, mixed, dft_inv,
                                        layers[0]['pw_w'], layers[0]['pw_b'], dft_fwd)
    for l in range(1, n_layers - 1):
        mixed = mix_modes(fhat, layers[l]['wr'], layers[l]['wi'])
        v, fhat = pallas_mid_fourier_layer(v, mixed, dft_inv,
                                           layers[l]['pw_w'], layers[l]['pw_b'], dft_fwd)
    lp = layers[-1]
    mixed = mix_modes(fhat, lp['wr'], lp['wi'])
    return pallas_fourier_tail(v, mixed, dft_inv, lp['pw_w'], lp['pw_b'],
                               params['fc1_wT'], params['fc1_b'],
                               params['fc2_wT'], params['fc2_b'])


# ------------------------------ RecursiveFNO --------------------------------

def recursive_fno_forward(x, params, steps, modes1, modes2):
    """RecursiveFNO.forward: roll out `steps` times, re-appending rho each step.

    Faithful to the PyTorch code, including rho = x[0, 3, 0, 0] (batch element 0's
    density broadcast to every sample on re-append)."""
    B, Cin, H, W = x.shape
    HW = H * W
    rho = x[0, 3, 0, 0]
    dft_fwd, dft_inv = _dft_matrices(H, W, modes1, modes2)

    w0 = params['fc0_wT']                                  # (width, 4)
    # rho re-append fused into the lift bias for steps >= 1 (no rho plane / concat)
    b_rho = params['fc0_b'] + rho * w0[:, 3:4]

    xin, w_lift, b_lift = x.reshape(B, Cin, HW), w0, params['fc0_b']
    outs = []
    for s in range(steps):
        y = fno2d_step(xin, w_lift, b_lift, params, dft_fwd, dft_inv)   # (B, 3, HW)
        outs.append(y)
        if s + 1 < steps:
            xin, w_lift, b_lift = y, w0[:, :3], b_rho
    out = jnp.stack(outs, axis=1)                          # (B, steps, 3, HW)
    return out.reshape(B, steps, out.shape[2], H, W)


# ------------------------------ param init ----------------------------------

def init_params(key, in_channels=4, out_channels=3, width=32,
                modes1=4, modes2=4, n_layers=4):
    keys = jax.random.split(key, 3 + n_layers)
    params = {
        # weights stored in the channel-major kernel layout (out, in)
        'fc0_wT': 0.1 * jax.random.normal(keys[0], (width, in_channels), jnp.float32),
        'fc0_b': jnp.zeros((width, 1), jnp.float32),
        'fc1_wT': 0.05 * jax.random.normal(keys[1], (128, width), jnp.float32),
        'fc1_b': jnp.zeros((128, 1), jnp.float32),
        'fc2_wT': 0.05 * jax.random.normal(keys[2], (out_channels, 128), jnp.float32),
        'fc2_b': jnp.zeros((out_channels, 1), jnp.float32),
        'layers': [],
    }
    scale = 1.0 / (width * width)
    M = 2 * modes1 * modes2
    for l in range(n_layers):
        k = jax.random.split(keys[3 + l], 3)
        # (Ci, Co, 2*modes1, modes2): rows [:modes1] = weights1, [modes1:] = weights2
        wr = scale * jax.random.normal(k[0], (width, width, 2 * modes1, modes2), jnp.float32)
        wi = scale * jax.random.normal(k[1], (width, width, 2 * modes1, modes2), jnp.float32)
        params['layers'].append({
            'wr': wr.reshape(width, width, M),
            'wi': wi.reshape(width, width, M),
            'pw_w': (1.0 / width) ** 0.5
                    * jax.random.normal(k[2], (width, width), jnp.float32),
            'pw_b': jnp.zeros((width, 1), jnp.float32),
        })
    return params


# ------------------------- pure-JAX reference (rfft2) ------------------------

def _reference_forward(x, params, steps, modes1, modes2):
    """FFT-based reference mirroring the PyTorch module (f32 everywhere)."""
    B, _, H, W = x.shape
    gelu = lambda a: jax.nn.gelu(a, approximate=True)

    def spectral(v, wr, wi):
        Ci, Co, _ = wr.shape
        wc = (wr + 1j * wi).reshape(Ci, Co, 2 * modes1, modes2)
        vft = jnp.fft.rfft2(v)
        corner = jnp.concatenate([vft[..., :modes1, :modes2],
                                  vft[..., H - modes1:, :modes2]], axis=-2)
        out = jnp.einsum('bixy,ioxy->boxy', corner, wc)
        out_ft = jnp.zeros((B, Co, H, W // 2 + 1), jnp.complex64)
        out_ft = out_ft.at[..., :modes1, :modes2].set(out[..., :modes1, :])
        out_ft = out_ft.at[..., H - modes1:, :modes2].set(out[..., modes1:, :])
        return jnp.fft.irfft2(out_ft, s=(H, W))

    def fno(xin):
        v = (jnp.einsum('oc,bchw->bohw', params['fc0_wT'], xin)
             + params['fc0_b'].reshape(1, -1, 1, 1))
        n = len(params['layers'])
        for i, lp in enumerate(params['layers']):
            v = (spectral(v, lp['wr'], lp['wi'])
                 + jnp.einsum('oc,bchw->bohw', lp['pw_w'], v)
                 + lp['pw_b'].reshape(1, -1, 1, 1))
            if i < n - 1:
                v = gelu(v)
        h = gelu(jnp.einsum('oc,bchw->bohw', params['fc1_wT'], v)
                 + params['fc1_b'].reshape(1, -1, 1, 1))
        return (jnp.einsum('oc,bchw->bohw', params['fc2_wT'], h)
                + params['fc2_b'].reshape(1, -1, 1, 1))

    cur, outs = x, []
    for _ in range(steps):
        rho = cur[0, 3, 0, 0]
        y = fno(cur)
        outs.append(y[:, None])
        rho_plane = jnp.full((B, 1, H, W), rho, y.dtype)
        cur = jnp.concatenate([y, rho_plane], axis=1)
    return jnp.concatenate(outs, axis=1)


# --------------------------------- demo --------------------------------------

if __name__ == "__main__":
    key = jax.random.PRNGKey(0)
    kx, kp = jax.random.split(key)

    B, Cin, H, W = 2, 4, 16, 16     # channels = [u, v, p, rho]
    steps = 3
    modes1 = modes2 = 4
    width = 32

    x = jax.random.normal(kx, (B, Cin, H, W), jnp.float32)
    params = init_params(kp, in_channels=Cin, out_channels=Cin - 1,
                         width=width, modes1=modes1, modes2=modes2, n_layers=4)

    fwd = jax.jit(functools.partial(recursive_fno_forward, steps=steps,
                                    modes1=modes1, modes2=modes2))
    out = fwd(x, params)
    jax.block_until_ready(out)
    assert out.shape == (B, steps, Cin - 1, H, W), out.shape
    assert out.dtype == jnp.float32

    # Correctness vs. an FFT-based pure-JAX reference (loose tolerance: activations
    # stream as bf16 between the fused layer kernels).
    ref = jax.jit(functools.partial(_reference_forward, steps=steps,
                                    modes1=modes1, modes2=modes2))(x, params)
    jax.block_until_ready(ref)
    assert jnp.allclose(out, ref, atol=5e-2, rtol=5e-2), \
        float(jnp.max(jnp.abs(out - ref)))

    print("KERNEL_OK")
</pallas_src>

<mosaic_0001>
module attributes {stable_mosaic.version = 11 : i64} {
  func.func @_probe_kernel(%arg0: i32, %arg1: memref<1x4x256xf32, #tpu.memory_space<vmem>>, %arg2: memref<32x4xf32, #tpu.memory_space<vmem>>, %arg3: memref<32x1xf32, #tpu.memory_space<vmem>>, %arg4: memref<256x64xf32, #tpu.memory_space<vmem>>, %arg5: memref<1x32x64xf32, #tpu.memory_space<vmem>>) attributes {dimension_semantics = [#tpu.dimension_semantics<parallel>], iteration_bounds = array<i64: 2>, scalar_prefetch = 0 : i64, scratch_operands = 0 : i64, tpu.core_type = #tpu.core_type<tc>, window_params = [{transform_indices = @transform_0, window_bounds = array<i64: 1, 4, 256>}, {pipeline_mode = #tpu.pipeline_mode<synchronous>, transform_indices = @transform_1, window_bounds = array<i64: 32, 4>}, {pipeline_mode = #tpu.pipeline_mode<synchronous>, transform_indices = @transform_2, window_bounds = array<i64: 32, 1>}, {pipeline_mode = #tpu.pipeline_mode<synchronous>, transform_indices = @transform_3, window_bounds = array<i64: 256, 64>}, {transform_indices = @transform_4, window_bounds = array<i64: 1, 32, 64>}]} {
    %c0 = arith.constant 0 : index
    %c0_0 = arith.constant 0 : index
    %0 = vector.load %arg2[%c0, %c0_0] : memref<32x4xf32, #tpu.memory_space<vmem>>, vector<32x4xf32>
    %c0_1 = arith.constant 0 : index
    %c0_2 = arith.constant 0 : index
    %c0_3 = arith.constant 0 : index
    %1 = vector.load %arg1[%c0_1, %c0_2, %c0_3] : memref<1x4x256xf32, #tpu.memory_space<vmem>>, vector<1x4x256xf32>
    %2 = vector.shape_cast %1 : vector<1x4x256xf32> to vector<4x256xf32>
    %cst = arith.constant dense<0.000000e+00> : vector<32x256xf32>
    %3 = tpu.matmul %0, %2, %cst {dimension_numbers = #tpu.dot_dimension_numbers<[1], [0], [0], [1], [0, 0, 1, 1], [], []>} : vector<32x4xf32>, vector<4x256xf32>, vector<32x256xf32> -> vector<32x256xf32>
    %c0_4 = arith.constant 0 : index
    %c0_5 = arith.constant 0 : index
    %4 = vector.load %arg3[%c0_4, %c0_5] : memref<32x1xf32, #tpu.memory_space<vmem>>, vector<32x1xf32>
    %5 = vector.broadcast %4 : vector<32x1xf32> to vector<32x256xf32>
    %6 = arith.addf %3, %5 : vector<32x256xf32>
    %c0_6 = arith.constant 0 : index
    %c0_7 = arith.constant 0 : index
    %7 = vector.load %arg4[%c0_6, %c0_7] : memref<256x64xf32, #tpu.memory_space<vmem>>, vector<256x64xf32>
    %cst_8 = arith.constant dense<0.000000e+00> : vector<32x64xf32>
    %8 = tpu.matmul %6, %7, %cst_8 {dimension_numbers = #tpu.dot_dimension_numbers<[1], [0], [0], [1], [0, 0, 1, 1], [], []>} : vector<32x256xf32>, vector<256x64xf32>, vector<32x64xf32> -> vector<32x64xf32>
    %c0_9 = arith.constant 0 : index
    %c0_10 = arith.constant 0 : index
    %c0_11 = arith.constant 0 : index
    %9 = vector.load %arg5[%c0_9, %c0_10, %c0_11] : memref<1x32x64xf32, #tpu.memory_space<vmem>>, vector<1x32x64xf32>
    %10 = vector.shape_cast %9 : vector<1x32x64xf32> to vector<32x64xf32>
    %11 = vector.shape_cast %8 : vector<32x64xf32> to vector<1x32x64xf32>
    tpu.vector_store %arg5[%c0_9, %c0_10, %c0_11], %11 {strides = array<i32>} : memref<1x32x64xf32, #tpu.memory_space<vmem>>, vector<1x32x64xf32>,
    return
  }
  func.func @transform_0(%arg0: i32) -> (i32, i32, i32) {
    %c0_i32 = arith.constant 0 : i32
    %c0_i32_0 = arith.constant 0 : i32
    %c0_i32_1 = arith.constant 0 : i32
    return %arg0, %c0_i32, %c0_i32_0 : i32, i32, i32
  }
  func.func @transform_1(%arg0: i32) -> (i32, i32) {
    %c0_i32 = arith.constant 0 : i32
    %c0_i32_0 = arith.constant 0 : i32
    %c0_i32_1 = arith.constant 0 : i32
    return %c0_i32, %c0_i32_0 : i32, i32
  }
  func.func @transform_2(%arg0: i32) -> (i32, i32) {
    %c0_i32 = arith.constant 0 : i32
    %c0_i32_0 = arith.constant 0 : i32
    %c0_i32_1 = arith.constant 0 : i32
    return %c0_i32, %c0_i32_0 : i32, i32
  }
  func.func @transform_3(%arg0: i32) -> (i32, i32) {
    %c0_i32 = arith.constant 0 : i32
    %c0_i32_0 = arith.constant 0 : i32
    %c0_i32_1 = arith.constant 0 : i32
    return %c0_i32, %c0_i32_0 : i32, i32
  }
  func.func @transform_4(%arg0: i32) -> (i32, i32, i32) {
    %c0_i32 = arith.constant 0 : i32
    %c0_i32_0 = arith.constant 0 : i32
    %c0_i32_1 = arith.constant 0 : i32
    return %arg0, %c0_i32, %c0_i32_0 : i32, i32, i32
  }
}

module attributes {stable_mosaic.version = 11 : i64} {
  func.func @_lift_layer_kernel(%arg0: i32, %arg1: memref<1x4x256xf32, #tpu.memory_space<vmem>>, %arg2: memref<32x4xf32, #tpu.memory_space<vmem>>, %arg3: memref<32x1xf32, #tpu.memory_space<vmem>>, %arg4: memref<1x32x64xf32, #tpu.memory_space<vmem>>, %arg5: memref<64x256xf32, #tpu.memory_space<vmem>>, %arg6: memref<32x32xf32, #tpu.memory_space<vmem>>, %arg7: memref<32x1xf32, #tpu.memory_space<vmem>>, %arg8: memref<256x64xf32, #tpu.memory_space<vmem>>, %arg9: memref<1x32x256xbf16, #tpu.memory_space<vmem>>, %arg10: memref<1x32x64xf32, #tpu.memory_space<vmem>>) attributes {dimension_semantics = [#tpu.dimension_semantics<parallel>], iteration_bounds = array<i64: 2>, scalar_prefetch = 0 : i64, scratch_operands = 0 : i64, tpu.core_type = #tpu.core_type<tc>, window_params = [{transform_indices = @transform_0, window_bounds = array<i64: 1, 4, 256>}, {pipeline_mode = #tpu.pipeline_mode<synchronous>, transform_indices = @transform_1, window_bounds = array<i64: 32, 4>}, {pipeline_mode = #tpu.pipeline_mode<synchronous>, transform_indices = @transform_2, window_bounds = array<i64: 32, 1>}, {transform_indices = @transform_3, window_bounds = array<i64: 1, 32, 64>}, {pipeline_mode = #tpu.pipeline_mode<synchronous>, transform_indices = @transform_4, window_bounds = array<i64: 64, 256>}, {pipeline_mode = #tpu.pipeline_mode<synchronous>, transform_indices = @transform_5, window_bounds = array<i64: 32, 32>}, {pipeline_mode = #tpu.pipeline_mode<synchronous>, transform_indices = @transform_6, window_bounds = array<i64: 32, 1>}, {pipeline_mode = #tpu.pipeline_mode<synchronous>, transform_indices = @transform_7, window_bounds = array<i64: 256, 64>}, {transform_indices = @transform_8, window_bounds = array<i64: 1, 32, 256>}, {transform_indices = @transform_9, window_bounds = array<i64: 1, 32, 64>}]} {
    %c0 = arith.constant 0 : index
    %c0_0 = arith.constant 0 : index
    %0 = vector.load %arg2[%c0, %c0_0] : memref<32x4xf32, #tpu.memory_space<vmem>>, vector<32x4xf32>
    %c0_1 = arith.constant 0 : index
    %c0_2 = arith.constant 0 : index
    %c0_3 = arith.constant 0 : index
    %1 = vector.load %arg1[%c0_1, %c0_2, %c0_3] : memref<1x4x256xf32, #tpu.memory_space<vmem>>, vector<1x4x256xf32>
    %2 = vector.shape_cast %1 : vector<1x4x256xf32> to vector<4x256xf32>
    %cst = arith.constant dense<0.000000e+00> : vector<32x256xf32>
    %3 = tpu.matmul %0, %2, %cst {dimension_numbers = #tpu.dot_dimension_numbers<[1], [0], [0], [1], [0, 0, 1, 1], [], []>} : vector<32x4xf32>, vector<4x256xf32>, vector<32x256xf32> -> vector<32x256xf32>
    %c0_4 = arith.constant 0 : index
    %c0_5 = arith.constant 0 : index
    %4 = vector.load %arg3[%c0_4, %c0_5] : memref<32x1xf32, #tpu.memory_space<vmem>>, vector<32x1xf32>
    %5 = vector.broadcast %4 : vector<32x1xf32> to vector<32x256xf32>
    %6 = arith.addf %3, %5 : vector<32x256xf32>
    %c0_6 = arith.constant 0 : index
    %c0_7 = arith.constant 0 : index
    %c0_8 = arith.constant 0 : index
    %7 = vector.load %arg4[%c0_6, %c0_7, %c0_8] : memref<1x32x64xf32, #tpu.memory_space<vmem>>, vector<1x32x64xf32>
    %8 = vector.shape_cast %7 : vector<1x32x64xf32> to vector<32x64xf32>
    %c0_9 = arith.constant 0 : index
    %c0_10 = arith.constant 0 : index
    %9 = vector.load %arg5[%c0_9, %c0_10] : memref<64x256xf32, #tpu.memory_space<vmem>>, vector<64x256xf32>
    %cst_11 = arith.constant dense<0.000000e+00> : vector<32x256xf32>
    %10 = tpu.matmul %8, %9, %cst_11 {dimension_numbers = #tpu.dot_dimension_numbers<[1], [0], [0], [1], [0, 0, 1, 1], [], []>} : vector<32x64xf32>, vector<64x256xf32>, vector<32x256xf32> -> vector<32x256xf32>
    %c0_12 = arith.constant 0 : index
    %c0_13 = arith.constant 0 : index
    %11 = vector.load %arg6[%c0_12, %c0_13] : memref<32x32xf32, #tpu.memory_space<vmem>>, vector<32x32xf32>
    %cst_14 = arith.constant dense<0.000000e+00> : vector<32x256xf32>
    %12 = tpu.matmul %11, %6, %cst_14 {dimension_numbers = #tpu.dot_dimension_numbers<[1], [0], [0], [1], [0, 0, 1, 1], [], []>} : vector<32x32xf32>, vector<32x256xf32>, vector<32x256xf32> -> vector<32x256xf32>
    %c0_15 = arith.constant 0 : index
    %c0_16 = arith.constant 0 : index
    %13 = vector.load %arg7[%c0_15, %c0_16] : memref<32x1xf32, #tpu.memory_space<vmem>>, vector<32x1xf32>
    %14 = vector.broadcast %13 : vector<32x1xf32> to vector<32x256xf32>
    %15 = arith.addf %12, %14 : vector<32x256xf32>
    %16 = arith.addf %15, %10 : vector<32x256xf32>
    %17 = arith.mulf %16, %16 : vector<32x256xf32>
    %18 = arith.mulf %16, %17 : vector<32x256xf32>
    %cst_17 = arith.constant 4.471500e-02 : f32
    %19 = vector.broadcast %cst_17 : f32 to vector<32x256xf32>
    %20 = arith.mulf %19, %18 : vector<32x256xf32>
    %21 = arith.addf %16, %20 : vector<32x256xf32>
    %cst_18 = arith.constant 0.797884583 : f32
    %22 = vector.broadcast %cst_18 : f32 to vector<32x256xf32>
    %23 = arith.mulf %22, %21 : vector<32x256xf32>
    %24 = math.tanh %23 : vector<32x256xf32>
    %cst_19 = arith.constant 1.000000e+00 : f32
    %25 = vector.broadcast %cst_19 : f32 to vector<32x256xf32>
    %26 = arith.addf %25, %24 : vector<32x256xf32>
    %cst_20 = arith.constant 5.000000e-01 : f32
    %27 = vector.broadcast %cst_20 : f32 to vector<32x256xf32>
    %28 = arith.mulf %27, %26 : vector<32x256xf32>
    %29 = arith.mulf %16, %28 : vector<32x256xf32>
    %30 = arith.truncf %29 : vector<32x256xf32> to vector<32x256xbf16>
    %c0_21 = arith.constant 0 : index
    %c0_22 = arith.constant 0 : index
    %c0_23 = arith.constant 0 : index
    %31 = vector.load %arg9[%c0_21, %c0_22, %c0_23] : memref<1x32x256xbf16, #tpu.memory_space<vmem>>, vector<1x32x256xbf16>
    %32 = vector.shape_cast %31 : vector<1x32x256xbf16> to vector<32x256xbf16>
    %33 = vector.shape_cast %30 : vector<32x256xbf16> to vector<1x32x256xbf16>
    tpu.vector_store %arg9[%c0_21, %c0_22, %c0_23], %33 {strides = array<i32>} : memref<1x32x256xbf16, #tpu.memory_space<vmem>>, vector<1x32x256xbf16>,
    %c0_24 = arith.constant 0 : index
    %c0_25 = arith.constant 0 : index
    %34 = vector.load %arg8[%c0_24, %c0_25] : memref<256x64xf32, #tpu.memory_space<vmem>>, vector<256x64xf32>
    %cst_26 = arith.constant dense<0.000000e+00> : vector<32x64xf32>
    %35 = tpu.matmul %29, %34, %cst_26 {dimension_numbers = #tpu.dot_dimension_numbers<[1], [0], [0], [1], [0, 0, 1, 1], [], []>} : vector<32x256xf32>, vector<256x64xf32>, vector<32x64xf32> -> vector<32x64xf32>
    %c0_27 = arith.constant 0 : index
    %c0_28 = arith.constant 0 : index
    %c0_29 = arith.constant 0 : index
    %36 = vector.load %arg10[%c0_27, %c0_28, %c0_29] : memref<1x32x64xf32, #tpu.memory_space<vmem>>, vector<1x32x64xf32>
    %37 = vector.shape_cast %36 : vector<1x32x64xf32> to vector<32x64xf32>
    %38 = vector.shape_cast %35 : vector<32x64xf32> to vector<1x32x64xf32>
    tpu.vector_store %arg10[%c0_27, %c0_28, %c0_29], %38 {strides = array<i32>} : memref<1x32x64xf32, #tpu.memory_space<vmem>>, vector<1x32x64xf32>,
    return
  }
  func.func @transform_0(%arg0: i32) -> (i32, i32, i32) {
    %c0_i32 = arith.constant 0 : i32
    %c0_i32_0 = arith.constant 0 : i32
    %c0_i32_1 = arith.constant 0 : i32
    return %arg0, %c0_i32, %c0_i32_0 : i32, i32, i32
  }
  func.func @transform_1(%arg0: i32) -> (i32, i32) {
    %c0_i32 = arith.constant 0 : i32
    %c0_i32_0 = arith.constant 0 : i32
    %c0_i32_1 = arith.constant 0 : i32
    return %c0_i32, %c0_i32_0 : i32, i32
  }
  func.func @transform_2(%arg0: i32) -> (i32, i32) {
    %c0_i32 = arith.constant 0 : i32
    %c0_i32_0 = arith.constant 0 : i32
    %c0_i32_1 = arith.constant 0 : i32
    return %c0_i32, %c0_i32_0 : i32, i32
  }
  func.func @transform_3(%arg0: i32) -> (i32, i32, i32) {
    %c0_i32 = arith.constant 0 : i32
    %c0_i32_0 = arith.constant 0 : i32
    %c0_i32_1 = arith.constant 0 : i32
    return %arg0, %c0_i32, %c0_i32_0 : i32, i32, i32
  }
  func.func @transform_4(%arg0: i32) -> (i32, i32) {
    %c0_i32 = arith.constant 0 : i32
    %c0_i32_0 = arith.constant 0 : i32
    %c0_i32_1 = arith.constant 0 : i32
    return %c0_i32, %c0_i32_0 : i32, i32
  }
  func.func @transform_5(%arg0: i32) -> (i32, i32) {
    %c0_i32 = arith.constant 0 : i32
    %c0_i32_0 = arith.constant 0 : i32
    %c0_i32_1 = arith.constant 0 : i32
    return %c0_i32, %c0_i32_0 : i32, i32
  }
  func.func @transform_6(%arg0: i32) -> (i32, i32) {
    %c0_i32 = arith.constant 0 : i32
    %c0_i32_0 = arith.constant 0 : i32
    %c0_i32_1 = arith.constant 0 : i32
    return %c0_i32, %c0_i32_0 : i32, i32
  }
  func.func @transform_7(%arg0: i32) -> (i32, i32) {
    %c0_i32 = arith.constant 0 : i32
    %c0_i32_0 = arith.constant 0 : i32
    %c0_i32_1 = arith.constant 0 : i32
    return %c0_i32, %c0_i32_0 : i32, i32
  }
  func.func @transform_8(%arg0: i32) -> (i32, i32, i32) {
    %c0_i32 = arith.constant 0 : i32
    %c0_i32_0 = arith.constant 0 : i32
    %c0_i32_1 = arith.constant 0 : i32
    return %arg0, %c0_i32, %c0_i32_0 : i32, i32, i32
  }
  func.func @transform_9(%arg0: i32) -> (i32, i32, i32) {
    %c0_i32 = arith.constant 0 : i32
    %c0_i32_0 = arith.constant 0 : i32
    %c0_i32_1 = arith.constant 0 : i32
    return %arg0, %c0_i32, %c0_i32_0 : i32, i32, i32
  }
}

module attributes {stable_mosaic.version = 11 : i64} {
  func.func @_mid_layer_kernel(%arg0: i32, %arg1: memref<1x32x256xbf16, #tpu.memory_space<vmem>>, %arg2: memref<1x32x64xf32, #tpu.memory_space<vmem>>, %arg3: memref<64x256xf32, #tpu.memory_space<vmem>>, %arg4: memref<32x32xf32, #tpu.memory_space<vmem>>, %arg5: memref<32x1xf32, #tpu.memory_space<vmem>>, %arg6: memref<256x64xf32, #tpu.memory_space<vmem>>, %arg7: memref<1x32x256xbf16, #tpu.memory_space<vmem>>, %arg8: memref<1x32x64xf32, #tpu.memory_space<vmem>>) attributes {dimension_semantics = [#tpu.dimension_semantics<parallel>], iteration_bounds = array<i64: 2>, scalar_prefetch = 0 : i64, scratch_operands = 0 : i64, tpu.core_type = #tpu.core_type<tc>, window_params = [{transform_indices = @transform_0, window_bounds = array<i64: 1, 32, 256>}, {transform_indices = @transform_1, window_bounds = array<i64: 1, 32, 64>}, {pipeline_mode = #tpu.pipeline_mode<synchronous>, transform_indices = @transform_2, window_bounds = array<i64: 64, 256>}, {pipeline_mode = #tpu.pipeline_mode<synchronous>, transform_indices = @transform_3, window_bounds = array<i64: 32, 32>}, {pipeline_mode = #tpu.pipeline_mode<synchronous>, transform_indices = @transform_4, window_bounds = array<i64: 32, 1>}, {pipeline_mode = #tpu.pipeline_mode<synchronous>, transform_indices = @transform_5, window_bounds = array<i64: 256, 64>}, {transform_indices = @transform_6, window_bounds = array<i64: 1, 32, 256>}, {transform_indices = @transform_7, window_bounds = array<i64: 1, 32, 64>}]} {
    %c0 = arith.constant 0 : index
    %c0_0 = arith.constant 0 : index
    %c0_1 = arith.constant 0 : index
    %0 = vector.load %arg2[%c0, %c0_0, %c0_1] : memref<1x32x64xf32, #tpu.memory_space<vmem>>, vector<1x32x64xf32>
    %1 = vector.shape_cast %0 : vector<1x32x64xf32> to vector<32x64xf32>
    %c0_2 = arith.constant 0 : index
    %c0_3 = arith.constant 0 : index
    %2 = vector.load %arg3[%c0_2, %c0_3] : memref<64x256xf32, #tpu.memory_space<vmem>>, vector<64x256xf32>
    %cst = arith.constant dense<0.000000e+00> : vector<32x256xf32>
    %3 = tpu.matmul %1, %2, %cst {dimension_numbers = #tpu.dot_dimension_numbers<[1], [0], [0], [1], [0, 0, 1, 1], [], []>} : vector<32x64xf32>, vector<64x256xf32>, vector<32x256xf32> -> vector<32x256xf32>
    %c0_4 = arith.constant 0 : index
    %c0_5 = arith.constant 0 : index
    %c0_6 = arith.constant 0 : index
    %4 = vector.load %arg1[%c0_4, %c0_5, %c0_6] : memref<1x32x256xbf16, #tpu.memory_space<vmem>>, vector<1x32x256xbf16>
    %5 = vector.shape_cast %4 : vector<1x32x256xbf16> to vector<32x256xbf16>
    %6 = arith.extf %5 : vector<32x256xbf16> to vector<32x256xf32>
    %c0_7 = arith.constant 0 : index
    %c0_8 = arith.constant 0 : index
    %7 = vector.load %arg4[%c0_7, %c0_8] : memref<32x32xf32, #tpu.memory_space<vmem>>, vector<32x32xf32>
    %cst_9 = arith.constant dense<0.000000e+00> : vector<32x256xf32>
    %8 = tpu.matmul %7, %6, %cst_9 {dimension_numbers = #tpu.dot_dimension_numbers<[1], [0], [0], [1], [0, 0, 1, 1], [], []>} : vector<32x32xf32>, vector<32x256xf32>, vector<32x256xf32> -> vector<32x256xf32>
    %c0_10 = arith.constant 0 : index
    %c0_11 = arith.constant 0 : index
    %9 = vector.load %arg5[%c0_10, %c0_11] : memref<32x1xf32, #tpu.memory_space<vmem>>, vector<32x1xf32>
    %10 = vector.broadcast %9 : vector<32x1xf32> to vector<32x256xf32>
    %11 = arith.addf %8, %10 : vector<32x256xf32>
    %12 = arith.addf %11, %3 : vector<32x256xf32>
    %13 = arith.mulf %12, %12 : vector<32x256xf32>
    %14 = arith.mulf %12, %13 : vector<32x256xf32>
    %cst_12 = arith.constant 4.471500e-02 : f32
    %15 = vector.broadcast %cst_12 : f32 to vector<32x256xf32>
    %16 = arith.mulf %15, %14 : vector<32x256xf32>
    %17 = arith.addf %12, %16 : vector<32x256xf32>
    %cst_13 = arith.constant 0.797884583 : f32
    %18 = vector.broadcast %cst_13 : f32 to vector<32x256xf32>
    %19 = arith.mulf %18, %17 : vector<32x256xf32>
    %20 = math.tanh %19 : vector<32x256xf32>
    %cst_14 = arith.constant 1.000000e+00 : f32
    %21 = vector.broadcast %cst_14 : f32 to vector<32x256xf32>
    %22 = arith.addf %21, %20 : vector<32x256xf32>
    %cst_15 = arith.constant 5.000000e-01 : f32
    %23 = vector.broadcast %cst_15 : f32 to vector<32x256xf32>
    %24 = arith.mulf %23, %22 : vector<32x256xf32>
    %25 = arith.mulf %12, %24 : vector<32x256xf32>
    %26 = arith.truncf %25 : vector<32x256xf32> to vector<32x256xbf16>
    %c0_16 = arith.constant 0 : index
    %c0_17 = arith.constant 0 : index
    %c0_18 = arith.constant 0 : index
    %27 = vector.load %arg7[%c0_16, %c0_17, %c0_18] : memref<1x32x256xbf16, #tpu.memory_space<vmem>>, vector<1x32x256xbf16>
    %28 = vector.shape_cast %27 : vector<1x32x256xbf16> to vector<32x256xbf16>
    %29 = vector.shape_cast %26 : vector<32x256xbf16> to vector<1x32x256xbf16>
    tpu.vector_store %arg7[%c0_16, %c0_17, %c0_18], %29 {strides = array<i32>} : memref<1x32x256xbf16, #tpu.memory_space<vmem>>, vector<1x32x256xbf16>,
    %c0_19 = arith.constant 0 : index
    %c0_20 = arith.constant 0 : index
    %30 = vector.load %arg6[%c0_19, %c0_20] : memref<256x64xf32, #tpu.memory_space<vmem>>, vector<256x64xf32>
    %cst_21 = arith.constant dense<0.000000e+00> : vector<32x64xf32>
    %31 = tpu.matmul %25, %30, %cst_21 {dimension_numbers = #tpu.dot_dimension_numbers<[1], [0], [0], [1], [0, 0, 1, 1], [], []>} : vector<32x256xf32>, vector<256x64xf32>, vector<32x64xf32> -> vector<32x64xf32>
    %c0_22 = arith.constant 0 : index
    %c0_23 = arith.constant 0 : index
    %c0_24 = arith.constant 0 : index
    %32 = vector.load %arg8[%c0_22, %c0_23, %c0_24] : memref<1x32x64xf32, #tpu.memory_space<vmem>>, vector<1x32x64xf32>
    %33 = vector.shape_cast %32 : vector<1x32x64xf32> to vector<32x64xf32>
    %34 = vector.shape_cast %31 : vector<32x64xf32> to vector<1x32x64xf32>
    tpu.vector_store %arg8[%c0_22, %c0_23, %c0_24], %34 {strides = array<i32>} : memref<1x32x64xf32, #tpu.memory_space<vmem>>, vector<1x32x64xf32>,
    return
  }
  func.func @transform_0(%arg0: i32) -> (i32, i32, i32) {
    %c0_i32 = arith.constant 0 : i32
    %c0_i32_0 = arith.constant 0 : i32
    %c0_i32_1 = arith.constant 0 : i32
    return %arg0, %c0_i32, %c0_i32_0 : i32, i32, i32
  }
  func.func @transform_1(%arg0: i32) -> (i32, i32, i32) {
    %c0_i32 = arith.constant 0 : i32
    %c0_i32_0 = arith.constant 0 : i32
    %c0_i32_1 = arith.constant 0 : i32
    return %arg0, %c0_i32, %c0_i32_0 : i32, i32, i32
  }
  func.func @transform_2(%arg0: i32) -> (i32, i32) {
    %c0_i32 = arith.constant 0 : i32
    %c0_i32_0 = arith.constant 0 : i32
    %c0_i32_1 = arith.constant 0 : i32
    return %c0_i32, %c0_i32_0 : i32, i32
  }
  func.func @transform_3(%arg0: i32) -> (i32, i32) {
    %c0_i32 = arith.constant 0 : i32
    %c0_i32_0 = arith.constant 0 : i32
    %c0_i32_1 = arith.constant 0 : i32
    return %c0_i32, %c0_i32_0 : i32, i32
  }
  func.func @transform_4(%arg0: i32) -> (i32, i32) {
    %c0_i32 = arith.constant 0 : i32
    %c0_i32_0 = arith.constant 0 : i32
    %c0_i32_1 = arith.constant 0 : i32
    return %c0_i32, %c0_i32_0 : i32, i32
  }
  func.func @transform_5(%arg0: i32) -> (i32, i32) {
    %c0_i32 = arith.constant 0 : i32
    %c0_i32_0 = arith.constant 0 : i32
    %c0_i32_1 = arith.constant 0 : i32
    return %c0_i32, %c0_i32_0 : i32, i32
  }
  func.func @transform_6(%arg0: i32) -> (i32, i32, i32) {
    %c0_i32 = arith.constant 0 : i32
    %c0_i32_0 = arith.constant 0 : i32
    %c0_i32_1 = arith.constant 0 : i32
    return %arg0, %c0_i32, %c0_i32_0 : i32, i32, i32
  }
  func.func @transform_7(%arg0: i32) -> (i32, i32, i32) {
    %c0_i32 = arith.constant 0 : i32
    %c0_i32_0 = arith.constant 0 : i32
    %c0_i32_1 = arith.constant 0 : i32
    return %arg0, %c0_i32, %c0_i32_0 : i32, i32, i32
  }
}

module attributes {stable_mosaic.version = 11 : i64} {
  func.func @_tail_kernel(%arg0: i32, %arg1: memref<1x32x256xbf16, #tpu.memory_space<vmem>>, %arg2: memref<1x32x64xf32, #tpu.memory_space<vmem>>, %arg3: memref<64x256xf32, #tpu.memory_space<vmem>>, %arg4: memref<32x32xf32, #tpu.memory_space<vmem>>, %arg5: memref<32x1xf32, #tpu.memory_space<vmem>>, %arg6: memref<128x32xf32, #tpu.memory_space<vmem>>, %arg7: memref<128x1xf32, #tpu.memory_space<vmem>>, %arg8: memref<3x128xf32, #tpu.memory_space<vmem>>, %arg9: memref<3x1xf32, #tpu.memory_space<vmem>>, %arg10: memref<1x3x256xf32, #tpu.memory_space<vmem>>) attributes {dimension_semantics = [#tpu.dimension_semantics<parallel>], iteration_bounds = array<i64: 2>, scalar_prefetch = 0 : i64, scratch_operands = 0 : i64, tpu.core_type = #tpu.core_type<tc>, window_params = [{transform_indices = @transform_0, window_bounds = array<i64: 1, 32, 256>}, {transform_indices = @transform_1, window_bounds = array<i64: 1, 32, 64>}, {pipeline_mode = #tpu.pipeline_mode<synchronous>, transform_indices = @transform_2, window_bounds = array<i64: 64, 256>}, {pipeline_mode = #tpu.pipeline_mode<synchronous>, transform_indices = @transform_3, window_bounds = array<i64: 32, 32>}, {pipeline_mode = #tpu.pipeline_mode<synchronous>, transform_indices = @transform_4, window_bounds = array<i64: 32, 1>}, {pipeline_mode = #tpu.pipeline_mode<synchronous>, transform_indices = @transform_5, window_bounds = array<i64: 128, 32>}, {pipeline_mode = #tpu.pipeline_mode<synchronous>, transform_indices = @transform_6, window_bounds = array<i64: 128, 1>}, {pipeline_mode = #tpu.pipeline_mode<synchronous>, transform_indices = @transform_7, window_bounds = array<i64: 3, 128>}, {pipeline_mode = #tpu.pipeline_mode<synchronous>, transform_indices = @transform_8, window_bounds = array<i64: 3, 1>}, {transform_indices = @transform_9, window_bounds = array<i64: 1, 3, 256>}]} {
    %c0 = arith.constant 0 : index
    %c0_0 = arith.constant 0 : index
    %c0_1 = arith.constant 0 : index
    %0 = vector.load %arg2[%c0, %c0_0, %c0_1] : memref<1x32x64xf32, #tpu.memory_space<vmem>>, vector<1x32x64xf32>
    %1 = vector.shape_cast %0 : vector<1x32x64xf32> to vector<32x64xf32>
    %c0_2 = arith.constant 0 : index
    %c0_3 = arith.constant 0 : index
    %2 = vector.load %arg3[%c0_2, %c0_3] : memref<64x256xf32, #tpu.memory_space<vmem>>, vector<64x256xf32>
    %cst = arith.constant dense<0.000000e+00> : vector<32x256xf32>
    %3 = tpu.matmul %1, %2, %cst {dimension_numbers = #tpu.dot_dimension_numbers<[1], [0], [0], [1], [0, 0, 1, 1], [], []>} : vector<32x64xf32>, vector<64x256xf32>, vector<32x256xf32> -> vector<32x256xf32>
    %c0_4 = arith.constant 0 : index
    %c0_5 = arith.constant 0 : index
    %c0_6 = arith.constant 0 : index
    %4 = vector.load %arg1[%c0_4, %c0_5, %c0_6] : memref<1x32x256xbf16, #tpu.memory_space<vmem>>, vector<1x32x256xbf16>
    %5 = vector.shape_cast %4 : vector<1x32x256xbf16> to vector<32x256xbf16>
    %6 = arith.extf %5 : vector<32x256xbf16> to vector<32x256xf32>
    %c0_7 = arith.constant 0 : index
    %c0_8 = arith.constant 0 : index
    %7 = vector.load %arg4[%c0_7, %c0_8] : memref<32x32xf32, #tpu.memory_space<vmem>>, vector<32x32xf32>
    %cst_9 = arith.constant dense<0.000000e+00> : vector<32x256xf32>
    %8 = tpu.matmul %7, %6, %cst_9 {dimension_numbers = #tpu.dot_dimension_numbers<[1], [0], [0], [1], [0, 0, 1, 1], [], []>} : vector<32x32xf32>, vector<32x256xf32>, vector<32x256xf32> -> vector<32x256xf32>
    %c0_10 = arith.constant 0 : index
    %c0_11 = arith.constant 0 : index
    %9 = vector.load %arg5[%c0_10, %c0_11] : memref<32x1xf32, #tpu.memory_space<vmem>>, vector<32x1xf32>
    %10 = vector.broadcast %9 : vector<32x1xf32> to vector<32x256xf32>
    %11 = arith.addf %8, %10 : vector<32x256xf32>
    %12 = arith.addf %11, %3 : vector<32x256xf32>
    %c0_12 = arith.constant 0 : index
    %c0_13 = arith.constant 0 : index
    %13 = vector.load %arg6[%c0_12, %c0_13] : memref<128x32xf32, #tpu.memory_space<vmem>>, vector<128x32xf32>
    %cst_14 = arith.constant dense<0.000000e+00> : vector<128x256xf32>
    %14 = tpu.matmul %13, %12, %cst_14 {dimension_numbers = #tpu.dot_dimension_numbers<[1], [0], [0], [1], [0, 0, 1, 1], [], []>} : vector<128x32xf32>, vector<32x256xf32>, vector<128x256xf32> -> vector<128x256xf32>
    %c0_15 = arith.constant 0 : index
    %c0_16 = arith.constant 0 : index
    %15 = vector.load %arg7[%c0_15, %c0_16] : memref<128x1xf32, #tpu.memory_space<vmem>>, vector<128x1xf32>
    %16 = vector.broadcast %15 : vector<128x1xf32> to vector<128x256xf32>
    %17 = arith.addf %14, %16 : vector<128x256xf32>
    %18 = arith.mulf %17, %17 : vector<128x256xf32>
    %19 = arith.mulf %17, %18 : vector<128x256xf32>
    %cst_17 = arith.constant 4.471500e-02 : f32
    %20 = vector.broadcast %cst_17 : f32 to vector<128x256xf32>
    %21 = arith.mulf %20, %19 : vector<128x256xf32>
    %22 = arith.addf %17, %21 : vector<128x256xf32>
    %cst_18 = arith.constant 0.797884583 : f32
    %23 = vector.broadcast %cst_18 : f32 to vector<128x256xf32>
    %24 = arith.mulf %23, %22 : vector<128x256xf32>
    %25 = math.tanh %24 : vector<128x256xf32>
    %cst_19 = arith.constant 1.000000e+00 : f32
    %26 = vector.broadcast %cst_19 : f32 to vector<128x256xf32>
    %27 = arith.addf %26, %25 : vector<128x256xf32>
    %cst_20 = arith.constant 5.000000e-01 : f32
    %28 = vector.broadcast %cst_20 : f32 to vector<128x256xf32>
    %29 = arith.mulf %28, %27 : vector<128x256xf32>
    %30 = arith.mulf %17, %29 : vector<128x256xf32>
    %c0_21 = arith.constant 0 : index
    %c0_22 = arith.constant 0 : index
    %31 = vector.load %arg8[%c0_21, %c0_22] : memref<3x128xf32, #tpu.memory_space<vmem>>, vector<3x128xf32>
    %cst_23 = arith.constant dense<0.000000e+00> : vector<3x256xf32>
    %32 = tpu.matmul %31, %30, %cst_23 {dimension_numbers = #tpu.dot_dimension_numbers<[1], [0], [0], [1], [0, 0, 1, 1], [], []>} : vector<3x128xf32>, vector<128x256xf32>, vector<3x256xf32> -> vector<3x256xf32>
    %c0_24 = arith.constant 0 : index
    %c0_25 = arith.constant 0 : index
    %33 = vector.load %arg9[%c0_24, %c0_25] : memref<3x1xf32, #tpu.memory_space<vmem>>, vector<3x1xf32>
    %34 = vector.broadcast %33 : vector<3x1xf32> to vector<3x256xf32>
    %35 = arith.addf %32, %34 : vector<3x256xf32>
    %c0_26 = arith.constant 0 : index
    %c0_27 = arith.constant 0 : index
    %c0_28 = arith.constant 0 : index
    %36 = vector.load %arg10[%c0_26, %c0_27, %c0_28] : memref<1x3x256xf32, #tpu.memory_space<vmem>>, vector<1x3x256xf32>
    %37 = vector.shape_cast %36 : vector<1x3x256xf32> to vector<3x256xf32>
    %38 = vector.shape_cast %35 : vector<3x256xf32> to vector<1x3x256xf32>
    tpu.vector_store %arg10[%c0_26, %c0_27, %c0_28], %38 {strides = array<i32>} : memref<1x3x256xf32, #tpu.memory_space<vmem>>, vector<1x3x256xf32>,
    return
  }
  func.func @transform_0(%arg0: i32) -> (i32, i32, i32) {
    %c0_i32 = arith.constant 0 : i32
    %c0_i32_0 = arith.constant 0 : i32
    %c0_i32_1 = arith.constant 0 : i32
    return %arg0, %c0_i32, %c0_i32_0 : i32, i32, i32
  }
  func.func @transform_1(%arg0: i32) -> (i32, i32, i32) {
    %c0_i32 = arith.constant 0 : i32
    %c0_i32_0 = arith.constant 0 : i32
    %c0_i32_1 = arith.constant 0 : i32
    return %arg0, %c0_i32, %c0_i32_0 : i32, i32, i32
  }
  func.func @transform_2(%arg0: i32) -> (i32, i32) {
    %c0_i32 = arith.constant 0 : i32
    %c0_i32_0 = arith.constant 0 : i32
    %c0_i32_1 = arith.constant 0 : i32
    return %c0_i32, %c0_i32_0 : i32, i32
  }
  func.func @transform_3(%arg0: i32) -> (i32, i32) {
    %c0_i32 = arith.constant 0 : i32
    %c0_i32_0 = arith.constant 0 : i32
    %c0_i32_1 = arith.constant 0 : i32
    return %c0_i32, %c0_i32_0 : i32, i32
  }
  func.func @transform_4(%arg0: i32) -> (i32, i32) {
    %c0_i32 = arith.constant 0 : i32
    %c0_i32_0 = arith.constant 0 : i32
    %c0_i32_1 = arith.constant 0 : i32
    return %c0_i32, %c0_i32_0 : i32, i32
  }
  func.func @transform_5(%arg0: i32) -> (i32, i32) {
    %c0_i32 = arith.constant 0 : i32
    %c0_i32_0 = arith.constant 0 : i32
    %c0_i32_1 = arith.constant 0 : i32
    return %c0_i32, %c0_i32_0 : i32, i32
  }
  func.func @transform_6(%arg0: i32) -> (i32, i32) {
    %c0_i32 = arith.constant 0 : i32
    %c0_i32_0 = arith.constant 0 : i32
    %c0_i32_1 = arith.constant 0 : i32
    return %c0_i32, %c0_i32_0 : i32, i32
  }
  func.func @transform_7(%arg0: i32) -> (i32, i32) {
    %c0_i32 = arith.constant 0 : i32
    %c0_i32_0 = arith.constant 0 : i32
    %c0_i32_1 = arith.constant 0 : i32
    return %c0_i32, %c0_i32_0 : i32, i32
  }
  func.func @transform_8(%arg0: i32) -> (i32, i32) {
    %c0_i32 = arith.constant 0 : i32
    %c0_i32_0 = arith.constant 0 : i32
    %c0_i32_1 = arith.constant 0 : i32
    return %c0_i32, %c0_i32_0 : i32, i32
  }
  func.func @transform_9(%arg0: i32) -> (i32, i32, i32) {
    %c0_i32 = arith.constant 0 : i32
    %c0_i32_0 = arith.constant 0 : i32
    %c0_i32_1 = arith.constant 0 : i32
    return %arg0, %c0_i32, %c0_i32_0 : i32, i32, i32
  }
}

module attributes {stable_mosaic.version = 11 : i64} {
  func.func @_probe_kernel(%arg0: i32, %arg1: memref<1x3x256xf32, #tpu.memory_space<vmem>>, %arg2: memref<32x3xf32, #tpu.memory_space<vmem>>, %arg3: memref<32x1xf32, #tpu.memory_space<vmem>>, %arg4: memref<256x64xf32, #tpu.memory_space<vmem>>, %arg5: memref<1x32x64xf32, #tpu.memory_space<vmem>>) attributes {dimension_semantics = [#tpu.dimension_semantics<parallel>], iteration_bounds = array<i64: 2>, scalar_prefetch = 0 : i64, scratch_operands = 0 : i64, tpu.core_type = #tpu.core_type<tc>, window_params = [{transform_indices = @transform_0, window_bounds = array<i64: 1, 3, 256>}, {pipeline_mode = #tpu.pipeline_mode<synchronous>, transform_indices = @transform_1, window_bounds = array<i64: 32, 3>}, {pipeline_mode = #tpu.pipeline_mode<synchronous>, transform_indices = @transform_2, window_bounds = array<i64: 32, 1>}, {pipeline_mode = #tpu.pipeline_mode<synchronous>, transform_indices = @transform_3, window_bounds = array<i64: 256, 64>}, {transform_indices = @transform_4, window_bounds = array<i64: 1, 32, 64>}]} {
    %c0 = arith.constant 0 : index
    %c0_0 = arith.constant 0 : index
    %0 = vector.load %arg2[%c0, %c0_0] : memref<32x3xf32, #tpu.memory_space<vmem>>, vector<32x3xf32>
    %c0_1 = arith.constant 0 : index
    %c0_2 = arith.constant 0 : index
    %c0_3 = arith.constant 0 : index
    %1 = vector.load %arg1[%c0_1, %c0_2, %c0_3] : memref<1x3x256xf32, #tpu.memory_space<vmem>>, vector<1x3x256xf32>
    %2 = vector.shape_cast %1 : vector<1x3x256xf32> to vector<3x256xf32>
    %cst = arith.constant dense<0.000000e+00> : vector<32x256xf32>
    %3 = tpu.matmul %0, %2, %cst {dimension_numbers = #tpu.dot_dimension_numbers<[1], [0], [0], [1], [0, 0, 1, 1], [], []>} : vector<32x3xf32>, vector<3x256xf32>, vector<32x256xf32> -> vector<32x256xf32>
    %c0_4 = arith.constant 0 : index
    %c0_5 = arith.constant 0 : index
    %4 = vector.load %arg3[%c0_4, %c0_5] : memref<32x1xf32, #tpu.memory_space<vmem>>, vector<32x1xf32>
    %5 = vector.broadcast %4 : vector<32x1xf32> to vector<32x256xf32>
    %6 = arith.addf %3, %5 : vector<32x256xf32>
    %c0_6 = arith.constant 0 : index
    %c0_7 = arith.constant 0 : index
    %7 = vector.load %arg4[%c0_6, %c0_7] : memref<256x64xf32, #tpu.memory_space<vmem>>, vector<256x64xf32>
    %cst_8 = arith.constant dense<0.000000e+00> : vector<32x64xf32>
    %8 = tpu.matmul %6, %7, %cst_8 {dimension_numbers = #tpu.dot_dimension_numbers<[1], [0], [0], [1], [0, 0, 1, 1], [], []>} : vector<32x256xf32>, vector<256x64xf32>, vector<32x64xf32> -> vector<32x64xf32>
    %c0_9 = arith.constant 0 : index
    %c0_10 = arith.constant 0 : index
    %c0_11 = arith.constant 0 : index
    %9 = vector.load %arg5[%c0_9, %c0_10, %c0_11] : memref<1x32x64xf32, #tpu.memory_space<vmem>>, vector<1x32x64xf32>
    %10 = vector.shape_cast %9 : vector<1x32x64xf32> to vector<32x64xf32>
    %11 = vector.shape_cast %8 : vector<32x64xf32> to vector<1x32x64xf32>
    tpu.vector_store %arg5[%c0_9, %c0_10, %c0_11], %11 {strides = array<i32>} : memref<1x32x64xf32, #tpu.memory_space<vmem>>, vector<1x32x64xf32>,
    return
  }
  func.func @transform_0(%arg0: i32) -> (i32, i32, i32) {
    %c0_i32 = arith.constant 0 : i32
    %c0_i32_0 = arith.constant 0 : i32
    %c0_i32_1 = arith.constant 0 : i32
    return %arg0, %c0_i32, %c0_i32_0 : i32, i32, i32
  }
  func.func @transform_1(%arg0: i32) -> (i32, i32) {
    %c0_i32 = arith.constant 0 : i32
    %c0_i32_0 = arith.constant 0 : i32
    %c0_i32_1 = arith.constant 0 : i32
    return %c0_i32, %c0_i32_0 : i32, i32
  }
  func.func @transform_2(%arg0: i32) -> (i32, i32) {
    %c0_i32 = arith.constant 0 : i32
    %c0_i32_0 = arith.constant 0 : i32
    %c0_i32_1 = arith.constant 0 : i32
    return %c0_i32, %c0_i32_0 : i32, i32
  }
  func.func @transform_3(%arg0: i32) -> (i32, i32) {
    %c0_i32 = arith.constant 0 : i32
    %c0_i32_0 = arith.constant 0 : i32
    %c0_i32_1 = arith.constant 0 : i32
    return %c0_i32, %c0_i32_0 : i32, i32
  }
  func.func @transform_4(%arg0: i32) -> (i32, i32, i32) {
    %c0_i32 = arith.constant 0 : i32
    %c0_i32_0 = arith.constant 0 : i32
    %c0_i32_1 = arith.constant 0 : i32
    return %arg0, %c0_i32, %c0_i32_0 : i32, i32, i32
  }
}

module attributes {stable_mosaic.version = 11 : i64} {
  func.func @_lift_layer_kernel(%arg0: i32, %arg1: memref<1x3x256xf32, #tpu.memory_space<vmem>>, %arg2: memref<32x3xf32, #tpu.memory_space<vmem>>, %arg3: memref<32x1xf32, #tpu.memory_space<vmem>>, %arg4: memref<1x32x64xf32, #tpu.memory_space<vmem>>, %arg5: memref<64x256xf32, #tpu.memory_space<vmem>>, %arg6: memref<32x32xf32, #tpu.memory_space<vmem>>, %arg7: memref<32x1xf32, #tpu.memory_space<vmem>>, %arg8: memref<256x64xf32, #tpu.memory_space<vmem>>, %arg9: memref<1x32x256xbf16, #tpu.memory_space<vmem>>, %arg10: memref<1x32x64xf32, #tpu.memory_space<vmem>>) attributes {dimension_semantics = [#tpu.dimension_semantics<parallel>], iteration_bounds = array<i64: 2>, scalar_prefetch = 0 : i64, scratch_operands = 0 : i64, tpu.core_type = #tpu.core_type<tc>, window_params = [{transform_indices = @transform_0, window_bounds = array<i64: 1, 3, 256>}, {pipeline_mode = #tpu.pipeline_mode<synchronous>, transform_indices = @transform_1, window_bounds = array<i64: 32, 3>}, {pipeline_mode = #tpu.pipeline_mode<synchronous>, transform_indices = @transform_2, window_bounds = array<i64: 32, 1>}, {transform_indices = @transform_3, window_bounds = array<i64: 1, 32, 64>}, {pipeline_mode = #tpu.pipeline_mode<synchronous>, transform_indices = @transform_4, window_bounds = array<i64: 64, 256>}, {pipeline_mode = #tpu.pipeline_mode<synchronous>, transform_indices = @transform_5, window_bounds = array<i64: 32, 32>}, {pipeline_mode = #tpu.pipeline_mode<synchronous>, transform_indices = @transform_6, window_bounds = array<i64: 32, 1>}, {pipeline_mode = #tpu.pipeline_mode<synchronous>, transform_indices = @transform_7, window_bounds = array<i64: 256, 64>}, {transform_indices = @transform_8, window_bounds = array<i64: 1, 32, 256>}, {transform_indices = @transform_9, window_bounds = array<i64: 1, 32, 64>}]} {
    %c0 = arith.constant 0 : index
    %c0_0 = arith.constant 0 : index
    %0 = vector.load %arg2[%c0, %c0_0] : memref<32x3xf32, #tpu.memory_space<vmem>>, vector<32x3xf32>
    %c0_1 = arith.constant 0 : index
    %c0_2 = arith.constant 0 : index
    %c0_3 = arith.constant 0 : index
    %1 = vector.load %arg1[%c0_1, %c0_2, %c0_3] : memref<1x3x256xf32, #tpu.memory_space<vmem>>, vector<1x3x256xf32>
    %2 = vector.shape_cast %1 : vector<1x3x256xf32> to vector<3x256xf32>
    %cst = arith.constant dense<0.000000e+00> : vector<32x256xf32>
    %3 = tpu.matmul %0, %2, %cst {dimension_numbers = #tpu.dot_dimension_numbers<[1], [0], [0], [1], [0, 0, 1, 1], [], []>} : vector<32x3xf32>, vector<3x256xf32>, vector<32x256xf32> -> vector<32x256xf32>
    %c0_4 = arith.constant 0 : index
    %c0_5 = arith.constant 0 : index
    %4 = vector.load %arg3[%c0_4, %c0_5] : memref<32x1xf32, #tpu.memory_space<vmem>>, vector<32x1xf32>
    %5 = vector.broadcast %4 : vector<32x1xf32> to vector<32x256xf32>
    %6 = arith.addf %3, %5 : vector<32x256xf32>
    %c0_6 = arith.constant 0 : index
    %c0_7 = arith.constant 0 : index
    %c0_8 = arith.constant 0 : index
    %7 = vector.load %arg4[%c0_6, %c0_7, %c0_8] : memref<1x32x64xf32, #tpu.memory_space<vmem>>, vector<1x32x64xf32>
    %8 = vector.shape_cast %7 : vector<1x32x64xf32> to vector<32x64xf32>
    %c0_9 = arith.constant 0 : index
    %c0_10 = arith.constant 0 : index
    %9 = vector.load %arg5[%c0_9, %c0_10] : memref<64x256xf32, #tpu.memory_space<vmem>>, vector<64x256xf32>
    %cst_11 = arith.constant dense<0.000000e+00> : vector<32x256xf32>
    %10 = tpu.matmul %8, %9, %cst_11 {dimension_numbers = #tpu.dot_dimension_numbers<[1], [0], [0], [1], [0, 0, 1, 1], [], []>} : vector<32x64xf32>, vector<64x256xf32>, vector<32x256xf32> -> vector<32x256xf32>
    %c0_12 = arith.constant 0 : index
    %c0_13 = arith.constant 0 : index
    %11 = vector.load %arg6[%c0_12, %c0_13] : memref<32x32xf32, #tpu.memory_space<vmem>>, vector<32x32xf32>
    %cst_14 = arith.constant dense<0.000000e+00> : vector<32x256xf32>
    %12 = tpu.matmul %11, %6, %cst_14 {dimension_numbers = #tpu.dot_dimension_numbers<[1], [0], [0], [1], [0, 0, 1, 1], [], []>} : vector<32x32xf32>, vector<32x256xf32>, vector<32x256xf32> -> vector<32x256xf32>
    %c0_15 = arith.constant 0 : index
    %c0_16 = arith.constant 0 : index
    %13 = vector.load %arg7[%c0_15, %c0_16] : memref<32x1xf32, #tpu.memory_space<vmem>>, vector<32x1xf32>
    %14 = vector.broadcast %13 : vector<32x1xf32> to vector<32x256xf32>
    %15 = arith.addf %12, %14 : vector<32x256xf32>
    %16 = arith.addf %15, %10 : vector<32x256xf32>
    %17 = arith.mulf %16, %16 : vector<32x256xf32>
    %18 = arith.mulf %16, %17 : vector<32x256xf32>
    %cst_17 = arith.constant 4.471500e-02 : f32
    %19 = vector.broadcast %cst_17 : f32 to vector<32x256xf32>
    %20 = arith.mulf %19, %18 : vector<32x256xf32>
    %21 = arith.addf %16, %20 : vector<32x256xf32>
    %cst_18 = arith.constant 0.797884583 : f32
    %22 = vector.broadcast %cst_18 : f32 to vector<32x256xf32>
    %23 = arith.mulf %22, %21 : vector<32x256xf32>
    %24 = math.tanh %23 : vector<32x256xf32>
    %cst_19 = arith.constant 1.000000e+00 : f32
    %25 = vector.broadcast %cst_19 : f32 to vector<32x256xf32>
    %26 = arith.addf %25, %24 : vector<32x256xf32>
    %cst_20 = arith.constant 5.000000e-01 : f32
    %27 = vector.broadcast %cst_20 : f32 to vector<32x256xf32>
    %28 = arith.mulf %27, %26 : vector<32x256xf32>
    %29 = arith.mulf %16, %28 : vector<32x256xf32>
    %30 = arith.truncf %29 : vector<32x256xf32> to vector<32x256xbf16>
    %c0_21 = arith.constant 0 : index
    %c0_22 = arith.constant 0 : index
    %c0_23 = arith.constant 0 : index
    %31 = vector.load %arg9[%c0_21, %c0_22, %c0_23] : memref<1x32x256xbf16, #tpu.memory_space<vmem>>, vector<1x32x256xbf16>
    %32 = vector.shape_cast %31 : vector<1x32x256xbf16> to vector<32x256xbf16>
    %33 = vector.shape_cast %30 : vector<32x256xbf16> to vector<1x32x256xbf16>
    tpu.vector_store %arg9[%c0_21, %c0_22, %c0_23], %33 {strides = array<i32>} : memref<1x32x256xbf16, #tpu.memory_space<vmem>>, vector<1x32x256xbf16>,
    %c0_24 = arith.constant 0 : index
    %c0_25 = arith.constant 0 : index
    %34 = vector.load %arg8[%c0_24, %c0_25] : memref<256x64xf32, #tpu.memory_space<vmem>>, vector<256x64xf32>
    %cst_26 = arith.constant dense<0.000000e+00> : vector<32x64xf32>
    %35 = tpu.matmul %29, %34, %cst_26 {dimension_numbers = #tpu.dot_dimension_numbers<[1], [0], [0], [1], [0, 0, 1, 1], [], []>} : vector<32x256xf32>, vector<256x64xf32>, vector<32x64xf32> -> vector<32x64xf32>
    %c0_27 = arith.constant 0 : index
    %c0_28 = arith.constant 0 : index
    %c0_29 = arith.constant 0 : index
    %36 = vector.load %arg10[%c0_27, %c0_28, %c0_29] : memref<1x32x64xf32, #tpu.memory_space<vmem>>, vector<1x32x64xf32>
    %37 = vector.shape_cast %36 : vector<1x32x64xf32> to vector<32x64xf32>
    %38 = vector.shape_cast %35 : vector<32x64xf32> to vector<1x32x64xf32>
    tpu.vector_store %arg10[%c0_27, %c0_28, %c0_29], %38 {strides = array<i32>} : memref<1x32x64xf32, #tpu.memory_space<vmem>>, vector<1x32x64xf32>,
    return
  }
  func.func @transform_0(%arg0: i32) -> (i32, i32, i32) {
    %c0_i32 = arith.constant 0 : i32
    %c0_i32_0 = arith.constant 0 : i32
    %c0_i32_1 = arith.constant 0 : i32
    return %arg0, %c0_i32, %c0_i32_0 : i32, i32, i32
  }
  func.func @transform_1(%arg0: i32) -> (i32, i32) {
    %c0_i32 = arith.constant 0 : i32
    %c0_i32_0 = arith.constant 0 : i32
    %c0_i32_1 = arith.constant 0 : i32
    return %c0_i32, %c0_i32_0 : i32, i32
  }
  func.func @transform_2(%arg0: i32) -> (i32, i32) {
    %c0_i32 = arith.constant 0 : i32
    %c0_i32_0 = arith.constant 0 : i32
    %c0_i32_1 = arith.constant 0 : i32
    return %c0_i32, %c0_i32_0 : i32, i32
  }
  func.func @transform_3(%arg0: i32) -> (i32, i32, i32) {
    %c0_i32 = arith.constant 0 : i32
    %c0_i32_0 = arith.constant 0 : i32
    %c0_i32_1 = arith.constant 0 : i32
    return %arg0, %c0_i32, %c0_i32_0 : i32, i32, i32
  }
  func.func @transform_4(%arg0: i32) -> (i32, i32) {
    %c0_i32 = arith.constant 0 : i32
    %c0_i32_0 = arith.constant 0 : i32
    %c0_i32_1 = arith.constant 0 : i32
    return %c0_i32, %c0_i32_0 : i32, i32
  }
  func.func @transform_5(%arg0: i32) -> (i32, i32) {
    %c0_i32 = arith.constant 0 : i32
    %c0_i32_0 = arith.constant 0 : i32
    %c0_i32_1 = arith.constant 0 : i32
    return %c0_i32, %c0_i32_0 : i32, i32
  }
  func.func @transform_6(%arg0: i32) -> (i32, i32) {
    %c0_i32 = arith.constant 0 : i32
    %c0_i32_0 = arith.constant 0 : i32
    %c0_i32_1 = arith.constant 0 : i32
    return %c0_i32, %c0_i32_0 : i32, i32
  }
  func.func @transform_7(%arg0: i32) -> (i32, i32) {
    %c0_i32 = arith.constant 0 : i32
    %c0_i32_0 = arith.constant 0 : i32
    %c0_i32_1 = arith.constant 0 : i32
    return %c0_i32, %c0_i32_0 : i32, i32
  }
  func.func @transform_8(%arg0: i32) -> (i32, i32, i32) {
    %c0_i32 = arith.constant 0 : i32
    %c0_i32_0 = arith.constant 0 : i32
    %c0_i32_1 = arith.constant 0 : i32
    return %arg0, %c0_i32, %c0_i32_0 : i32, i32, i32
  }
  func.func @transform_9(%arg0: i32) -> (i32, i32, i32) {
    %c0_i32 = arith.constant 0 : i32
    %c0_i32_0 = arith.constant 0 : i32
    %c0_i32_1 = arith.constant 0 : i32
    return %arg0, %c0_i32, %c0_i32_0 : i32, i32, i32
  }
}

</mosaic_0001>

<bundles_post_ra>
// kernel: recursive_fno_forward.15
= control target key start
LH: loop header
LB: loop body
LE: loop exit
PB: predicated region body
PF: predicated region fallthrough
CT: control target
= control target key end

     0   :  { %s672_s15 = smov 0   ;;  %s823_s0 = inlined_call_operand.vmem [shape: f32[2,4,256], index: 0, kind: input, shape index: {}]   ;;  %s824_s1 = inlined_call_operand.vmem [shape: f32[32,4], index: 1, kind: input, shape index: {}]   ;;  %s825_s2 = inlined_call_operand.vmem [shape: f32[32,1], index: 2, kind: input, shape index: {}]   ;;  %s826_s3 = inlined_call_operand.vmem [shape: f32[256,64], index: 3, kind: input, shape index: {}]   ;;  %s827_s4 = inlined_call_operand.vmem [shape: f32[2,32,64], index: 4, kind: output, shape index: {}]  }
   0x1 LB: > { %s513_s16 = sadd.s32 4294967295, %s643_s15   ;;  %p517_p0 = scmp.ge.s32.totalorder %s643_s15, 1  ;;  %s643_s15 = sphi %s672_s15, %s14_s15  }
   0x2   : > { %p162_p1 = scmp.lt.s32.totalorder %s643_s15, 3 }
   0x4   : > { %p163_p2 = pnand %p517_p0, %p162_p1 }
   0x5   : > { %p188_p3 = scmp.lt.s32.totalorder (!%p163_p2), %s513_s16, 1  ;;  %v645_v0 = vmov (!%p163_p2), 0.0   ;;  %v203_v1 = vld [vmem:[%s825_s2] sm:$0xff] (!%p163_p2)  ;;  %v646_v2 = vmov (!%p163_p2), 0   ;;  %v204_v3 = vld [vmem:[%s825_s2 + $0x8] sm:$0xff] (!%p163_p2)  ;;  %v205_v4 = vld [vmem:[%s825_s2 + $0x10] sm:$0xff] (!%p163_p2) }
   0x6   : > { %166 = sbr.rel (%p163_p2) target bundleno = 465 (0x1d1), region = 36  ;;  %311 = vmatprep.mubr.f32.mxu0 (!%p163_p2), %v645_v0  ;;  %635 = vset.pattern.permute.xlu1 (!%p163_p2), %v646_v2  ;;  %v206_v5 = vld [vmem:[%s825_s2 + $0x18] sm:$0xff] (!%p163_p2)  ;;  %v352_v6 = vld [vmem:[%s826_s3 + $0x80] sm:$0xff] (!%p163_p2)  ;;  %v353_v7 = vld [vmem:[%s826_s3 + $0x88] sm:$0xff] (!%p163_p2)  ;;  %vm242_vm0 = vcmask (!%p163_p2), 1043456   ;;  %vm229_vm1 = vcmask (!%p163_p2), 31744  }
   0x7   : > { %634 = vset.pattern.permute.xlu0 (!%p163_p2), %v646_v2  ;;  %209 = vperm.xlu1 (!%p163_p2), %635, %v203_v1   ;;  %v336_v8 = vld [vmem:[%s826_s3] sm:$0xff] (!%p163_p2)  ;;  %v576_v9 = vpack.c.bf16 (!%p163_p2), %v353_v7, %v352_v6  ;;  %v337_v10 = vld [vmem:[%s826_s3 + $0x8] sm:$0xff] (!%p163_p2)  ;;  %v354_v11 = vld [vmem:[%s826_s3 + $0x90] sm:$0xff] (!%p163_p2)  ;;  %vm453_vm2 = vcmask (!%p163_p2), 523264  }
   0x8   : > { %214 = vperm.xlu0 (!%p163_p2), %634, %v204_v3   ;;  %v355_v12 = vld [vmem:[%s826_s3 + $0x98] sm:$0xff] (!%p163_p2)  ;;  %v578_v14 = vpack.c.bf16 (!%p163_p2), %v337_v10, %v336_v8  ;;  %v198_v17 = vld [vmem:[%s824_s1] sm:$0xff] (!%p163_p2)  ;;  %v338_v18 = vld [vmem:[%s826_s3 + $0x10] sm:$0xff] (!%p163_p2) }
   0x9   : > { %608 = vmatprep.subr.bf16.mxu1 (!%p163_p2), %v576_v9  ;;  %v580_v16 = vpack.c.bf16 (!%p163_p2), %v355_v12, %v354_v11  ;;  %v339_v19 = vld [vmem:[%s826_s3 + $0x18] sm:$0xff] (!%p163_p2)  ;;  %v356_v20 = vld [vmem:[%s826_s3 + $0xa0] sm:$0xff] (!%p163_p2)  ;;  %v357_v21 = vld [vmem:[%s826_s3 + $0xa8] sm:$0xff] (!%p163_p2) }
   0xa   : > { %616 = vmatpush3.bf16.msra.mxu1 (!%p163_p2), %v578_v14  ;;  %v582_v22 = vpack.c.bf16 (!%p163_p2), %v339_v19, %v338_v18  ;;  %v199_v23 = vld [vmem:[%s824_s1 + $0x8] sm:$0xff] (!%p163_p2)  ;;  %v584_v24 = vpack.c.bf16 (!%p163_p2), %v357_v21, %v356_v20  ;;  %v340_v25 = vld [vmem:[%s826_s3 + $0x20] sm:$0xff] (!%p163_p2)  ;;  %v358_v27 = vld [vmem:[%s826_s3 + $0xb0] sm:$0xff] (!%p163_p2) }
   0xb   : > { %224 = vperm.xlu1 (!%p163_p2), %635, %v206_v5   ;;  %609 = vmatprep.subr.bf16.mxu1 (!%p163_p2), %v580_v16  ;;  %v341_v26 = vld [vmem:[%s826_s3 + $0x28] sm:$0xff] (!%p163_p2)  ;;  %v359_v28 = vld [vmem:[%s826_s3 + $0xb8] sm:$0xff] (!%p163_p2)  ;;  %v200_v30 = vld [vmem:[%s824_s1 + $0x10] sm:$0xff] (!%p163_p2) }
   0xc   : > { %219 = vperm.xlu0 (!%p163_p2), %634, %v205_v4   ;;  %v586_v29 = vpack.c.bf16 (!%p163_p2), %v341_v26, %v340_v25  ;;  %v588_v31 = vpack.c.bf16 (!%p163_p2), %v359_v28, %v358_v27  ;;  %v342_v32 = vld [vmem:[%s826_s3 + $0x30] sm:$0xff] (!%p163_p2)  ;;  %v343_v33 = vld [vmem:[%s826_s3 + $0x38] sm:$0xff] (!%p163_p2)  ;;  %v360_v34 = vld [vmem:[%s826_s3 + $0xc0] sm:$0xff] (!%p163_p2) }
   0xd   : > { %s829_s16 = smov (!%p188_p3, %s513_s16), 1  ;;  %v361_v35 = vld [vmem:[%s826_s3 + $0xc8] sm:$0xff]  ;;  %v590_v36 = vpack.c.bf16 %v343_v33, %v342_v32  ;;  %v201_v37 = vld [vmem:[%s824_s1 + $0x18] sm:$0xff]  ;;  %v344_v39 = vld [vmem:[%s826_s3 + $0x40] sm:$0xff] }
   0xe   : > { %s530_s5 = sshll.u32 %s829_s16, 3  ;;  %617 = vmatpush3.bf16.msra.mxu1 %v582_v22  ;;  %v592_v38 = vpack.c.bf16 %v361_v35, %v360_v34  ;;  %v345_v40 = vld [vmem:[%s826_s3 + $0x48] sm:$0xff]  ;;  %v362_v41 = vld [vmem:[%s826_s3 + $0xd0] sm:$0xff]  ;;  %v363_v42 = vld [vmem:[%s826_s3 + $0xd8] sm:$0xff]  ;;  %s531_s29 = sshll.u32 %s829_s16, 5 }
   0xf   : > { %s192_s14 = scalar_lea.vmem %s823_s0, %s530_s5  ;;  %610 = vmatprep.subr.bf16.mxu1 %v584_v24  ;;  %v594_v43 = vpack.c.bf16 %v345_v40, %v344_v39  ;;  %v596_v44 = vpack.c.bf16 %v363_v42, %v362_v41  ;;  %v346_v45 = vld [vmem:[%s826_s3 + $0x50] sm:$0xff]  ;;  %v347_v46 = vld [vmem:[%s826_s3 + $0x58] sm:$0xff]  ;;  %v364_v47 = vld [vmem:[%s826_s3 + $0xe0] sm:$0xff]  ;;  %s197_s6 = scalar_lea.vmem %s827_s4, %s531_s29 }
  0x10   : > { %v202_v13 = vld [vmem:[%s192_s14] sm:$0xff]  ;;  %v365_v48 = vld [vmem:[%s826_s3 + $0xe8] sm:$0xff]  ;;  %v598_v49 = vpack.c.bf16 %v347_v46, %v346_v45  ;;  %v366_v54 = vld [vmem:[%s826_s3 + $0xf0] sm:$0xff] }
  0x11   : > { %v228_v15 = vcombine.high %v202_v13, %v202_v13  ;;  %v600_v50 = vpack.c.bf16 %v365_v48, %v364_v47  ;;  %v348_v51 = vld [vmem:[%s826_s3 + $0x60] sm:$0xff]  ;;  %v349_v52 = vld [vmem:[%s826_s3 + $0x68] sm:$0xff]  ;;  %v367_v55 = vld [vmem:[%s826_s3 + $0xf8] sm:$0xff] }
  0x12   : > { %618 = vmatpush3.bf16.msra.mxu1 %v586_v29  ;;  %v602_v53 = vpack.c.bf16 %v349_v52, %v348_v51  ;;  %v604_v56 = vpack.c.bf16 %v367_v55, %v366_v54  ;;  %v350_v57 = vld [vmem:[%s826_s3 + $0x70] sm:$0xff]  ;;  %v351_v58 = vld [vmem:[%s826_s3 + $0x78] sm:$0xff] }
  0x13   : > { %522 = vmatprep.subr.msk.mxu0 %vm242_vm0, %v228_v15  ;;  %611 = vmatprep.subr.bf16.mxu1 %v588_v31  ;;  %v606_v59 = vpack.c.bf16 %v351_v58, %v350_v57 }
  0x14   : > { %523 = vmatpush1.msk.msra.mxu0 %vm242_vm0, %v202_v13 }
  0x15   : > { %524 = vmatmul.mubr.msk.f32.vlgmr.msra.gmra.mrb[0].mxu0 %vm229_vm1, %v198_v17  ;;  %577 = vmatprep.subr.bf16.mxu0 %v576_v9 }
  0x16   : > { %317 = vmatprep.mubr.f32.mxu0 %v645_v0  ;;  %579 = vmatpush3.bf16.msra.mxu0 %v578_v14 }
  0x17   : > { %581 = vmatprep.subr.bf16.mxu0 %v580_v16  ;;  %619 = vmatpush3.bf16.msra.mxu1 %v590_v36 }
  0x18   : > { %612 = vmatprep.subr.bf16.mxu1 %v592_v38 }
  0x19   : > { %525 = vmatmul.mubr.msk.f32.gmra.mrb[2].mxu0 %vm229_vm1, %v199_v23 }
  0x1a   : > { %323 = vmatprep.mubr.f32.mxu0 %v645_v0  ;;  %583 = vmatpush3.bf16.msra.mxu0 %v582_v22 }
  0x1b   : > { %585 = vmatprep.subr.bf16.mxu0 %v584_v24  ;;  %620 = vmatpush3.bf16.msra.mxu1 %v594_v43 }
  0x1c   : > { %613 = vmatprep.subr.bf16.mxu1 %v596_v44 }
  0x1d   : > { %526 = vmatmul.mubr.msk.f32.gmra.mrb[4].mxu0 %vm229_vm1, %v200_v30 }
  0x1e   : > { %329 = vmatprep.mubr.f32.mxu0 %v645_v0  ;;  %587 = vmatpush3.bf16.msra.mxu0 %v586_v29 }
  0x1f   : > { %589 = vmatprep.subr.bf16.mxu0 %v588_v31  ;;  %621 = vmatpush3.bf16.msra.mxu1 %v598_v49 }
  0x20   : > { %614 = vmatprep.subr.bf16.mxu1 %v600_v50 }
  0x21   : > { %527 = vmatmul.mubr.msk.f32.gmra.mrb[6].mxu0 %vm229_vm1, %v201_v37 }
  0x22   : > { %591 = vmatpush3.bf16.msra.mxu0 %v590_v36 }
  0x23   : > { %593 = vmatprep.subr.bf16.mxu0 %v592_v38  ;;  %622 = vmatpush3.bf16.msra.mxu1 %v602_v53 }
  0x24   : > { %615 = vmatprep.subr.bf16.mxu1 %v604_v56 }
  0x26   : > { %595 = vmatpush3.bf16.msra.mxu0 %v594_v43 }
  0x27   : > { %597 = vmatprep.subr.bf16.mxu0 %v596_v44  ;;  %623 = vmatpush3.bf16.msra.mxu1 %v606_v59 }
  0x2a   : > { %599 = vmatpush3.bf16.msra.mxu0 %v598_v49 }
  0x2b   : > { %601 = vmatprep.subr.bf16.mxu0 %v600_v50 }
  0x2e   : > { %603 = vmatpush3.bf16.msra.mxu0 %v602_v53 }
  0x2f   : > { %605 = vmatprep.subr.bf16.mxu0 %v604_v56 }
  0x32   : > { %607 = vmatpush3.bf16.msra.mxu0 %v606_v59 }
  0x86   : > { %v210_v60 = vpop.permute.xlu1 %209 }
  0x87   : > { %v215_v1 = vpop.permute.xlu0 %214 }
  0x8a   : > { %v225_v12 = vpop.permute.xlu1 %224 }
  0x8b   : > { %v220_v7 = vpop.permute.xlu0 %219 }
  0xe8   : > { %v313_v61 = vpop.f32.mrb[0].mxu0 }
  0xe9   : > { %v315_v62 = vpop.f32.mrb[1].mxu0  ;;  %v314_v0 = vadd.f32 %v313_v61, %v210_v60 }
  0xea   : > { %v316_v63 = vadd.f32 %v315_v62, %v210_v60 }
  0xec   : > { %v319_v2 = vpop.f32.mrb[2].mxu0  ;;  %432 = vmatprep.mubr.f32.mxu0 %v316_v63 }
  0xed   : > { %v321_v3 = vpop.f32.mrb[3].mxu0  ;;  %433 = vmatmul.mubr.f32.vlgmr.msra.gmra.mrb[8].mxu0 %v314_v0  ;;  %v320_v5 = vadd.f32 %v319_v2, %v215_v1 }
  0xee   : > { %v322_v4 = vadd.f32 %v321_v3, %v215_v1 }
  0xf0   : > { %v325_v6 = vpop.f32.mrb[4].mxu0  ;;  %437 = vmatprep.mubr.f32.mxu1 %v322_v4 }
  0xf1   : > { %v327_v8 = vpop.f32.mrb[5].mxu0  ;;  %438 = vmatmul.mubr.f32.vlgmr.msra.gmra.mrb[0].mxu1 %v320_v5  ;;  %v326_v10 = vadd.f32 %v325_v6, %v220_v7 }
  0xf2   : > { %v328_v9 = vadd.f32 %v327_v8, %v220_v7 }
  0xf4   : > { %v331_v11 = vpop.f32.mrb[6].mxu0  ;;  %442 = vmatprep.mubr.f32.mxu1 %v328_v9 }
  0xf5   : > { %v333_v13 = vpop.f32.mrb[7].mxu0  ;;  %443 = vmatmul.mubr.f32.gmra.mrb[2].mxu1 %v326_v10  ;;  %v332_v15 = vadd.f32 %v331_v11, %v225_v12 }
  0xf6   : > { %v334_v14 = vadd.f32 %v333_v13, %v225_v12 }
  0xf8   : > { %447 = vmatprep.mubr.f32.mxu1 %v334_v14 }
  0xf9   : > { %448 = vmatmul.mubr.f32.gmra.mrb[4].mxu1 %v332_v15 }
 0x1c0   : > { %v564_v16 = vpop.f32.mrb[8].mxu0 }
 0x1c1   : > { %v565_v17 = vpop.f32.mrb[9].mxu0 }
 0x1c2   : > { %v566_v18 = vadd.f32 %v565_v17, %v564_v16 }
 0x1c4   : > { %454 = vst.msk [vmem:[%s197_s6] sm:$0xff] %vm453_vm2, %v566_v18  ;;  %v567_v19 = vpop.f32.mrb[0].mxu1 }
 0x1c5   : > { %v568_v20 = vpop.f32.mrb[1].mxu1 }
 0x1c6   : > { %v569_v21 = vadd.f32 %v568_v20, %v567_v19 }
 0x1c8   : > { %455 = vst.msk [vmem:[%s197_s6 + $0x8] sm:$0xff] %vm453_vm2, %v569_v21  ;;  %v570_v22 = vpop.f32.mrb[2].mxu1 }
 0x1c9   : > { %v571_v23 = vpop.f32.mrb[3].mxu1 }
 0x1ca   : > { %v572_v24 = vadd.f32 %v571_v23, %v570_v22 }
 0x1cc   : > { %456 = vst.msk [vmem:[%s197_s6 + $0x10] sm:$0xff] %vm453_vm2, %v572_v24  ;;  %v573_v25 = vpop.f32.mrb[4].mxu1 }
 0x1cd   : > { %v574_v26 = vpop.f32.mrb[5].mxu1 }
 0x1ce   : > { %v575_v27 = vadd.f32 %v574_v26, %v573_v25 }
 0x1d0   : > { %457 = vst.msk [vmem:[%s197_s6 + $0x18] sm:$0xff] %vm453_vm2, %v575_v27 }
 0x1d1 PF: > { %s14_s15 = sadd.s32 1, %s643_s15  }
 0x1d2   : > { %p11_p4 = scmp.ge.s32.totalorder %s14_s15, 4  }
 0x1d4   :  { %13 = sbr.rel (!%p11_p4) target bundleno = 1 (0x1), region = 66 }

// kernel: recursive_fno_forward.16
= control target key start
LH: loop header
LB: loop body
LE: loop exit
PB: predicated region body
PF: predicated region fallthrough
CT: control target
= control target key end

     0   :  { %s1331_s30 = smov 0   ;;  %s1643_s0 = inlined_call_operand.vmem [shape: f32[2,4,256], index: 0, kind: input, shape index: {}]   ;;  %s1644_s1 = inlined_call_operand.vmem [shape: f32[32,4], index: 1, kind: input, shape index: {}]   ;;  %s1645_s2 = inlined_call_operand.vmem [shape: f32[32,1], index: 2, kind: input, shape index: {}]   ;;  %s1646_s3 = inlined_call_operand.vmem [shape: f32[2,32,64], index: 3, kind: input, shape index: {}]   ;;  %s1647_s4 = inlined_call_operand.vmem [shape: f32[64,256], index: 4, kind: input, shape index: {}]   ;;  %s1648_s5 = inlined_call_operand.vmem [shape: f32[32,32], index: 5, kind: input, shape index: {}]   ;;  %s1649_s6 = inlined_call_operand.vmem [shape: f32[32,1], index: 6, kind: input, shape index: {}]   ;;  %s1650_s7 = inlined_call_operand.vmem [shape: f32[256,64], index: 7, kind: input, shape index: {}]   ;;  %s1651_s8 = inlined_call_operand.vmem [shape: bf16[2,32,256], index: 8, kind: output, shape index: {0}]   ;;  %s1652_s9 = inlined_call_operand.vmem [shape: f32[2,32,64], index: 9, kind: output, shape index: {1}]  }
   0x1 LB: > { %s1085_s10 = sadd.s32 4294967295, %s1277_s30   ;;  %p1089_p0 = scmp.ge.s32.totalorder %s1277_s30, 1  ;;  %s1277_s30 = sphi %s1331_s30, %s20_s30  }
   0x2   : > { %p300_p1 = scmp.lt.s32.totalorder %s1277_s30, 3 }
   0x4   : > { %p301_p2 = pnand %p1089_p0, %p300_p1 }
   0x5   : > { %p346_p3 = scmp.lt.s32.totalorder (!%p301_p2), %s1085_s10, 1  ;;  %v1279_v0 = vmov (!%p301_p2), 0.0   ;;  %v371_v1 = vld [vmem:[%s1645_s2] sm:$0xff] (!%p301_p2)  ;;  %v1280_v2 = vmov (!%p301_p2), 0   ;;  %v373_v3 = vld [vmem:[%s1645_s2 + $0x10] sm:$0xff] (!%p301_p2)  ;;  %v372_v4 = vld [vmem:[%s1645_s2 + $0x8] sm:$0xff] (!%p301_p2) }
   0x6   : > { %304 = sbr.rel (%p301_p2) target bundleno = 725 (0x2d5), region = 52  ;;  %479 = vmatprep.mubr.f32.mxu0 (!%p301_p2), %v1279_v0  ;;  %601 = vmatprep.mubr.f32.mxu1 (!%p301_p2), %v1279_v0  ;;  %v374_v5 = vld [vmem:[%s1645_s2 + $0x18] sm:$0xff] (!%p301_p2)  ;;  %v509_v6 = vld [vmem:[%s1647_s4 + $0x8] sm:$0xff] (!%p301_p2)  ;;  %v508_v9 = vld [vmem:[%s1647_s4] sm:$0xff] (!%p301_p2)  ;;  %vm410_vm0 = vcmask (!%p301_p2), 1043456   ;;  %vm397_vm1 = vcmask (!%p301_p2), 31744  }
   0x7   : > { %1252 = vset.pattern.permute.xlu0 (!%p301_p2), %v1280_v2  ;;  %1253 = vset.pattern.permute.xlu1 (!%p301_p2), %v1280_v2  ;;  %v511_v7 = vld [vmem:[%s1647_s4 + $0x18] sm:$0xff] (!%p301_p2)  ;;  %v510_v10 = vld [vmem:[%s1647_s4 + $0x10] sm:$0xff] (!%p301_p2)  ;;  %v513_v13 = vld [vmem:[%s1647_s4 + $0x28] sm:$0xff] (!%p301_p2)  ;;  %vm524_vm2 = vcmask (!%p301_p2), 523264   ;;  %vm654_vm3 = vcmask (!%p301_p2), 261120  }
   0x8   : > { %377 = vperm.xlu0 (!%p301_p2), %1252, %v371_v1   ;;  %387 = vperm.xlu1 (!%p301_p2), %1253, %v373_v3   ;;  %v1170_v8 = vpack.c.bf16 (!%p301_p2), %v511_v7, %v509_v6  ;;  %v1172_v12 = vpack.c.bf16 (!%p301_p2), %v510_v10, %v508_v9  ;;  %v515_v14 = vld [vmem:[%s1647_s4 + $0x38] sm:$0xff] (!%p301_p2)  ;;  %v512_v17 = vld [vmem:[%s1647_s4 + $0x20] sm:$0xff] (!%p301_p2)  ;;  %v514_v18 = vld [vmem:[%s1647_s4 + $0x30] sm:$0xff] (!%p301_p2) }
   0x9   : > { %v1174_v16 = vpack.c.bf16 (!%p301_p2), %v515_v14, %v513_v13  ;;  %v366_v19 = vld [vmem:[%s1644_s1] sm:$0xff] (!%p301_p2)  ;;  %v631_v21 = vld [vmem:[%s1649_s6 + $0x8] sm:$0xff] (!%p301_p2)  ;;  %v1176_v22 = vpack.c.bf16 (!%p301_p2), %v514_v18, %v512_v17  ;;  %v519_v24 = vld [vmem:[%s1647_s4 + $0x58] sm:$0xff] (!%p301_p2) }
   0xa   : > { %v630_v20 = vld [vmem:[%s1649_s6] sm:$0xff] (!%p301_p2)  ;;  %1171 = vmatprep.subr.bf16.mxu1 (!%p301_p2), %v1170_v8  ;;  %v517_v23 = vld [vmem:[%s1647_s4 + $0x48] sm:$0xff] (!%p301_p2)  ;;  %v518_v27 = vld [vmem:[%s1647_s4 + $0x50] sm:$0xff] (!%p301_p2) }
   0xb   : > { %1173 = vmatpush1.bf16.msra.mxu1 (!%p301_p2), %v1172_v12  ;;  %v516_v25 = vld [vmem:[%s1647_s4 + $0x40] sm:$0xff] (!%p301_p2)  ;;  %v1178_v26 = vpack.c.bf16 (!%p301_p2), %v519_v24, %v517_v23  ;;  %v367_v28 = vld [vmem:[%s1644_s1 + $0x8] sm:$0xff] (!%p301_p2)  ;;  %v632_v29 = vld [vmem:[%s1649_s6 + $0x10] sm:$0xff] (!%p301_p2) }
   0xc   : > { %382 = vperm.xlu0 (!%p301_p2), %1252, %v372_v4   ;;  %392 = vperm.xlu1 (!%p301_p2), %1253, %v374_v5   ;;  %v633_v30 = vld [vmem:[%s1649_s6 + $0x18] sm:$0xff] (!%p301_p2)  ;;  %v1180_v31 = vpack.c.bf16 (!%p301_p2), %v518_v27, %v516_v25  ;;  %v368_v32 = vld [vmem:[%s1644_s1 + $0x10] sm:$0xff] (!%p301_p2)  ;;  %v521_v34 = vld [vmem:[%s1647_s4 + $0x68] sm:$0xff] (!%p301_p2) }
   0xd   : > { %s1654_s10 = smov (!%p346_p3, %s1085_s10), 1  ;;  %1175 = vmatprep.subr.bf16.mxu1 %v1174_v16  ;;  %v369_v33 = vld [vmem:[%s1644_s1 + $0x18] sm:$0xff]  ;;  %v520_v37 = vld [vmem:[%s1647_s4 + $0x60] sm:$0xff]  ;;  %v522_v38 = vld [vmem:[%s1647_s4 + $0x70] sm:$0xff] }
   0xe   : > { %s1118_s17 = sshll.u32 %s1654_s10, 3  ;;  %v523_v35 = vld [vmem:[%s1647_s4 + $0x78] sm:$0xff]  ;;  %s1441_s14 = sshll.u32 %s1654_s10, 5  ;;  %v1184_v39 = vpack.c.bf16 %v522_v38, %v520_v37  ;;  %v626_v5 = vld [vmem:[%s1648_s5] sm:$0xff]  ;;  %v627_v6 = vld [vmem:[%s1648_s5 + $0x8] sm:$0xff] }
   0xf   : > { %s350_s26 = scalar_lea.vmem %s1643_s0, %s1118_s17  ;;  %1177 = vmatpush1.bf16.msra.mxu1 %v1176_v22  ;;  %v1182_v36 = vpack.c.bf16 %v523_v35, %v521_v34  ;;  %s355_s17 = scalar_lea.vmem %s1646_s3, %s1441_s14  ;;  %v628_v7 = vld [vmem:[%s1648_s5 + $0x10] sm:$0xff]  ;;  %v629_v8 = vld [vmem:[%s1648_s5 + $0x18] sm:$0xff]  ;;  %v880_v9 = vld [vmem:[%s1650_s7 + $0x80] sm:$0xff] }
  0x10   : > { %v370_v11 = vld [vmem:[%s350_s26] sm:$0xff]  ;;  %636 = vperm.xlu0 %1252, %v630_v20   ;;  %641 = vperm.xlu1 %1253, %v631_v21   ;;  %v505_v41 = vld [vmem:[%s355_s17 + $0x8] sm:$0xff]  ;;  %v506_v42 = vld [vmem:[%s355_s17 + $0x10] sm:$0xff]  ;;  %s1620_s16 = scalar_lea.vmem %s1651_s8, %s1441_s14  ;;  %s365_s18 = scalar_lea.vmem %s1652_s9, %s1441_s14 }
  0x11   : > { %v396_v15 = vcombine.high %v370_v11, %v370_v11  ;;  %1179 = vmatprep.subr.bf16.mxu1 %v1178_v26  ;;  %v504_v40 = vld [vmem:[%s355_s17] sm:$0xff]  ;;  %v507_v43 = vld [vmem:[%s355_s17 + $0x18] sm:$0xff]  ;;  %v881_v10 = vld [vmem:[%s1650_s7 + $0x88] sm:$0xff] }
  0x12   : > { %v864_v12 = vld [vmem:[%s1650_s7] sm:$0xff]  ;;  %v882_v14 = vld [vmem:[%s1650_s7 + $0x90] sm:$0xff]  ;;  %v867_v18 = vld [vmem:[%s1650_s7 + $0x18] sm:$0xff] }
  0x13   : > { %1098 = vmatprep.subr.msk.mxu0 %vm410_vm0, %v396_v15  ;;  %1181 = vmatpush1.bf16.msra.mxu1 %v1180_v31  ;;  %v883_v15 = vld [vmem:[%s1650_s7 + $0x98] sm:$0xff]  ;;  %v866_v17 = vld [vmem:[%s1650_s7 + $0x10] sm:$0xff]  ;;  %v884_v20 = vld [vmem:[%s1650_s7 + $0xa0] sm:$0xff] }
  0x14   : > { %1099 = vmatpush1.msk.msra.mxu0 %vm410_vm0, %v370_v11  ;;  %646 = vperm.xlu0 %1252, %v632_v29   ;;  %v1194_v11 = vpack.c.bf16 %v881_v10, %v880_v9  ;;  %v1198_v16 = vpack.c.bf16 %v883_v15, %v882_v14  ;;  %v885_v21 = vld [vmem:[%s1650_s7 + $0xa8] sm:$0xff]  ;;  %v868_v23 = vld [vmem:[%s1650_s7 + $0x20] sm:$0xff]  ;;  %v886_v26 = vld [vmem:[%s1650_s7 + $0xb0] sm:$0xff] }
  0x15   : > { %1100 = vmatmul.mubr.msk.f32.vlgmr.msra.gmra.mrb[0].mxu0 %vm397_vm1, %v366_v19  ;;  %651 = vperm.xlu1 %1253, %v633_v30   ;;  %v1200_v19 = vpack.c.bf16 %v867_v18, %v866_v17  ;;  %v1202_v22 = vpack.c.bf16 %v885_v21, %v884_v20  ;;  %v869_v24 = vld [vmem:[%s1650_s7 + $0x28] sm:$0xff]  ;;  %v887_v27 = vld [vmem:[%s1650_s7 + $0xb8] sm:$0xff]  ;;  %v870_v29 = vld [vmem:[%s1650_s7 + $0x30] sm:$0xff] }
  0x16   : > { %485 = vmatprep.mubr.f32.mxu0 %v1279_v0  ;;  %1183 = vmatprep.subr.bf16.mxu1 %v1182_v36  ;;  %v1204_v25 = vpack.c.bf16 %v869_v24, %v868_v23  ;;  %v871_v30 = vld [vmem:[%s1650_s7 + $0x38] sm:$0xff]  ;;  %v872_v35 = vld [vmem:[%s1650_s7 + $0x40] sm:$0xff]  ;;  %v873_v36 = vld [vmem:[%s1650_s7 + $0x48] sm:$0xff] }
  0x17   : > { %1185 = vmatpush1.bf16.msra.mxu1 %v1184_v39  ;;  %1195 = vmatprep.subr.bf16.mxu0 %v1194_v11  ;;  %v1208_v31 = vpack.c.bf16 %v871_v30, %v870_v29  ;;  %v1212_v37 = vpack.c.bf16 %v873_v36, %v872_v35  ;;  %v890_v38 = vld [vmem:[%s1650_s7 + $0xd0] sm:$0xff]  ;;  %v891_v39 = vld [vmem:[%s1650_s7 + $0xd8] sm:$0xff] }
  0x19   : > { %1101 = vmatmul.mubr.msk.f32.gmra.mrb[2].mxu0 %vm397_vm1, %v367_v28  ;;  %v1206_v28 = vpack.c.bf16 %v887_v27, %v886_v26 }
  0x1a   : > { %491 = vmatprep.mubr.f32.mxu0 %v1279_v0  ;;  %1104 = vmatmul.mubr.msk.f32.vlgmr.msra.gmra.mrb[0].mxu1 %vm524_vm2, %v504_v40  ;;  %v1214_v40 = vpack.c.bf16 %v891_v39, %v890_v38 }
  0x1b   : > { %607 = vmatprep.mubr.f32.mxu1 %v1279_v0 }
  0x1d   : > { %1102 = vmatmul.mubr.msk.f32.gmra.mrb[4].mxu0 %vm397_vm1, %v368_v32  ;;  %v888_v32 = vld [vmem:[%s1650_s7 + $0xc0] sm:$0xff] }
  0x1e   : > { %497 = vmatprep.mubr.f32.mxu0 %v1279_v0  ;;  %1105 = vmatmul.mubr.msk.f32.gmra.mrb[2].mxu1 %vm524_vm2, %v505_v41  ;;  %v874_v41 = vld [vmem:[%s1650_s7 + $0x50] sm:$0xff] }
  0x1f   : > { %613 = vmatprep.mubr.f32.mxu1 %v1279_v0 }
  0x21   : > { %1103 = vmatmul.mubr.msk.f32.gmra.mrb[6].mxu0 %vm397_vm1, %v369_v33  ;;  %v889_v33 = vld [vmem:[%s1650_s7 + $0xc8] sm:$0xff] }
  0x22   : > { %1106 = vmatmul.mubr.msk.f32.gmra.mrb[4].mxu1 %vm524_vm2, %v506_v42  ;;  %v1210_v34 = vpack.c.bf16 %v889_v33, %v888_v32  ;;  %v875_v42 = vld [vmem:[%s1650_s7 + $0x58] sm:$0xff] }
  0x23   : > { %619 = vmatprep.mubr.f32.mxu1 %v1279_v0 }
  0x26   : > { %1107 = vmatmul.mubr.msk.f32.gmra.mrb[6].mxu1 %vm524_vm2, %v507_v43  ;;  %v1216_v43 = vpack.c.bf16 %v875_v42, %v874_v41 }
  0x27   : > { %731 = vmatprep.mubr.f32.mxu1 %v1279_v0 }
  0x87   : > { %v378_v44 = vpop.permute.xlu0 %377  ;;  %v388_v52 = vpop.permute.xlu1 %387 }
  0x8b   : > { %v383_v47 = vpop.permute.xlu0 %382  ;;  %v393_v59 = vpop.permute.xlu1 %392 }
  0xe8   : > { %v481_v45 = vpop.f32.mrb[0].mxu0 }
  0xe9   : > { %v483_v46 = vpop.f32.mrb[1].mxu0  ;;  %v482_v49 = vadd.f32 %v481_v45, %v378_v44  ;;  %v893_v45 = vld [vmem:[%s1650_s7 + $0xe8] sm:$0xff] }
  0xea   : > { %v484_v53 = vadd.f32 %v483_v46, %v378_v44  ;;  %v892_v44 = vld [vmem:[%s1650_s7 + $0xe0] sm:$0xff] }
  0xeb   : > { %v1218_v46 = vpack.c.bf16 %v893_v45, %v892_v44 }
  0xec   : > { %v487_v48 = vpop.f32.mrb[2].mxu0 }
  0xed   : > { %v488_v50 = vadd.f32 %v487_v48, %v383_v47  ;;  %v489_v51 = vpop.f32.mrb[3].mxu0  ;;  %v877_v48 = vld [vmem:[%s1650_s7 + $0x68] sm:$0xff] }
  0xee   : > { %v490_v54 = vadd.f32 %v489_v51, %v383_v47  ;;  %v876_v47 = vld [vmem:[%s1650_s7 + $0x60] sm:$0xff]  ;;  %v895_v51 = vld [vmem:[%s1650_s7 + $0xf8] sm:$0xff] }
  0xef   : > { %v1188_v55 = vpack.c.bf16 %v488_v50, %v482_v49  ;;  %v1220_v49 = vpack.c.bf16 %v877_v48, %v876_v47  ;;  %v894_v50 = vld [vmem:[%s1650_s7 + $0xf0] sm:$0xff] }
  0xf0   : > { %v1186_v56 = vpack.c.bf16 %v490_v54, %v484_v53  ;;  %v493_v57 = vpop.f32.mrb[4].mxu0  ;;  %v1222_v53 = vpack.c.bf16 %v895_v51, %v894_v50  ;;  %v879_v54 = vld [vmem:[%s1650_s7 + $0x78] sm:$0xff] }
  0xf1   : > { %v495_v58 = vpop.f32.mrb[5].mxu0  ;;  %v494_v61 = vadd.f32 %v493_v57, %v388_v52 }
  0xf2   : > { %1187 = vmatprep.subr.bf16.mxu1 %v1186_v56  ;;  %v496_v1 = vadd.f32 %v495_v58, %v388_v52  ;;  %v878_v52 = vld [vmem:[%s1650_s7 + $0x70] sm:$0xff]  ;;  %v637_v56 = vpop.permute.xlu0 %636 }
  0xf3   : > { %1189 = vmatpush1.bf16.msra.mxu1 %v1188_v55  ;;  %v1224_v55 = vpack.c.bf16 %v879_v54, %v878_v52 }
  0xf4   : > { %v499_v60 = vpop.f32.mrb[6].mxu0 }
  0xf5   : > { %v500_v62 = vadd.f32 %v499_v60, %v393_v59  ;;  %v501_v63 = vpop.f32.mrb[7].mxu0 }
  0xf6   : > { %v502_v2 = vadd.f32 %v501_v63, %v393_v59  ;;  %v647_v9 = vpop.permute.xlu0 %646 }
  0xf7   : > { %v1192_v3 = vpack.c.bf16 %v500_v62, %v494_v61  ;;  %v642_v62 = vpop.permute.xlu1 %641 }
  0xf8   : > { %v1190_v4 = vpack.c.bf16 %v502_v2, %v496_v1 }
  0xfa   : > { %1191 = vmatprep.subr.bf16.mxu1 %v1190_v4 }
  0xfb   : > { %1193 = vmatpush1.bf16.msra.mxu1 %v1192_v3 }
  0xfe   : > { %1108 = vmatmul.mubr.msk.f32.vlgmr.msra.gmra.mrb[0].mxu1 %vm654_vm3, %v626_v5 }
  0xff   : > { %737 = vmatprep.mubr.f32.mxu1 %v1279_v0 }
 0x102   : > { %1109 = vmatmul.mubr.msk.f32.gmra.mrb[2].mxu1 %vm654_vm3, %v627_v6 }
 0x103   : > { %743 = vmatprep.mubr.f32.mxu1 %v1279_v0 }
 0x106   : > { %1110 = vmatmul.mubr.msk.f32.gmra.mrb[4].mxu1 %vm654_vm3, %v628_v7 }
 0x107   : > { %749 = vmatprep.mubr.f32.mxu1 %v1279_v0  ;;  %v865_v0 = vld [vmem:[%s1650_s7 + $0x8] sm:$0xff] }
 0x108   : > { %v1196_v13 = vpack.c.bf16 %v865_v0, %v864_v12 }
 0x10a   : > { %1111 = vmatmul.mubr.msk.f32.gmra.mrb[6].mxu1 %vm654_vm3, %v629_v8  ;;  %1197 = vmatpush3.bf16.msra.mxu0 %v1196_v13 }
 0x10b   : > { %1199 = vmatprep.subr.bf16.mxu0 %v1198_v16 }
 0x10e   : > { %1201 = vmatpush3.bf16.msra.mxu0 %v1200_v19 }
 0x10f   : > { %1203 = vmatprep.subr.bf16.mxu0 %v1202_v22  ;;  %v652_v22 = vpop.permute.xlu1 %651 }
 0x112   : > { %1205 = vmatpush3.bf16.msra.mxu0 %v1204_v25 }
 0x113   : > { %1207 = vmatprep.subr.bf16.mxu0 %v1206_v28 }
 0x116   : > { %1209 = vmatpush3.bf16.msra.mxu0 %v1208_v31 }
 0x117   : > { %1211 = vmatprep.subr.bf16.mxu0 %v1210_v34 }
 0x11a   : > { %1213 = vmatpush3.bf16.msra.mxu0 %v1212_v37 }
 0x11b   : > { %1215 = vmatprep.subr.bf16.mxu0 %v1214_v40 }
 0x11e   : > { %1217 = vmatpush3.bf16.msra.mxu0 %v1216_v43 }
 0x11f   : > { %1219 = vmatprep.subr.bf16.mxu0 %v1218_v46 }
 0x122   : > { %1221 = vmatpush3.bf16.msra.mxu0 %v1220_v49 }
 0x123   : > { %1223 = vmatprep.subr.bf16.mxu0 %v1222_v53 }
 0x126   : > { %1225 = vmatpush3.bf16.msra.mxu0 %v1224_v55 }
 0x1d1   : > { %v733_v57 = vpop.f32.mrb[0].mxu1 }
 0x1d2   : > { %v1566_v58 = vadd.f32 %v733_v57, %v637_v56  ;;  %v735_v59 = vpop.f32.mrb[1].mxu1 }
 0x1d3   : > { %v1568_v60 = vadd.f32 %v735_v59, %v637_v56 }
 0x1d4   : > { %v764_v61 = vmul.f32 %v1566_v58, %v1566_v58 }
 0x1d5   : > { %v765_v63 = vmul.f32 %v1568_v60, %v1568_v60  ;;  %v739_v1 = vpop.f32.mrb[2].mxu1 }
 0x1d6   : > { %v772_v2 = vmul.f32 %v764_v61, %v1566_v58  ;;  %v1575_v3 = vadd.f32 %v739_v1, %v642_v62  ;;  %v741_v4 = vpop.f32.mrb[3].mxu1 }
 0x1d7   : > { %v773_v5 = vmul.f32 %v765_v63, %v1568_v60  ;;  %v1578_v6 = vadd.f32 %v741_v4, %v642_v62 }
 0x1d8   : > { %v780_v7 = vmul.f32 0.044715, %v772_v2  ;;  %v766_v8 = vmul.f32 %v1575_v3, %v1575_v3 }
 0x1d9   : > { %v781_v10 = vmul.f32 0.044715, %v773_v5  ;;  %v767_v11 = vmul.f32 %v1578_v6, %v1578_v6  ;;  %v745_v12 = vpop.f32.mrb[4].mxu1 }
 0x1da   : > { %v788_v0 = vadd.f32 %v780_v7, %v1566_v58  ;;  %v774_v13 = vmul.f32 %v766_v8, %v1575_v3  ;;  %v1586_v14 = vadd.f32 %v745_v12, %v647_v9  ;;  %v747_v15 = vpop.f32.mrb[5].mxu1 }
 0x1db   : > { %v789_v16 = vadd.f32 %v781_v10, %v1568_v60  ;;  %v775_v17 = vmul.f32 %v767_v11, %v1578_v6  ;;  %v1590_v18 = vadd.f32 %v747_v15, %v647_v9 }
 0x1dc   : > { %v796_v19 = vmul.f32 0.7978846, %v788_v0  ;;  %v782_v20 = vmul.f32 0.044715, %v774_v13  ;;  %v768_v21 = vmul.f32 %v1586_v14, %v1586_v14 }
 0x1dd   : > { %v797_v23 = vmul.f32 0.7978846, %v789_v16  ;;  %v783_v24 = vmul.f32 0.044715, %v775_v17  ;;  %v769_v25 = vmul.f32 %v1590_v18, %v1590_v18  ;;  %v751_v26 = vpop.f32.mrb[6].mxu1 }
 0x1de   : > { %1255 = vtanh.f32 %v796_v19  ;;  %v790_v27 = vadd.f32 %v782_v20, %v1575_v3  ;;  %v776_v28 = vmul.f32 %v768_v21, %v1586_v14  ;;  %v1598_v29 = vadd.f32 %v751_v26, %v652_v22  ;;  %v753_v30 = vpop.f32.mrb[7].mxu1 }
 0x1df   : > { %v791_v31 = vadd.f32 %v783_v24, %v1578_v6  ;;  %v777_v32 = vmul.f32 %v769_v25, %v1590_v18  ;;  %v1602_v33 = vadd.f32 %v753_v30, %v652_v22  ;;  %1257 = vtanh.f32 %v797_v23 }
 0x1e0   : > { %v798_v34 = vmul.f32 0.7978846, %v790_v27  ;;  %v784_v35 = vmul.f32 0.044715, %v776_v28  ;;  %v770_v36 = vmul.f32 %v1598_v29, %v1598_v29 }
 0x1e1   : > { %v799_v37 = vmul.f32 0.7978846, %v791_v31  ;;  %v785_v38 = vmul.f32 0.044715, %v777_v32  ;;  %v771_v39 = vmul.f32 %v1602_v33, %v1602_v33 }
 0x1e2   : > { %v792_v40 = vadd.f32 %v784_v35, %v1586_v14  ;;  %v778_v41 = vmul.f32 %v770_v36, %v1598_v29  ;;  %1259 = vtanh.f32 %v798_v34 }
 0x1e3   : > { %v793_v42 = vadd.f32 %v785_v38, %v1590_v18  ;;  %v779_v43 = vmul.f32 %v771_v39, %v1602_v33  ;;  %1261 = vtanh.f32 %v799_v37 }
 0x1e4   : > { %v800_v44 = vmul.f32 0.7978846, %v792_v40  ;;  %v786_v45 = vmul.f32 0.044715, %v778_v41 }
 0x1e5   : > { %v801_v46 = vmul.f32 0.7978846, %v793_v42  ;;  %v787_v47 = vmul.f32 0.044715, %v779_v43 }
 0x1e6   : > { %v794_v48 = vadd.f32 %v786_v45, %v1598_v29  ;;  %1263 = vtanh.f32 %v800_v44 }
 0x1e7   : > { %v795_v49 = vadd.f32 %v787_v47, %v1602_v33  ;;  %1265 = vtanh.f32 %v801_v46 }
 0x1e8   : > { %v1256_v50 = vpop.eup %1255  ;;  %v802_v51 = vmul.f32 0.7978846, %v794_v48 }
 0x1e9   : > { %v1258_v52 = vpop.eup %1257  ;;  %v803_v53 = vmul.f32 0.7978846, %v795_v49  ;;  %v812_v54 = vadd.f32 1.0, %v1256_v50 }
 0x1ea   : > { %v813_v55 = vadd.f32 1.0, %v1258_v52  ;;  %1267 = vtanh.f32 %v802_v51 }
 0x1eb   : > { %v820_v56 = vmul.f32 0.5, %v812_v54  ;;  %1269 = vtanh.f32 %v803_v53 }
 0x1ec   : > { %v1260_v57 = vpop.eup %1259  ;;  %v821_v59 = vmul.f32 0.5, %v813_v55 }
 0x1ed   : > { %v1262_v61 = vpop.eup %1261  ;;  %v828_v62 = vmul.f32 %v820_v56, %v1566_v58  ;;  %v814_v63 = vadd.f32 1.0, %v1260_v57 }
 0x1ee   : > { %v829_v1 = vmul.f32 %v821_v59, %v1568_v60  ;;  %v815_v2 = vadd.f32 1.0, %v1262_v61 }
 0x1ef   : > { %v822_v4 = vmul.f32 0.5, %v814_v63 }
 0x1f0   : > { %v1264_v5 = vpop.eup %1263  ;;  %v1122_v7 = vpack.c.bf16 %v829_v1, %v828_v62  ;;  %960 = vmatprep.mubr.f32.mxu0 %v829_v1  ;;  %v823_v8 = vmul.f32 0.5, %v815_v2 }
 0x1f1   : > { %v1266_v9 = vpop.eup %1265  ;;  %961 = vmatmul.mubr.f32.vlgmr.msra.gmra.mrb[8].mxu0 %v828_v62  ;;  %v830_v58 = vmul.f32 %v822_v4, %v1575_v3  ;;  %v816_v10 = vadd.f32 1.0, %v1264_v5 }
 0x1f2   : > { %860 = vst [vmem:[%s1620_s16] sm:$0xff] %v1122_v7  ;;  %v831_v60 = vmul.f32 %v823_v8, %v1578_v6  ;;  %v817_v11 = vadd.f32 1.0, %v1266_v9 }
 0x1f3   : > { %v824_v12 = vmul.f32 0.5, %v816_v10 }
 0x1f4   : > { %v1268_v0 = vpop.eup %1267  ;;  %965 = vmatprep.mubr.f32.mxu0 %v831_v60  ;;  %v1123_v13 = vpack.c.bf16 %v831_v60, %v830_v58  ;;  %v825_v15 = vmul.f32 0.5, %v817_v11 }
 0x1f5   : > { %v1270_v16 = vpop.eup %1269  ;;  %966 = vmatmul.mubr.f32.gmra.mrb[10].mxu0 %v830_v58  ;;  %v832_v17 = vmul.f32 %v824_v12, %v1586_v14  ;;  %v818_v19 = vadd.f32 1.0, %v1268_v0 }
 0x1f6   : > { %861 = vst [vmem:[%s1620_s16 + $0x8] sm:$0xff] %v1123_v13  ;;  %v833_v3 = vmul.f32 %v825_v15, %v1590_v18  ;;  %v819_v20 = vadd.f32 1.0, %v1270_v16 }
 0x1f7   : > { %v826_v21 = vmul.f32 0.5, %v818_v19 }
 0x1f8   : > { %970 = vmatprep.mubr.f32.mxu0 %v833_v3  ;;  %v1124_v6 = vpack.c.bf16 %v833_v3, %v832_v17  ;;  %v827_v22 = vmul.f32 0.5, %v819_v20 }
 0x1f9   : > { %971 = vmatmul.mubr.f32.gmra.mrb[12].mxu0 %v832_v17  ;;  %v834_v23 = vmul.f32 %v826_v21, %v1598_v29 }
 0x1fa   : > { %862 = vst [vmem:[%s1620_s16 + $0x10] sm:$0xff] %v1124_v6  ;;  %v835_v24 = vmul.f32 %v827_v22, %v1602_v33 }
 0x1fc   : > { %975 = vmatprep.mubr.f32.mxu0 %v835_v24  ;;  %v1125_v25 = vpack.c.bf16 %v835_v24, %v834_v23 }
 0x1fd   : > { %976 = vmatmul.mubr.f32.gmra.mrb[14].mxu0 %v834_v23 }
 0x1fe   : > { %863 = vst [vmem:[%s1620_s16 + $0x18] sm:$0xff] %v1125_v25 }
 0x2c4   : > { %v1158_v14 = vpop.f32.mrb[8].mxu0 }
 0x2c5   : > { %v1159_v18 = vpop.f32.mrb[9].mxu0 }
 0x2c6   : > { %v1160_v26 = vadd.f32 %v1159_v18, %v1158_v14 }
 0x2c8   : > { %981 = vst.msk [vmem:[%s365_s18] sm:$0xff] %vm524_vm2, %v1160_v26  ;;  %v1161_v27 = vpop.f32.mrb[10].mxu0 }
 0x2c9   : > { %v1162_v28 = vpop.f32.mrb[11].mxu0 }
 0x2ca   : > { %v1163_v30 = vadd.f32 %v1162_v28, %v1161_v27 }
 0x2cc   : > { %982 = vst.msk [vmem:[%s365_s18 + $0x8] sm:$0xff] %vm524_vm2, %v1163_v30  ;;  %v1164_v29 = vpop.f32.mrb[12].mxu0 }
 0x2cd   : > { %v1165_v31 = vpop.f32.mrb[13].mxu0 }
 0x2ce   : > { %v1166_v32 = vadd.f32 %v1165_v31, %v1164_v29 }
 0x2d0   : > { %983 = vst.msk [vmem:[%s365_s18 + $0x10] sm:$0xff] %vm524_vm2, %v1166_v32  ;;  %v1167_v33 = vpop.f32.mrb[14].mxu0 }
 0x2d1   : > { %v1168_v34 = vpop.f32.mrb[15].mxu0 }
 0x2d2   : > { %v1169_v35 = vadd.f32 %v1168_v34, %v1167_v33 }
 0x2d4   : > { %984 = vst.msk [vmem:[%s365_s18 + $0x18] sm:$0xff] %vm524_vm2, %v1169_v35 }
 0x2d5 PF: > { %s20_s30 = sadd.s32 1, %s1277_s30  }
 0x2d6   : > { %p17_p4 = scmp.ge.s32.totalorder %s20_s30, 4  }
 0x2d8   :  { %19 = sbr.rel (!%p17_p4) target bundleno = 1 (0x1), region = 97 }

// kernel: recursive_fno_forward.17
= control target key start
LH: loop header
LB: loop body
LE: loop exit
PB: predicated region body
PF: predicated region fallthrough
CT: control target
= control target key end

     0   :  { %s1144_s24 = smov 0   ;;  %s1425_s0 = inlined_call_operand.vmem [shape: bf16[2,32,256], index: 0, kind: input, shape index: {}]   ;;  %s1426_s1 = inlined_call_operand.vmem [shape: f32[2,32,64], index: 1, kind: input, shape index: {}]   ;;  %s1427_s2 = inlined_call_operand.vmem [shape: f32[64,256], index: 2, kind: input, shape index: {}]   ;;  %s1428_s3 = inlined_call_operand.vmem [shape: f32[32,32], index: 3, kind: input, shape index: {}]   ;;  %s1429_s4 = inlined_call_operand.vmem [shape: f32[32,1], index: 4, kind: input, shape index: {}]   ;;  %s1430_s5 = inlined_call_operand.vmem [shape: f32[256,64], index: 5, kind: input, shape index: {}]   ;;  %s1431_s6 = inlined_call_operand.vmem [shape: bf16[2,32,256], index: 6, kind: output, shape index: {0}]   ;;  %s1432_s7 = inlined_call_operand.vmem [shape: f32[2,32,64], index: 7, kind: output, shape index: {1}]  }
   0x1 LB: > { %s905_s25 = sadd.s32 4294967295, %s1100_s24   ;;  %p909_p0 = scmp.ge.s32.totalorder %s1100_s24, 1  ;;  %s1100_s24 = sphi %s1144_s24, %s18_s24  }
   0x2   : > { %p250_p1 = scmp.lt.s32.totalorder %s1100_s24, 3 }
   0x4   : > { %p251_p2 = pnand %p909_p0, %p250_p1 }
   0x5   : > { %v317_v0 = vld [vmem:[%s1427_s2 + $0x8] sm:$0xff] (!%p251_p2)  ;;  %v319_v1 = vld [vmem:[%s1427_s2 + $0x18] sm:$0xff] (!%p251_p2)  ;;  %v316_v2 = vld [vmem:[%s1427_s2] sm:$0xff] (!%p251_p2)  ;;  %p292_p3 = scmp.lt.s32.totalorder (!%p251_p2), %s905_s25, 1  ;;  %v1102_v7 = vmov (!%p251_p2), 0.0   ;;  %v1103_v13 = vmov (!%p251_p2), 0  }
   0x6   : > { %254 = sbr.rel (%p251_p2) target bundleno = 511 (0x1ff), region = 44  ;;  %v984_v3 = vpack.c.bf16 (!%p251_p2), %v319_v1, %v317_v0  ;;  %v318_v4 = vld [vmem:[%s1427_s2 + $0x10] sm:$0xff] (!%p251_p2)  ;;  %v321_v5 = vld [vmem:[%s1427_s2 + $0x28] sm:$0xff] (!%p251_p2)  ;;  %v323_v6 = vld [vmem:[%s1427_s2 + $0x38] sm:$0xff] (!%p251_p2)  ;;  %409 = vmatprep.mubr.f32.mxu0 (!%p251_p2), %v1102_v7  ;;  %1070 = vset.pattern.permute.xlu0 (!%p251_p2), %v1103_v13  ;;  %vm332_vm0 = vcmask (!%p251_p2), 523264   ;;  %vm474_vm1 = vcmask (!%p251_p2), 261120  }
   0x7   : > { %v986_v8 = vpack.c.bf16 (!%p251_p2), %v318_v4, %v316_v2  ;;  %v988_v9 = vpack.c.bf16 (!%p251_p2), %v323_v6, %v321_v5  ;;  %v320_v10 = vld [vmem:[%s1427_s2 + $0x20] sm:$0xff] (!%p251_p2)  ;;  %v322_v11 = vld [vmem:[%s1427_s2 + $0x30] sm:$0xff] (!%p251_p2)  ;;  %v325_v12 = vld [vmem:[%s1427_s2 + $0x48] sm:$0xff] (!%p251_p2)  ;;  %1071 = vset.pattern.permute.xlu1 (!%p251_p2), %v1103_v13 }
   0x8   : > { %985 = vmatprep.subr.bf16.mxu0 (!%p251_p2), %v984_v3  ;;  %v327_v14 = vld [vmem:[%s1427_s2 + $0x58] sm:$0xff] (!%p251_p2)  ;;  %v990_v15 = vpack.c.bf16 (!%p251_p2), %v322_v11, %v320_v10  ;;  %v324_v17 = vld [vmem:[%s1427_s2 + $0x40] sm:$0xff] (!%p251_p2)  ;;  %v326_v18 = vld [vmem:[%s1427_s2 + $0x50] sm:$0xff] (!%p251_p2) }
   0x9   : > { %987 = vmatpush1.bf16.msra.mxu0 (!%p251_p2), %v986_v8  ;;  %v992_v16 = vpack.c.bf16 (!%p251_p2), %v327_v14, %v325_v12  ;;  %v329_v19 = vld [vmem:[%s1427_s2 + $0x68] sm:$0xff] (!%p251_p2)  ;;  %v331_v20 = vld [vmem:[%s1427_s2 + $0x78] sm:$0xff] (!%p251_p2)  ;;  %v994_v21 = vpack.c.bf16 (!%p251_p2), %v326_v18, %v324_v17  ;;  %v328_v23 = vld [vmem:[%s1427_s2 + $0x60] sm:$0xff] (!%p251_p2) }
   0xa   : > { %989 = vmatprep.subr.bf16.mxu0 (!%p251_p2), %v988_v9  ;;  %v996_v22 = vpack.c.bf16 (!%p251_p2), %v331_v20, %v329_v19  ;;  %v330_v24 = vld [vmem:[%s1427_s2 + $0x70] sm:$0xff] (!%p251_p2)  ;;  %v450_v25 = vld [vmem:[%s1429_s4] sm:$0xff] (!%p251_p2)  ;;  %v451_v28 = vld [vmem:[%s1429_s4 + $0x8] sm:$0xff] (!%p251_p2) }
   0xb   : > { %456 = vperm.xlu0 (!%p251_p2), %1070, %v450_v25   ;;  %v452_v26 = vld [vmem:[%s1429_s4 + $0x10] sm:$0xff] (!%p251_p2)  ;;  %v998_v27 = vpack.c.bf16 (!%p251_p2), %v330_v24, %v328_v23  ;;  %v453_v30 = vld [vmem:[%s1429_s4 + $0x18] sm:$0xff] (!%p251_p2)  ;;  %v446_v38 = vld [vmem:[%s1428_s3] sm:$0xff] (!%p251_p2) }
   0xc   : > { %466 = vperm.xlu1 (!%p251_p2), %1071, %v452_v26   ;;  %v447_v39 = vld [vmem:[%s1428_s3 + $0x8] sm:$0xff] (!%p251_p2)  ;;  %v448_v40 = vld [vmem:[%s1428_s3 + $0x10] sm:$0xff] (!%p251_p2)  ;;  %v449_v41 = vld [vmem:[%s1428_s3 + $0x18] sm:$0xff] (!%p251_p2) }
   0xd   : > { %s1434_s25 = smov (!%p292_p3, %s905_s25), 1  ;;  %991 = vmatpush1.bf16.msra.mxu0 %v990_v15  ;;  %v700_v42 = vld [vmem:[%s1430_s5 + $0x80] sm:$0xff]  ;;  %v701_v43 = vld [vmem:[%s1430_s5 + $0x88] sm:$0xff]  ;;  %v702_v48 = vld [vmem:[%s1430_s5 + $0x90] sm:$0xff] }
   0xe   : > { %s1183_s23 = sshll.u32 %s1434_s25, 5  ;;  %993 = vmatprep.subr.bf16.mxu0 %v992_v16  ;;  %v1008_v44 = vpack.c.bf16 %v701_v43, %v700_v42  ;;  %v684_v45 = vld [vmem:[%s1430_s5] sm:$0xff]  ;;  %v685_v46 = vld [vmem:[%s1430_s5 + $0x8] sm:$0xff]  ;;  %v703_v49 = vld [vmem:[%s1430_s5 + $0x98] sm:$0xff] }
   0xf   : > { %s1198_s25 = scalar_lea.vmem %s1425_s0, %s1183_s23  ;;  %s301_s28 = scalar_lea.vmem %s1426_s1, %s1183_s23  ;;  %461 = vperm.xlu0 %1070, %v451_v28   ;;  %v1010_v47 = vpack.c.bf16 %v685_v46, %v684_v45  ;;  %v1012_v50 = vpack.c.bf16 %v703_v49, %v702_v48  ;;  %v686_v51 = vld [vmem:[%s1430_s5 + $0x10] sm:$0xff]  ;;  %v687_v52 = vld [vmem:[%s1430_s5 + $0x18] sm:$0xff]  ;;  %v704_v54 = vld [vmem:[%s1430_s5 + $0xa0] sm:$0xff] }
  0x10   : > { %v1072_v29 = vld [vmem:[%s1198_s25 + $0x4] ss:$8 sps:$4 sm:$0xff]   ;;  %v1074_v32 = vld [vmem:[%s1198_s25] ss:$8 sps:$4 sm:$0xff]   ;;  %471 = vperm.xlu1 %1071, %v453_v30   ;;  %v1075_v33 = vld [vmem:[%s1198_s25 + $0x14] ss:$8 sps:$4 sm:$0xff]   ;;  %1009 = vmatprep.subr.bf16.mxu1 %v1008_v44  ;;  %v1014_v53 = vpack.c.bf16 %v687_v52, %v686_v51  ;;  %s1402_s18 = scalar_lea.vmem %s1431_s6, %s1183_s23  ;;  %s311_s21 = scalar_lea.vmem %s1432_s7, %s1183_s23 }
  0x11   : > { %995 = vmatpush1.bf16.msra.mxu0 %v994_v21  ;;  %v312_v31 = vld [vmem:[%s301_s28] sm:$0xff]  ;;  %v313_v34 = vld [vmem:[%s301_s28 + $0x8] sm:$0xff]  ;;  %v1077_v35 = vld [vmem:[%s1198_s25 + $0x10] ss:$8 sps:$4 sm:$0xff]   ;;  %1011 = vmatpush3.bf16.msra.mxu1 %v1010_v47 }
  0x12   : > { %997 = vmatprep.subr.bf16.mxu0 %v996_v22  ;;  %v314_v36 = vld [vmem:[%s301_s28 + $0x10] sm:$0xff]  ;;  %v315_v37 = vld [vmem:[%s301_s28 + $0x18] sm:$0xff]  ;;  %1013 = vmatprep.subr.bf16.mxu1 %v1012_v50  ;;  %v705_v55 = vld [vmem:[%s1430_s5 + $0xa8] sm:$0xff] }
  0x13   : > { %v1016_v56 = vpack.c.bf16 %v705_v55, %v704_v54  ;;  %v688_v57 = vld [vmem:[%s1430_s5 + $0x20] sm:$0xff]  ;;  %v689_v58 = vld [vmem:[%s1430_s5 + $0x28] sm:$0xff]  ;;  %v706_v60 = vld [vmem:[%s1430_s5 + $0xb0] sm:$0xff] }
  0x14   : > { %v1018_v59 = vpack.c.bf16 %v689_v58, %v688_v57  ;;  %v707_v61 = vld [vmem:[%s1430_s5 + $0xb8] sm:$0xff]  ;;  %v690_v63 = vld [vmem:[%s1430_s5 + $0x30] sm:$0xff]  ;;  %v708_v2 = vld [vmem:[%s1430_s5 + $0xc0] sm:$0xff] }
  0x15   : > { %999 = vmatpush1.bf16.msra.mxu0 %v998_v27  ;;  %1015 = vmatpush3.bf16.msra.mxu1 %v1014_v53  ;;  %v1020_v62 = vpack.c.bf16 %v707_v61, %v706_v60  ;;  %v691_v0 = vld [vmem:[%s1430_s5 + $0x38] sm:$0xff]  ;;  %v709_v3 = vld [vmem:[%s1430_s5 + $0xc8] sm:$0xff]  ;;  %v692_v5 = vld [vmem:[%s1430_s5 + $0x40] sm:$0xff] }
  0x16   : > { %1001 = vmatprep.subr.bf16.mxu0 %v1072_v29  ;;  %1017 = vmatprep.subr.bf16.mxu1 %v1016_v56  ;;  %v1022_v1 = vpack.c.bf16 %v691_v0, %v690_v63  ;;  %v1024_v4 = vpack.c.bf16 %v709_v3, %v708_v2  ;;  %v693_v6 = vld [vmem:[%s1430_s5 + $0x48] sm:$0xff]  ;;  %v710_v8 = vld [vmem:[%s1430_s5 + $0xd0] sm:$0xff]  ;;  %v711_v9 = vld [vmem:[%s1430_s5 + $0xd8] sm:$0xff] }
  0x17   : > { %v1028_v10 = vpack.c.bf16 %v711_v9, %v710_v8  ;;  %v694_v11 = vld [vmem:[%s1430_s5 + $0x50] sm:$0xff]  ;;  %v695_v12 = vld [vmem:[%s1430_s5 + $0x58] sm:$0xff]  ;;  %v712_v14 = vld [vmem:[%s1430_s5 + $0xe0] sm:$0xff] }
  0x18   : > { %918 = vmatmul.mubr.msk.f32.vlgmr.msra.gmra.mrb[0].mxu0 %vm332_vm0, %v312_v31  ;;  %v1030_v13 = vpack.c.bf16 %v695_v12, %v694_v11  ;;  %v713_v15 = vld [vmem:[%s1430_s5 + $0xe8] sm:$0xff]  ;;  %v696_v17 = vld [vmem:[%s1430_s5 + $0x60] sm:$0xff]  ;;  %v714_v20 = vld [vmem:[%s1430_s5 + $0xf0] sm:$0xff] }
  0x19   : > { %1003 = vmatpush1.bf16.msra.mxu0 %v1074_v32  ;;  %415 = vmatprep.mubr.f32.mxu0 %v1102_v7  ;;  %v1032_v16 = vpack.c.bf16 %v713_v15, %v712_v14  ;;  %v697_v18 = vld [vmem:[%s1430_s5 + $0x68] sm:$0xff]  ;;  %v715_v21 = vld [vmem:[%s1430_s5 + $0xf8] sm:$0xff]  ;;  %v698_v22 = vld [vmem:[%s1430_s5 + $0x70] sm:$0xff] }
  0x1a   : > { %1005 = vmatprep.subr.bf16.mxu0 %v1075_v33  ;;  %1019 = vmatpush3.bf16.msra.mxu1 %v1018_v59  ;;  %v1034_v19 = vpack.c.bf16 %v697_v18, %v696_v17  ;;  %v1036_v23 = vpack.c.bf16 %v715_v21, %v714_v20  ;;  %v699_v24 = vld [vmem:[%s1430_s5 + $0x78] sm:$0xff] }
  0x1b   : > { %1021 = vmatprep.subr.bf16.mxu1 %v1020_v62  ;;  %v1038_v25 = vpack.c.bf16 %v699_v24, %v698_v22 }
  0x1c   : > { %919 = vmatmul.mubr.msk.f32.gmra.mrb[2].mxu0 %vm332_vm0, %v313_v34 }
  0x1d   : > { %421 = vmatprep.mubr.f32.mxu0 %v1102_v7  ;;  %1007 = vmatpush1.bf16.msra.mxu0 %v1077_v35 }
  0x1e   : > { %1023 = vmatpush3.bf16.msra.mxu1 %v1022_v1 }
  0x1f   : > { %1025 = vmatprep.subr.bf16.mxu1 %v1024_v4 }
  0x20   : > { %920 = vmatmul.mubr.msk.f32.gmra.mrb[4].mxu0 %vm332_vm0, %v314_v36 }
  0x21   : > { %427 = vmatprep.mubr.f32.mxu0 %v1102_v7 }
  0x24   : > { %921 = vmatmul.mubr.msk.f32.gmra.mrb[6].mxu0 %vm332_vm0, %v315_v37 }
  0x25   : > { %551 = vmatprep.mubr.f32.mxu0 %v1102_v7 }
  0x28   : > { %922 = vmatmul.mubr.msk.f32.vlgmr.msra.gmra.mrb[0].mxu0 %vm474_vm1, %v446_v38 }
  0x29   : > { %557 = vmatprep.mubr.f32.mxu0 %v1102_v7 }
  0x2c   : > { %923 = vmatmul.mubr.msk.f32.gmra.mrb[2].mxu0 %vm474_vm1, %v447_v39 }
  0x2d   : > { %563 = vmatprep.mubr.f32.mxu0 %v1102_v7 }
  0x30   : > { %924 = vmatmul.mubr.msk.f32.gmra.mrb[4].mxu0 %vm474_vm1, %v448_v40 }
  0x31   : > { %569 = vmatprep.mubr.f32.mxu0 %v1102_v7  ;;  %v1026_v7 = vpack.c.bf16 %v693_v6, %v692_v5 }
  0x33   : > { %1027 = vmatpush3.bf16.msra.mxu1 %v1026_v7 }
  0x34   : > { %925 = vmatmul.mubr.msk.f32.gmra.mrb[6].mxu0 %vm474_vm1, %v449_v41  ;;  %1029 = vmatprep.subr.bf16.mxu1 %v1028_v10 }
  0x37   : > { %1031 = vmatpush3.bf16.msra.mxu1 %v1030_v13 }
  0x38   : > { %1033 = vmatprep.subr.bf16.mxu1 %v1032_v16 }
  0x3b   : > { %1035 = vmatpush3.bf16.msra.mxu1 %v1034_v19 }
  0x3c   : > { %1037 = vmatprep.subr.bf16.mxu1 %v1036_v23 }
  0x3f   : > { %1039 = vmatpush3.bf16.msra.mxu1 %v1038_v25 }
  0x8a   : > { %v457_v26 = vpop.permute.xlu0 %456 }
  0x8b   : > { %v467_v40 = vpop.permute.xlu1 %466 }
  0x8e   : > { %v462_v33 = vpop.permute.xlu0 %461 }
  0x8f   : > { %v472_v58 = vpop.permute.xlu1 %471 }
  0xfb   : > { %v553_v27 = vpop.f32.mrb[0].mxu0 }
  0xfc   : > { %v1348_v28 = vadd.f32 %v553_v27, %v457_v26  ;;  %v555_v29 = vpop.f32.mrb[1].mxu0 }
  0xfd   : > { %v1350_v30 = vadd.f32 %v555_v29, %v457_v26 }
  0xfe   : > { %v584_v31 = vmul.f32 %v1348_v28, %v1348_v28 }
  0xff   : > { %v585_v32 = vmul.f32 %v1350_v30, %v1350_v30  ;;  %v559_v34 = vpop.f32.mrb[2].mxu0 }
 0x100   : > { %v592_v35 = vmul.f32 %v584_v31, %v1348_v28  ;;  %v1357_v36 = vadd.f32 %v559_v34, %v462_v33  ;;  %v561_v37 = vpop.f32.mrb[3].mxu0 }
 0x101   : > { %v593_v38 = vmul.f32 %v585_v32, %v1350_v30  ;;  %v1360_v39 = vadd.f32 %v561_v37, %v462_v33 }
 0x102   : > { %v600_v41 = vmul.f32 0.044715, %v592_v35  ;;  %v586_v42 = vmul.f32 %v1357_v36, %v1357_v36 }
 0x103   : > { %v601_v43 = vmul.f32 0.044715, %v593_v38  ;;  %v587_v44 = vmul.f32 %v1360_v39, %v1360_v39  ;;  %v565_v45 = vpop.f32.mrb[4].mxu0 }
 0x104   : > { %v608_v46 = vadd.f32 %v600_v41, %v1348_v28  ;;  %v594_v47 = vmul.f32 %v586_v42, %v1357_v36  ;;  %v1368_v48 = vadd.f32 %v565_v45, %v467_v40  ;;  %v567_v49 = vpop.f32.mrb[5].mxu0 }
 0x105   : > { %v595_v50 = vmul.f32 %v587_v44, %v1360_v39  ;;  %v1371_v51 = vadd.f32 %v567_v49, %v467_v40  ;;  %v609_v52 = vadd.f32 %v601_v43, %v1350_v30 }
 0x106   : > { %v616_v53 = vmul.f32 0.7978846, %v608_v46  ;;  %v602_v54 = vmul.f32 0.044715, %v594_v47  ;;  %v588_v55 = vmul.f32 %v1368_v48, %v1368_v48 }
 0x107   : > { %v603_v56 = vmul.f32 0.044715, %v595_v50  ;;  %v589_v57 = vmul.f32 %v1371_v51, %v1371_v51  ;;  %v571_v59 = vpop.f32.mrb[6].mxu0  ;;  %v617_v60 = vmul.f32 0.7978846, %v609_v52 }
 0x108   : > { %1078 = vtanh.f32 %v616_v53  ;;  %v610_v61 = vadd.f32 %v602_v54, %v1357_v36  ;;  %v596_v62 = vmul.f32 %v588_v55, %v1368_v48  ;;  %v1380_v63 = vadd.f32 %v571_v59, %v472_v58  ;;  %v573_v0 = vpop.f32.mrb[7].mxu0 }
 0x109   : > { %v611_v1 = vadd.f32 %v603_v56, %v1360_v39  ;;  %v597_v2 = vmul.f32 %v589_v57, %v1371_v51  ;;  %v1384_v3 = vadd.f32 %v573_v0, %v472_v58  ;;  %1080 = vtanh.f32 %v617_v60 }
 0x10a   : > { %v618_v4 = vmul.f32 0.7978846, %v610_v61  ;;  %v604_v5 = vmul.f32 0.044715, %v596_v62  ;;  %v590_v6 = vmul.f32 %v1380_v63, %v1380_v63 }
 0x10b   : > { %v619_v7 = vmul.f32 0.7978846, %v611_v1  ;;  %v605_v8 = vmul.f32 0.044715, %v597_v2  ;;  %v591_v9 = vmul.f32 %v1384_v3, %v1384_v3 }
 0x10c   : > { %v612_v10 = vadd.f32 %v604_v5, %v1368_v48  ;;  %v598_v11 = vmul.f32 %v590_v6, %v1380_v63  ;;  %1082 = vtanh.f32 %v618_v4 }
 0x10d   : > { %v613_v12 = vadd.f32 %v605_v8, %v1371_v51  ;;  %v599_v13 = vmul.f32 %v591_v9, %v1384_v3  ;;  %1084 = vtanh.f32 %v619_v7 }
 0x10e   : > { %v620_v14 = vmul.f32 0.7978846, %v612_v10  ;;  %v606_v15 = vmul.f32 0.044715, %v598_v11 }
 0x10f   : > { %v621_v16 = vmul.f32 0.7978846, %v613_v12  ;;  %v607_v17 = vmul.f32 0.044715, %v599_v13 }
 0x110   : > { %v614_v18 = vadd.f32 %v606_v15, %v1380_v63  ;;  %1086 = vtanh.f32 %v620_v14 }
 0x111   : > { %v615_v19 = vadd.f32 %v607_v17, %v1384_v3  ;;  %1088 = vtanh.f32 %v621_v16 }
 0x112   : > { %v1079_v20 = vpop.eup %1078  ;;  %v622_v21 = vmul.f32 0.7978846, %v614_v18 }
 0x113   : > { %v1081_v22 = vpop.eup %1080  ;;  %v623_v23 = vmul.f32 0.7978846, %v615_v19  ;;  %v632_v24 = vadd.f32 1.0, %v1079_v20 }
 0x114   : > { %v633_v25 = vadd.f32 1.0, %v1081_v22  ;;  %1090 = vtanh.f32 %v622_v21 }
 0x115   : > { %v640_v26 = vmul.f32 0.5, %v632_v24  ;;  %1092 = vtanh.f32 %v623_v23 }
 0x116   : > { %v1083_v27 = vpop.eup %1082  ;;  %v641_v29 = vmul.f32 0.5, %v633_v25 }
 0x117   : > { %v1085_v31 = vpop.eup %1084  ;;  %v648_v32 = vmul.f32 %v640_v26, %v1348_v28  ;;  %v634_v33 = vadd.f32 1.0, %v1083_v27 }
 0x118   : > { %v649_v34 = vmul.f32 %v641_v29, %v1350_v30  ;;  %v635_v35 = vadd.f32 1.0, %v1085_v31 }
 0x119   : > { %v642_v37 = vmul.f32 0.5, %v634_v33 }
 0x11a   : > { %v1087_v38 = vpop.eup %1086  ;;  %v936_v40 = vpack.c.bf16 %v649_v34, %v648_v32  ;;  %780 = vmatprep.mubr.f32.mxu1 %v649_v34  ;;  %v643_v41 = vmul.f32 0.5, %v635_v35 }
 0x11b   : > { %v1089_v42 = vpop.eup %1088  ;;  %781 = vmatmul.mubr.f32.vlgmr.msra.gmra.mrb[0].mxu1 %v648_v32  ;;  %v650_v28 = vmul.f32 %v642_v37, %v1357_v36  ;;  %v636_v43 = vadd.f32 1.0, %v1087_v38 }
 0x11c   : > { %680 = vst [vmem:[%s1402_s18] sm:$0xff] %v936_v40  ;;  %v651_v30 = vmul.f32 %v643_v41, %v1360_v39  ;;  %v637_v44 = vadd.f32 1.0, %v1089_v42 }
 0x11d   : > { %v644_v45 = vmul.f32 0.5, %v636_v43 }
 0x11e   : > { %v1091_v46 = vpop.eup %1090  ;;  %785 = vmatprep.mubr.f32.mxu1 %v651_v30  ;;  %v937_v47 = vpack.c.bf16 %v651_v30, %v650_v28  ;;  %v645_v49 = vmul.f32 0.5, %v637_v44 }
 0x11f   : > { %v1093_v50 = vpop.eup %1092  ;;  %786 = vmatmul.mubr.f32.gmra.mrb[2].mxu1 %v650_v28  ;;  %v652_v52 = vmul.f32 %v644_v45, %v1368_v48  ;;  %v638_v53 = vadd.f32 1.0, %v1091_v46 }
 0x120   : > { %681 = vst [vmem:[%s1402_s18 + $0x8] sm:$0xff] %v937_v47  ;;  %v653_v36 = vmul.f32 %v645_v49, %v1371_v51  ;;  %v639_v54 = vadd.f32 1.0, %v1093_v50 }
 0x121   : > { %v646_v55 = vmul.f32 0.5, %v638_v53 }
 0x122   : > { %790 = vmatprep.mubr.f32.mxu1 %v653_v36  ;;  %v938_v39 = vpack.c.bf16 %v653_v36, %v652_v52  ;;  %v647_v56 = vmul.f32 0.5, %v639_v54 }
 0x123   : > { %791 = vmatmul.mubr.f32.gmra.mrb[4].mxu1 %v652_v52  ;;  %v654_v57 = vmul.f32 %v646_v55, %v1380_v63 }
 0x124   : > { %682 = vst [vmem:[%s1402_s18 + $0x10] sm:$0xff] %v938_v39  ;;  %v655_v58 = vmul.f32 %v647_v56, %v1384_v3 }
 0x126   : > { %795 = vmatprep.mubr.f32.mxu1 %v655_v58  ;;  %v939_v59 = vpack.c.bf16 %v655_v58, %v654_v57 }
 0x127   : > { %796 = vmatmul.mubr.f32.gmra.mrb[6].mxu1 %v654_v57 }
 0x128   : > { %683 = vst [vmem:[%s1402_s18 + $0x18] sm:$0xff] %v939_v59 }
 0x1ee   : > { %v972_v48 = vpop.f32.mrb[0].mxu1 }
 0x1ef   : > { %v973_v51 = vpop.f32.mrb[1].mxu1 }
 0x1f0   : > { %v974_v60 = vadd.f32 %v973_v51, %v972_v48 }
 0x1f2   : > { %801 = vst.msk [vmem:[%s311_s21] sm:$0xff] %vm332_vm0, %v974_v60  ;;  %v975_v61 = vpop.f32.mrb[2].mxu1 }
 0x1f3   : > { %v976_v62 = vpop.f32.mrb[3].mxu1 }
 0x1f4   : > { %v977_v0 = vadd.f32 %v976_v62, %v975_v61 }
 0x1f6   : > { %802 = vst.msk [vmem:[%s311_s21 + $0x8] sm:$0xff] %vm332_vm0, %v977_v0  ;;  %v978_v63 = vpop.f32.mrb[4].mxu1 }
 0x1f7   : > { %v979_v1 = vpop.f32.mrb[5].mxu1 }
 0x1f8   : > { %v980_v2 = vadd.f32 %v979_v1, %v978_v63 }
 0x1fa   : > { %803 = vst.msk [vmem:[%s311_s21 + $0x10] sm:$0xff] %vm332_vm0, %v980_v2  ;;  %v981_v3 = vpop.f32.mrb[6].mxu1 }
 0x1fb   : > { %v982_v4 = vpop.f32.mrb[7].mxu1 }
 0x1fc   : > { %v983_v5 = vadd.f32 %v982_v4, %v981_v3 }
 0x1fe   : > { %804 = vst.msk [vmem:[%s311_s21 + $0x18] sm:$0xff] %vm332_vm0, %v983_v5 }
 0x1ff PF: > { %s18_s24 = sadd.s32 1, %s1100_s24  }
 0x200   : > { %p15_p4 = scmp.ge.s32.totalorder %s18_s24, 4  }
 0x202   :  { %17 = sbr.rel (!%p15_p4) target bundleno = 1 (0x1), region = 89 }

// kernel: recursive_fno_forward.19
= control target key start
LH: loop header
LB: loop body
LE: loop exit
PB: predicated region body
PF: predicated region fallthrough
CT: control target
= control target key end

     0   :  { %s1650_s30 = smov 0   ;;  %s2193_s0 = inlined_call_operand.vmem [shape: bf16[2,32,256], index: 0, kind: input, shape index: {}]   ;;  %s2194_s1 = inlined_call_operand.vmem [shape: f32[2,32,64], index: 1, kind: input, shape index: {}]   ;;  %s2195_s2 = inlined_call_operand.vmem [shape: f32[64,256], index: 2, kind: input, shape index: {}]   ;;  %s2196_s3 = inlined_call_operand.vmem [shape: f32[32,32], index: 3, kind: input, shape index: {}]   ;;  %s2197_s4 = inlined_call_operand.vmem [shape: f32[32,1], index: 4, kind: input, shape index: {}]   ;;  %s2198_s5 = inlined_call_operand.vmem [shape: f32[128,32], index: 5, kind: input, shape index: {}]   ;;  %s2199_s6 = inlined_call_operand.vmem [shape: f32[128,1], index: 6, kind: input, shape index: {}]   ;;  %s2200_s7 = inlined_call_operand.vmem [shape: f32[3,128], index: 7, kind: input, shape index: {}]   ;;  %s2201_s8 = inlined_call_operand.vmem [shape: f32[3,1], index: 8, kind: input, shape index: {}]   ;;  %s2202_s9 = inlined_call_operand.vmem [shape: f32[2,3,256], index: 9, kind: output, shape index: {}]  }
   0x1 LB: > { %s1384_s10 = sadd.s32 4294967295, %s1596_s30   ;;  %p1388_p0 = scmp.ge.s32.totalorder %s1596_s30, 1  ;;  %s1596_s30 = sphi %s1650_s30, %s19_s30  }
   0x2   : > { %p297_p1 = scmp.lt.s32.totalorder %s1596_s30, 3 }
   0x4   : > { %p298_p2 = pnand %p1388_p0, %p297_p1 }
   0x5   : > { %v358_v0 = vld [vmem:[%s2195_s2 + $0x8] sm:$0xff] (!%p298_p2)  ;;  %v360_v1 = vld [vmem:[%s2195_s2 + $0x18] sm:$0xff] (!%p298_p2)  ;;  %v357_v2 = vld [vmem:[%s2195_s2] sm:$0xff] (!%p298_p2)  ;;  %p338_p3 = scmp.lt.s32.totalorder (!%p298_p2), %s1384_s10, 1  ;;  %v1598_v7 = vmov (!%p298_p2), 0.0   ;;  %v1599_v13 = vmov (!%p298_p2), 0  }
   0x6   : > { %301 = sbr.rel (%p298_p2) target bundleno = 809 (0x329), region = 56  ;;  %v1424_v3 = vpack.c.bf16 (!%p298_p2), %v360_v1, %v358_v0  ;;  %v359_v4 = vld [vmem:[%s2195_s2 + $0x10] sm:$0xff] (!%p298_p2)  ;;  %v362_v5 = vld [vmem:[%s2195_s2 + $0x28] sm:$0xff] (!%p298_p2)  ;;  %v364_v6 = vld [vmem:[%s2195_s2 + $0x38] sm:$0xff] (!%p298_p2)  ;;  %450 = vmatprep.mubr.f32.mxu0 (!%p298_p2), %v1598_v7  ;;  %849 = vmatprep.mubr.f32.mxu1 (!%p298_p2), %v1598_v7  ;;  %vm373_vm0 = vcmask (!%p298_p2), 523264   ;;  %vm515_vm1 = vcmask (!%p298_p2), 261120  }
   0x7   : > { %v1426_v8 = vpack.c.bf16 (!%p298_p2), %v359_v4, %v357_v2  ;;  %v1428_v9 = vpack.c.bf16 (!%p298_p2), %v364_v6, %v362_v5  ;;  %v361_v10 = vld [vmem:[%s2195_s2 + $0x20] sm:$0xff] (!%p298_p2)  ;;  %v363_v11 = vld [vmem:[%s2195_s2 + $0x30] sm:$0xff] (!%p298_p2)  ;;  %v366_v12 = vld [vmem:[%s2195_s2 + $0x48] sm:$0xff] (!%p298_p2)  ;;  %1518 = vset.pattern.permute.xlu0 (!%p298_p2), %v1599_v13  ;;  %1519 = vset.pattern.permute.xlu1 (!%p298_p2), %v1599_v13 }
   0x8   : > { %1425 = vmatprep.subr.bf16.mxu0 (!%p298_p2), %v1424_v3  ;;  %v368_v14 = vld [vmem:[%s2195_s2 + $0x58] sm:$0xff] (!%p298_p2)  ;;  %v1430_v15 = vpack.c.bf16 (!%p298_p2), %v363_v11, %v361_v10  ;;  %v365_v17 = vld [vmem:[%s2195_s2 + $0x40] sm:$0xff] (!%p298_p2)  ;;  %v367_v18 = vld [vmem:[%s2195_s2 + $0x50] sm:$0xff] (!%p298_p2) }
   0x9   : > { %1427 = vmatpush1.bf16.msra.mxu0 (!%p298_p2), %v1426_v8  ;;  %v1432_v16 = vpack.c.bf16 (!%p298_p2), %v368_v14, %v366_v12  ;;  %v370_v19 = vld [vmem:[%s2195_s2 + $0x68] sm:$0xff] (!%p298_p2)  ;;  %v372_v20 = vld [vmem:[%s2195_s2 + $0x78] sm:$0xff] (!%p298_p2)  ;;  %v1434_v21 = vpack.c.bf16 (!%p298_p2), %v367_v18, %v365_v17  ;;  %v369_v23 = vld [vmem:[%s2195_s2 + $0x60] sm:$0xff] (!%p298_p2) }
   0xa   : > { %1429 = vmatprep.subr.bf16.mxu0 (!%p298_p2), %v1428_v9  ;;  %v1436_v22 = vpack.c.bf16 (!%p298_p2), %v372_v20, %v370_v19  ;;  %v371_v24 = vld [vmem:[%s2195_s2 + $0x70] sm:$0xff] (!%p298_p2)  ;;  %v491_v25 = vld [vmem:[%s2197_s4] sm:$0xff] (!%p298_p2)  ;;  %v492_v28 = vld [vmem:[%s2197_s4 + $0x8] sm:$0xff] (!%p298_p2) }
   0xb   : > { %497 = vperm.xlu0 (!%p298_p2), %1518, %v491_v25   ;;  %v493_v26 = vld [vmem:[%s2197_s4 + $0x10] sm:$0xff] (!%p298_p2)  ;;  %v1438_v27 = vpack.c.bf16 (!%p298_p2), %v371_v24, %v369_v23  ;;  %v494_v30 = vld [vmem:[%s2197_s4 + $0x18] sm:$0xff] (!%p298_p2)  ;;  %v641_v33 = vld [vmem:[%s2199_s6] sm:$0xff] (!%p298_p2) }
   0xc   : > { %507 = vperm.xlu1 (!%p298_p2), %1519, %v493_v26   ;;  %v642_v35 = vld [vmem:[%s2199_s6 + $0x8] sm:$0xff] (!%p298_p2)  ;;  %v643_v38 = vld [vmem:[%s2199_s6 + $0x10] sm:$0xff] (!%p298_p2)  ;;  %v644_v39 = vld [vmem:[%s2199_s6 + $0x18] sm:$0xff] (!%p298_p2) }
   0xd   : > { %s2204_s10 = smov (!%p338_p3, %s1384_s10), 1  ;;  %1431 = vmatpush1.bf16.msra.mxu0 %v1430_v15  ;;  %v645_v41 = vld [vmem:[%s2199_s6 + $0x20] sm:$0xff]  ;;  %v646_v42 = vld [vmem:[%s2199_s6 + $0x28] sm:$0xff]  ;;  %v647_v44 = vld [vmem:[%s2199_s6 + $0x30] sm:$0xff] }
   0xe   : > { %s1421_s12 = sshll.u32 %s2204_s10, 5  ;;  %1433 = vmatprep.subr.bf16.mxu0 %v1432_v16  ;;  %v648_v45 = vld [vmem:[%s2199_s6 + $0x38] sm:$0xff]  ;;  %v487_v46 = vld [vmem:[%s2196_s3] sm:$0xff]  ;;  %v650_v48 = vld [vmem:[%s2199_s6 + $0x48] sm:$0xff]  ;;  %s1423_s22 = sshll.u32 %s2204_s10, 3 }
   0xf   : > { %s1705_s21 = scalar_lea.vmem %s2193_s0, %s1421_s12  ;;  %s1728_s18 = scalar_lea.vmem %s2194_s1, %s1421_s12  ;;  %502 = vperm.xlu0 %1518, %v492_v28   ;;  %v649_v47 = vld [vmem:[%s2199_s6 + $0x40] sm:$0xff]  ;;  %v488_v49 = vld [vmem:[%s2196_s3 + $0x8] sm:$0xff]  ;;  %v651_v50 = vld [vmem:[%s2199_s6 + $0x50] sm:$0xff] }
  0x10   : > { %v1520_v29 = vld [vmem:[%s1705_s21 + $0x4] ss:$8 sps:$4 sm:$0xff]   ;;  %v1522_v32 = vld [vmem:[%s1705_s21] ss:$8 sps:$4 sm:$0xff]   ;;  %512 = vperm.xlu1 %1519, %v494_v30   ;;  %v1523_v34 = vld [vmem:[%s1705_s21 + $0x14] ss:$8 sps:$4 sm:$0xff]   ;;  %s352_s24 = scalar_lea.vmem %s2202_s9, %s1423_s22 }
  0x11   : > { %1435 = vmatpush1.bf16.msra.mxu0 %v1434_v21  ;;  %v353_v31 = vld [vmem:[%s1728_s18] sm:$0xff]  ;;  %v354_v36 = vld [vmem:[%s1728_s18 + $0x8] sm:$0xff]  ;;  %v1525_v37 = vld [vmem:[%s1705_s21 + $0x10] ss:$8 sps:$4 sm:$0xff]  }
  0x12   : > { %1437 = vmatprep.subr.bf16.mxu0 %v1436_v22  ;;  %v355_v40 = vld [vmem:[%s1728_s18 + $0x10] sm:$0xff]  ;;  %v356_v43 = vld [vmem:[%s1728_s18 + $0x18] sm:$0xff]  ;;  %v653_v53 = vld [vmem:[%s2199_s6 + $0x60] sm:$0xff] }
  0x13   : > { %659 = vperm.xlu0 %1518, %v641_v33   ;;  %v652_v51 = vld [vmem:[%s2199_s6 + $0x58] sm:$0xff]  ;;  %v489_v52 = vld [vmem:[%s2196_s3 + $0x10] sm:$0xff]  ;;  %v654_v54 = vld [vmem:[%s2199_s6 + $0x68] sm:$0xff] }
  0x14   : > { %664 = vperm.xlu1 %1519, %v642_v35   ;;  %v490_v55 = vld [vmem:[%s2196_s3 + $0x18] sm:$0xff]  ;;  %v655_v56 = vld [vmem:[%s2199_s6 + $0x70] sm:$0xff]  ;;  %v1235_v58 = vld [vmem:[%s2201_s8] sm:$0x7] }
  0x15   : > { %1439 = vmatpush1.bf16.msra.mxu0 %v1438_v27  ;;  %v656_v57 = vld [vmem:[%s2199_s6 + $0x78] sm:$0xff]  ;;  %v625_v20 = vld [vmem:[%s2198_s5] sm:$0xff]  ;;  %v626_v21 = vld [vmem:[%s2198_s5 + $0x8] sm:$0xff] }
  0x16   : > { %1441 = vmatprep.subr.bf16.mxu0 %v1520_v29  ;;  %v627_v22 = vld [vmem:[%s2198_s5 + $0x10] sm:$0xff]  ;;  %v628_v23 = vld [vmem:[%s2198_s5 + $0x18] sm:$0xff]  ;;  %v629_v24 = vld [vmem:[%s2198_s5 + $0x20] sm:$0xff] }
  0x17   : > { %669 = vperm.xlu0 %1518, %v643_v38   ;;  %v630_v25 = vld [vmem:[%s2198_s5 + $0x28] sm:$0xff]  ;;  %v631_v26 = vld [vmem:[%s2198_s5 + $0x30] sm:$0xff]  ;;  %v632_v27 = vld [vmem:[%s2198_s5 + $0x38] sm:$0xff] }
  0x18   : > { %1395 = vmatmul.mubr.msk.f32.vlgmr.msra.gmra.mrb[0].mxu0 %vm373_vm0, %v353_v31  ;;  %674 = vperm.xlu1 %1519, %v644_v39   ;;  %v633_v28 = vld [vmem:[%s2198_s5 + $0x40] sm:$0xff]  ;;  %v634_v29 = vld [vmem:[%s2198_s5 + $0x48] sm:$0xff]  ;;  %v635_v30 = vld [vmem:[%s2198_s5 + $0x50] sm:$0xff] }
  0x19   : > { %1443 = vmatpush1.bf16.msra.mxu0 %v1522_v32  ;;  %456 = vmatprep.mubr.f32.mxu0 %v1598_v7  ;;  %v636_v31 = vld [vmem:[%s2198_s5 + $0x58] sm:$0xff]  ;;  %v637_v32 = vld [vmem:[%s2198_s5 + $0x60] sm:$0xff]  ;;  %v638_v33 = vld [vmem:[%s2198_s5 + $0x68] sm:$0xff] }
  0x1a   : > { %1445 = vmatprep.subr.bf16.mxu0 %v1523_v34  ;;  %v639_v34 = vld [vmem:[%s2198_s5 + $0x70] sm:$0xff]  ;;  %v640_v35 = vld [vmem:[%s2198_s5 + $0x78] sm:$0xff] }
  0x1b   : > { %679 = vperm.xlu0 %1518, %v645_v41  }
  0x1c   : > { %1396 = vmatmul.mubr.msk.f32.gmra.mrb[2].mxu0 %vm373_vm0, %v354_v36  ;;  %684 = vperm.xlu1 %1519, %v646_v42  }
  0x1d   : > { %462 = vmatprep.mubr.f32.mxu0 %v1598_v7  ;;  %1447 = vmatpush1.bf16.msra.mxu0 %v1525_v37 }
  0x1f   : > { %689 = vperm.xlu0 %1518, %v647_v44  }
  0x20   : > { %1397 = vmatmul.mubr.msk.f32.gmra.mrb[4].mxu0 %vm373_vm0, %v355_v40  ;;  %694 = vperm.xlu1 %1519, %v648_v45  }
  0x21   : > { %468 = vmatprep.mubr.f32.mxu0 %v1598_v7 }
  0x23   : > { %699 = vperm.xlu0 %1518, %v649_v47  }
  0x24   : > { %1398 = vmatmul.mubr.msk.f32.gmra.mrb[6].mxu0 %vm373_vm0, %v356_v43  ;;  %704 = vperm.xlu1 %1519, %v650_v48  }
  0x25   : > { %592 = vmatprep.mubr.f32.mxu0 %v1598_v7 }
  0x27   : > { %709 = vperm.xlu0 %1518, %v651_v50  }
  0x28   : > { %1399 = vmatmul.mubr.msk.f32.vlgmr.msra.gmra.mrb[0].mxu0 %vm515_vm1, %v487_v46  ;;  %714 = vperm.xlu1 %1519, %v652_v51  }
  0x29   : > { %598 = vmatprep.mubr.f32.mxu0 %v1598_v7 }
  0x2b   : > { %719 = vperm.xlu0 %1518, %v653_v53  }
  0x2c   : > { %1400 = vmatmul.mubr.msk.f32.gmra.mrb[2].mxu0 %vm515_vm1, %v488_v49  ;;  %724 = vperm.xlu1 %1519, %v654_v54  }
  0x2d   : > { %604 = vmatprep.mubr.f32.mxu0 %v1598_v7 }
  0x2f   : > { %729 = vperm.xlu0 %1518, %v655_v56  }
  0x30   : > { %1401 = vmatmul.mubr.msk.f32.gmra.mrb[4].mxu0 %vm515_vm1, %v489_v52  ;;  %734 = vperm.xlu1 %1519, %v656_v57  }
  0x31   : > { %610 = vmatprep.mubr.f32.mxu0 %v1598_v7 }
  0x33   : > { %1238 = vperm.xlu0 %1518, %v1235_v58  }
  0x34   : > { %1402 = vmatmul.mubr.msk.f32.gmra.mrb[6].mxu0 %vm515_vm1, %v490_v55 }
  0x35   : > { %1305 = vmatprep.mubr.f32.mxu0 %v1598_v7 }
  0x8a   : > { %v498_v59 = vpop.permute.xlu0 %497 }
  0x8b   : > { %v508_v3 = vpop.permute.xlu1 %507 }
  0x8e   : > { %v503_v62 = vpop.permute.xlu0 %502 }
  0x8f   : > { %v513_v11 = vpop.permute.xlu1 %512 }
  0x92   : > { %v660_v36 = vpop.permute.xlu0 %659 }
  0x93   : > { %v665_v42 = vpop.permute.xlu1 %664 }
  0x96   : > { %v670_v51 = vpop.permute.xlu0 %669 }
  0xfb   : > { %v594_v60 = vpop.f32.mrb[0].mxu0 }
  0xfc   : > { %v596_v61 = vpop.f32.mrb[1].mxu0  ;;  %v595_v0 = vadd.f32 %v594_v60, %v498_v59 }
  0xfd   : > { %v597_v4 = vadd.f32 %v596_v61, %v498_v59 }
  0xff   : > { %v600_v63 = vpop.f32.mrb[2].mxu0 }
 0x100   : > { %v601_v1 = vadd.f32 %v600_v63, %v503_v62  ;;  %v602_v2 = vpop.f32.mrb[3].mxu0 }
 0x101   : > { %v603_v5 = vadd.f32 %v602_v2, %v503_v62 }
 0x102   : > { %v1450_v6 = vpack.c.bf16 %v601_v1, %v595_v0  ;;  %v675_v0 = vpop.permute.xlu1 %674 }
 0x103   : > { %v606_v8 = vpop.f32.mrb[4].mxu0  ;;  %v1448_v9 = vpack.c.bf16 %v603_v5, %v597_v4 }
 0x104   : > { %v608_v10 = vpop.f32.mrb[5].mxu0  ;;  %v607_v13 = vadd.f32 %v606_v8, %v508_v3 }
 0x105   : > { %1449 = vmatprep.subr.bf16.mxu1 %v1448_v9  ;;  %v609_v16 = vadd.f32 %v608_v10, %v508_v3 }
 0x106   : > { %1451 = vmatpush1.bf16.msra.mxu1 %v1450_v6 }
 0x107   : > { %v612_v12 = vpop.f32.mrb[6].mxu0 }
 0x108   : > { %v613_v14 = vadd.f32 %v612_v12, %v513_v11  ;;  %v614_v15 = vpop.f32.mrb[7].mxu0 }
 0x109   : > { %v615_v17 = vadd.f32 %v614_v15, %v513_v11 }
 0x10a   : > { %v1454_v18 = vpack.c.bf16 %v613_v14, %v607_v13 }
 0x10b   : > { %v1452_v19 = vpack.c.bf16 %v615_v17, %v609_v16  ;;  %v680_v16 = vpop.permute.xlu0 %679 }
 0x10d   : > { %1453 = vmatprep.subr.bf16.mxu1 %v1452_v19 }
 0x10e   : > { %1455 = vmatpush1.bf16.msra.mxu1 %v1454_v18 }
 0x111   : > { %1403 = vmatmul.mubr.msk.f32.vlgmr.msra.gmra.mrb[0].mxu1 %vm515_vm1, %v625_v20 }
 0x112   : > { %855 = vmatprep.mubr.f32.mxu1 %v1598_v7 }
 0x115   : > { %1404 = vmatmul.mubr.msk.f32.gmra.mrb[2].mxu1 %vm515_vm1, %v626_v21 }
 0x116   : > { %861 = vmatprep.mubr.f32.mxu1 %v1598_v7 }
 0x119   : > { %1405 = vmatmul.mubr.msk.f32.gmra.mrb[4].mxu1 %vm515_vm1, %v627_v22 }
 0x11a   : > { %867 = vmatprep.mubr.f32.mxu1 %v1598_v7 }
 0x11d   : > { %1406 = vmatmul.mubr.msk.f32.gmra.mrb[6].mxu1 %vm515_vm1, %v628_v23 }
 0x11e   : > { %873 = vmatprep.mubr.f32.mxu1 %v1598_v7 }
 0x121   : > { %1407 = vmatmul.mubr.msk.f32.gmra.mrb[8].mxu1 %vm515_vm1, %v629_v24 }
 0x122   : > { %879 = vmatprep.mubr.f32.mxu1 %v1598_v7 }
 0x125   : > { %1408 = vmatmul.mubr.msk.f32.gmra.mrb[10].mxu1 %vm515_vm1, %v630_v25 }
 0x126   : > { %885 = vmatprep.mubr.f32.mxu1 %v1598_v7 }
 0x129   : > { %1409 = vmatmul.mubr.msk.f32.gmra.mrb[12].mxu1 %vm515_vm1, %v631_v26 }
 0x12a   : > { %891 = vmatprep.mubr.f32.mxu1 %v1598_v7 }
 0x12d   : > { %1410 = vmatmul.mubr.msk.f32.gmra.mrb[14].mxu1 %vm515_vm1, %v632_v27 }
 0x12e   : > { %897 = vmatprep.mubr.f32.mxu1 %v1598_v7 }
 0x131   : > { %1411 = vmatmul.mubr.msk.f32.gmra.mrb[16].mxu1 %vm515_vm1, %v633_v28 }
 0x132   : > { %903 = vmatprep.mubr.f32.mxu1 %v1598_v7 }
 0x135   : > { %1412 = vmatmul.mubr.msk.f32.gmra.mrb[18].mxu1 %vm515_vm1, %v634_v29 }
 0x136   : > { %909 = vmatprep.mubr.f32.mxu1 %v1598_v7 }
 0x139   : > { %1413 = vmatmul.mubr.msk.f32.gmra.mrb[20].mxu1 %vm515_vm1, %v635_v30 }
 0x13a   : > { %915 = vmatprep.mubr.f32.mxu1 %v1598_v7 }
 0x13d   : > { %1414 = vmatmul.mubr.msk.f32.gmra.mrb[22].mxu1 %vm515_vm1, %v636_v31 }
 0x13e   : > { %921 = vmatprep.mubr.f32.mxu1 %v1598_v7 }
 0x141   : > { %1415 = vmatmul.mubr.msk.f32.gmra.mrb[24].mxu1 %vm515_vm1, %v637_v32  ;;  %v685_v32 = vpop.permute.xlu1 %684 }
 0x142   : > { %927 = vmatprep.mubr.f32.mxu1 %v1598_v7 }
 0x145   : > { %1416 = vmatmul.mubr.msk.f32.gmra.mrb[26].mxu1 %vm515_vm1, %v638_v33 }
 0x146   : > { %933 = vmatprep.mubr.f32.mxu1 %v1598_v7 }
 0x149   : > { %1417 = vmatmul.mubr.msk.f32.gmra.mrb[28].mxu1 %vm515_vm1, %v639_v34 }
 0x14a   : > { %939 = vmatprep.mubr.f32.mxu1 %v1598_v7 }
 0x14d   : > { %1418 = vmatmul.mubr.msk.f32.gmra.mrb[30].mxu1 %vm515_vm1, %v640_v35 }
 0x1e4   : > { %v851_v37 = vpop.f32.mrb[0].mxu1 }
 0x1e5   : > { %v1899_v38 = vadd.f32 %v851_v37, %v660_v36  ;;  %v853_v39 = vpop.f32.mrb[1].mxu1 }
 0x1e6   : > { %v1901_v40 = vadd.f32 %v853_v39, %v660_v36 }
 0x1e7   : > { %v946_v41 = vmul.f32 %v1899_v38, %v1899_v38 }
 0x1e8   : > { %v947_v7 = vmul.f32 %v1901_v40, %v1901_v40  ;;  %v857_v43 = vpop.f32.mrb[2].mxu1 }
 0x1e9   : > { %v978_v44 = vmul.f32 %v946_v41, %v1899_v38  ;;  %v1908_v45 = vadd.f32 %v857_v43, %v665_v42  ;;  %v859_v46 = vpop.f32.mrb[3].mxu1 }
 0x1ea   : > { %v979_v47 = vmul.f32 %v947_v7, %v1901_v40  ;;  %v1911_v48 = vadd.f32 %v859_v46, %v665_v42 }
 0x1eb   : > { %v1010_v49 = vmul.f32 0.044715, %v978_v44  ;;  %v948_v50 = vmul.f32 %v1908_v45, %v1908_v45 }
 0x1ec   : > { %v1011_v52 = vmul.f32 0.044715, %v979_v47  ;;  %v949_v53 = vmul.f32 %v1911_v48, %v1911_v48  ;;  %v863_v54 = vpop.f32.mrb[4].mxu1 }
 0x1ed   : > { %v1042_v55 = vadd.f32 %v1010_v49, %v1899_v38  ;;  %v980_v56 = vmul.f32 %v948_v50, %v1908_v45  ;;  %v1919_v57 = vadd.f32 %v863_v54, %v670_v51  ;;  %v865_v58 = vpop.f32.mrb[5].mxu1 }
 0x1ee   : > { %v981_v59 = vmul.f32 %v949_v53, %v1911_v48  ;;  %v1922_v60 = vadd.f32 %v865_v58, %v670_v51  ;;  %v1043_v1 = vadd.f32 %v1011_v52, %v1901_v40  ;;  %v690_v51 = vpop.permute.xlu0 %689 }
 0x1ef   : > { %v1074_v61 = vmul.f32 0.7978846, %v1042_v55  ;;  %v1012_v62 = vmul.f32 0.044715, %v980_v56  ;;  %v950_v63 = vmul.f32 %v1919_v57, %v1919_v57 }
 0x1f0   : > { %v1013_v2 = vmul.f32 0.044715, %v981_v59  ;;  %v951_v3 = vmul.f32 %v1922_v60, %v1922_v60  ;;  %v869_v4 = vpop.f32.mrb[6].mxu1  ;;  %v1075_v17 = vmul.f32 0.7978846, %v1043_v1 }
 0x1f1   : > { %1526 = vtanh.f32 %v1074_v61  ;;  %v1044_v5 = vadd.f32 %v1012_v62, %v1908_v45  ;;  %v982_v6 = vmul.f32 %v950_v63, %v1919_v57  ;;  %v1931_v8 = vadd.f32 %v869_v4, %v675_v0  ;;  %v871_v9 = vpop.f32.mrb[7].mxu1 }
 0x1f2   : > { %v983_v10 = vmul.f32 %v951_v3, %v1922_v60  ;;  %v1934_v11 = vadd.f32 %v871_v9, %v675_v0  ;;  %v1045_v13 = vadd.f32 %v1013_v2, %v1911_v48 }
 0x1f3   : > { %v1076_v12 = vmul.f32 0.7978846, %v1044_v5  ;;  %v1014_v14 = vmul.f32 0.044715, %v982_v6  ;;  %v952_v15 = vmul.f32 %v1931_v8, %v1931_v8 }
 0x1f4   : > { %v1015_v18 = vmul.f32 0.044715, %v983_v10  ;;  %v953_v19 = vmul.f32 %v1934_v11, %v1934_v11  ;;  %v875_v20 = vpop.f32.mrb[8].mxu1  ;;  %v1077_v28 = vmul.f32 0.7978846, %v1045_v13 }
 0x1f5   : > { %1528 = vtanh.f32 %v1076_v12  ;;  %v1046_v21 = vadd.f32 %v1014_v14, %v1919_v57  ;;  %v984_v22 = vmul.f32 %v952_v15, %v1931_v8  ;;  %v1943_v23 = vadd.f32 %v875_v20, %v680_v16  ;;  %v877_v24 = vpop.f32.mrb[9].mxu1  ;;  %v695_v14 = vpop.permute.xlu1 %694 }
 0x1f6   : > { %v1047_v25 = vadd.f32 %v1015_v18, %v1922_v60  ;;  %v985_v26 = vmul.f32 %v953_v19, %v1934_v11  ;;  %v1947_v27 = vadd.f32 %v877_v24, %v680_v16  ;;  %1530 = vtanh.f32 %v1075_v17 }
 0x1f7   : > { %v1078_v29 = vmul.f32 0.7978846, %v1046_v21  ;;  %v1016_v30 = vmul.f32 0.044715, %v984_v22  ;;  %v954_v31 = vmul.f32 %v1943_v23, %v1943_v23 }
 0x1f8   : > { %v1017_v33 = vmul.f32 0.044715, %v985_v26  ;;  %v955_v34 = vmul.f32 %v1947_v27, %v1947_v27  ;;  %v881_v35 = vpop.f32.mrb[10].mxu1  ;;  %v1079_v42 = vmul.f32 0.7978846, %v1047_v25 }
 0x1f9   : > { %1532 = vtanh.f32 %v1078_v29  ;;  %v1048_v36 = vadd.f32 %v1016_v30, %v1931_v8  ;;  %v986_v37 = vmul.f32 %v954_v31, %v1943_v23  ;;  %v1955_v39 = vadd.f32 %v881_v35, %v685_v32  ;;  %v883_v41 = vpop.f32.mrb[11].mxu1  ;;  %v700_v35 = vpop.permute.xlu0 %699 }
 0x1fa   : > { %v1049_v7 = vadd.f32 %v1017_v33, %v1934_v11  ;;  %v987_v43 = vmul.f32 %v955_v34, %v1947_v27  ;;  %v1959_v44 = vadd.f32 %v883_v41, %v685_v32  ;;  %1534 = vtanh.f32 %v1077_v28 }
 0x1fb   : > { %v1527_v46 = vpop.eup %1526  ;;  %v1080_v47 = vmul.f32 0.7978846, %v1048_v36  ;;  %v1018_v49 = vmul.f32 0.044715, %v986_v37  ;;  %v956_v50 = vmul.f32 %v1955_v39, %v1955_v39 }
 0x1fc   : > { %v1138_v52 = vadd.f32 1.0, %v1527_v46  ;;  %v1081_v53 = vmul.f32 0.7978846, %v1049_v7  ;;  %v1019_v54 = vmul.f32 0.044715, %v987_v43  ;;  %v957_v55 = vmul.f32 %v1959_v44, %v1959_v44  ;;  %v887_v56 = vpop.f32.mrb[12].mxu1 }
 0x1fd   : > { %1536 = vtanh.f32 %v1080_v47  ;;  %v1050_v58 = vadd.f32 %v1018_v49, %v1943_v23  ;;  %v988_v59 = vmul.f32 %v956_v50, %v1955_v39  ;;  %v1967_v61 = vadd.f32 %v887_v56, %v690_v51  ;;  %v889_v62 = vpop.f32.mrb[13].mxu1 }
 0x1fe   : > { %v1170_v63 = vmul.f32 0.5, %v1138_v52  ;;  %1538 = vtanh.f32 %v1079_v42  ;;  %v1051_v0 = vadd.f32 %v1019_v54, %v1947_v27  ;;  %v989_v1 = vmul.f32 %v957_v55, %v1959_v44 }
 0x1ff   : > { %v1529_v2 = vpop.eup %1528  ;;  %v1082_v3 = vmul.f32 0.7978846, %v1050_v58  ;;  %v1020_v4 = vmul.f32 0.044715, %v988_v59  ;;  %v958_v5 = vmul.f32 %v1967_v61, %v1967_v61  ;;  %v1973_v6 = vadd.f32 %v889_v62, %v690_v51  ;;  %v705_v59 = vpop.permute.xlu1 %704 }
 0x200   : > { %v1140_v9 = vadd.f32 1.0, %v1529_v2  ;;  %1540 = vtanh.f32 %v1081_v53  ;;  %v1083_v10 = vmul.f32 0.7978846, %v1051_v0  ;;  %v1021_v12 = vmul.f32 0.044715, %v989_v1  ;;  %v893_v13 = vpop.f32.mrb[14].mxu1  ;;  %v1979_v19 = vpop.eup %1530 }
 0x201   : > { %1542 = vtanh.f32 %v1082_v3  ;;  %v1052_v15 = vadd.f32 %v1020_v4, %v1955_v39  ;;  %v990_v16 = vmul.f32 %v958_v5, %v1967_v61  ;;  %v959_v17 = vmul.f32 %v1973_v6, %v1973_v6  ;;  %v895_v18 = vpop.f32.mrb[15].mxu1 }
 0x202   : > { %v1982_v20 = vmul.f32 %v1170_v63, %v1899_v38  ;;  %v1172_v21 = vmul.f32 0.5, %v1140_v9  ;;  %v1053_v22 = vadd.f32 %v1021_v12, %v1959_v44  ;;  %v1985_v24 = vadd.f32 %v893_v13, %v695_v14 }
 0x203   : > { %v1533_v25 = vpop.eup %1532  ;;  %v1084_v26 = vmul.f32 0.7978846, %v1052_v15  ;;  %v1022_v28 = vmul.f32 0.044715, %v990_v16  ;;  %v991_v29 = vmul.f32 %v959_v17, %v1973_v6  ;;  %v1988_v30 = vadd.f32 %v895_v18, %v695_v14 }
 0x204   : > { %v1142_v31 = vadd.f32 1.0, %v1533_v25  ;;  %1544 = vtanh.f32 %v1083_v10  ;;  %v1085_v32 = vmul.f32 0.7978846, %v1053_v22  ;;  %v960_v33 = vmul.f32 %v1985_v24, %v1985_v24  ;;  %v899_v38 = vpop.f32.mrb[16].mxu1  ;;  %v1535_v34 = vpop.eup %1534 }
 0x205   : > { %1546 = vtanh.f32 %v1084_v26  ;;  %v1054_v36 = vadd.f32 %v1022_v28, %v1967_v61  ;;  %v1023_v37 = vmul.f32 0.044715, %v991_v29  ;;  %v961_v41 = vmul.f32 %v1988_v30, %v1988_v30  ;;  %v901_v42 = vpop.f32.mrb[17].mxu1 }
 0x206   : > { %v1996_v7 = vmul.f32 %v1172_v21, %v1908_v45  ;;  %v1174_v43 = vmul.f32 0.5, %v1142_v31  ;;  %v992_v46 = vmul.f32 %v960_v33, %v1985_v24  ;;  %v1999_v47 = vadd.f32 %v899_v38, %v700_v35 }
 0x207   : > { %v1537_v49 = vpop.eup %1536  ;;  %v1086_v50 = vmul.f32 0.7978846, %v1054_v36  ;;  %v1055_v51 = vadd.f32 %v1023_v37, %v1973_v6  ;;  %v993_v52 = vmul.f32 %v961_v41, %v1988_v30  ;;  %v2003_v53 = vadd.f32 %v901_v42, %v700_v35 }
 0x208   : > { %v2005_v54 = vpop.eup %1538  ;;  %v1144_v55 = vadd.f32 1.0, %v1537_v49  ;;  %1548 = vtanh.f32 %v1085_v32  ;;  %v1024_v56 = vmul.f32 0.044715, %v992_v46  ;;  %v962_v45 = vmul.f32 %v1999_v47, %v1999_v47  ;;  %v905_v58 = vpop.f32.mrb[18].mxu1 }
 0x209   : > { %1550 = vtanh.f32 %v1086_v50  ;;  %v1087_v62 = vmul.f32 0.7978846, %v1055_v51  ;;  %v1025_v63 = vmul.f32 0.044715, %v993_v52  ;;  %v963_v0 = vmul.f32 %v2003_v53, %v2003_v53  ;;  %v907_v1 = vpop.f32.mrb[19].mxu1 }
 0x20a   : > { %v2011_v2 = vpop.eup %1540  ;;  %v2014_v3 = vmul.f32 %v1174_v43, %v1919_v57  ;;  %v1056_v4 = vadd.f32 %v1024_v56, %v1985_v24  ;;  %v994_v5 = vmul.f32 %v962_v45, %v1999_v47  ;;  %v2018_v9 = vadd.f32 %v905_v58, %v705_v59 }
 0x20b   : > { %v1543_v10 = vpop.eup %1542  ;;  %v1176_v12 = vmul.f32 0.5, %v1144_v55  ;;  %v1057_v13 = vadd.f32 %v1025_v63, %v1988_v30  ;;  %v995_v14 = vmul.f32 %v963_v0, %v2003_v53  ;;  %v2022_v15 = vadd.f32 %v907_v1, %v705_v59 }
 0x20c   : > { %v1146_v16 = vadd.f32 1.0, %v1543_v10  ;;  %1552 = vtanh.f32 %v1087_v62  ;;  %v1088_v17 = vmul.f32 0.7978846, %v1056_v4  ;;  %v1026_v18 = vmul.f32 0.044715, %v994_v5  ;;  %v911_v57 = vpop.f32.mrb[20].mxu1  ;;  %v715_v5 = vpop.permute.xlu1 %714 }
 0x20d   : > { %v1089_v21 = vmul.f32 0.7978846, %v1057_v13  ;;  %v1027_v22 = vmul.f32 0.044715, %v995_v14  ;;  %v964_v25 = vmul.f32 %v2018_v9, %v2018_v9  ;;  %v965_v26 = vmul.f32 %v2022_v15, %v2022_v15  ;;  %v913_v28 = vpop.f32.mrb[21].mxu1 }
 0x20e   : > { %v2028_v29 = vpop.eup %1544  ;;  %v1178_v31 = vmul.f32 0.5, %v1146_v16  ;;  %1554 = vtanh.f32 %v1088_v17  ;;  %v1058_v32 = vadd.f32 %v1026_v18, %v1999_v47  ;;  %v1139_v33 = vadd.f32 1.0, %v1979_v19 }
 0x20f   : > { %v1547_v38 = vpop.eup %1546  ;;  %v2033_v35 = vmul.f32 %v1176_v12, %v1931_v8  ;;  %v1059_v36 = vadd.f32 %v1027_v22, %v2003_v53  ;;  %v996_v37 = vmul.f32 %v964_v25, %v2018_v9  ;;  %v997_v41 = vmul.f32 %v965_v26, %v2022_v15  ;;  %v710_v8 = vpop.permute.xlu0 %709 }
 0x210   : > { %v1148_v42 = vadd.f32 1.0, %v1547_v38  ;;  %1556 = vtanh.f32 %v1089_v21  ;;  %v1090_v43 = vmul.f32 0.7978846, %v1058_v32  ;;  %v1141_v46 = vadd.f32 1.0, %v1535_v34  ;;  %v917_v49 = vpop.f32.mrb[22].mxu1 }
 0x211   : > { %v1091_v50 = vmul.f32 0.7978846, %v1059_v36  ;;  %v1028_v51 = vmul.f32 0.044715, %v996_v37  ;;  %v1029_v52 = vmul.f32 0.044715, %v997_v41  ;;  %v1458_v19 = vpack.c.bf16 %v1996_v7, %v1982_v20 }
 0x212   : > { %v2040_v55 = vpop.eup %1548  ;;  %v2043_v56 = vmul.f32 %v1178_v31, %v1943_v23  ;;  %1558 = vtanh.f32 %v1090_v43  ;;  %v1171_v45 = vmul.f32 0.5, %v1139_v33  ;;  %v1173_v58 = vmul.f32 0.5, %v1141_v46  ;;  %v919_v59 = vpop.f32.mrb[23].mxu1 }
 0x213   : > { %v1551_v62 = vpop.eup %1550  ;;  %v1180_v63 = vmul.f32 0.5, %v1148_v42  ;;  %v1060_v34 = vadd.f32 %v1028_v51, %v2018_v9  ;;  %v1061_v0 = vadd.f32 %v1029_v52, %v2022_v15  ;;  %v2047_v1 = vadd.f32 %v911_v57, %v710_v8 }
 0x214   : > { %v1150_v4 = vadd.f32 1.0, %v1551_v62  ;;  %1560 = vtanh.f32 %v1091_v50  ;;  %v1203_v20 = vmul.f32 %v1171_v45, %v1901_v40  ;;  %v1205_v7 = vmul.f32 %v1173_v58, %v1911_v48  ;;  %v923_v23 = vpop.f32.mrb[24].mxu1  ;;  %v720_v50 = vpop.permute.xlu0 %719 }
 0x215   : > { %v1092_v10 = vmul.f32 0.7978846, %v1060_v34  ;;  %v1093_v12 = vmul.f32 0.7978846, %v1061_v0  ;;  %v966_v13 = vmul.f32 %v2047_v1, %v2047_v1  ;;  %v2053_v14 = vadd.f32 %v913_v28, %v710_v8  ;;  %v925_v16 = vpop.f32.mrb[25].mxu1 }
 0x216   : > { %v2055_v17 = vpop.eup %1552  ;;  %v1182_v18 = vmul.f32 0.5, %v1150_v4  ;;  %v1456_v57 = vpack.c.bf16 %v1205_v7, %v1203_v20  ;;  %v2057_v21 = vadd.f32 %v917_v49, %v715_v5  ;;  %v2059_v22 = vadd.f32 %v919_v59, %v715_v5 }
 0x217   : > { %1562 = vtanh.f32 %v1092_v10  ;;  %v998_v40 = vmul.f32 %v966_v13, %v2047_v1  ;;  %v967_v48 = vmul.f32 %v2053_v14, %v2053_v14  ;;  %v1143_v25 = vadd.f32 1.0, %v2005_v54 }
 0x218   : > { %v1555_v26 = vpop.eup %1554  ;;  %v2066_v28 = vmul.f32 %v1180_v63, %v1955_v39  ;;  %v2069_v31 = vmul.f32 %v1182_v18, %v1967_v61  ;;  %1457 = vmatprep.subr.bf16.mxu0 %v1456_v57  ;;  %v968_v32 = vmul.f32 %v2057_v21, %v2057_v21  ;;  %v969_v33 = vmul.f32 %v2059_v22, %v2059_v22  ;;  %v929_v38 = vpop.f32.mrb[26].mxu1 }
 0x219   : > { %v1152_v36 = vadd.f32 1.0, %v1555_v26  ;;  %1459 = vmatpush1.bf16.msra.mxu0 %v1458_v19  ;;  %v1030_v37 = vmul.f32 0.044715, %v998_v40  ;;  %v999_v54 = vmul.f32 %v967_v48, %v2053_v14  ;;  %v1145_v41 = vadd.f32 1.0, %v2011_v2  ;;  %v931_v39 = vpop.f32.mrb[27].mxu1  ;;  %v725_v18 = vpop.permute.xlu1 %724 }
 0x21a   : > { %v2077_v42 = vpop.eup %1556  ;;  %v1000_v61 = vmul.f32 %v968_v32, %v2057_v21  ;;  %v1001_v43 = vmul.f32 %v969_v33, %v2059_v22  ;;  %v1175_v46 = vmul.f32 0.5, %v1143_v25  ;;  %v1462_v49 = vpack.c.bf16 %v2033_v35, %v2014_v3 }
 0x21b   : > { %1564 = vtanh.f32 %v1093_v12  ;;  %v1062_v51 = vadd.f32 %v1030_v37, %v2047_v1  ;;  %v1031_v52 = vmul.f32 0.044715, %v999_v54  ;;  %v1177_v19 = vmul.f32 0.5, %v1145_v41 }
 0x21c   : > { %v1559_v8 = vpop.eup %1558  ;;  %v1184_v45 = vmul.f32 0.5, %v1152_v36  ;;  %v1032_v2 = vmul.f32 0.044715, %v1000_v61  ;;  %v1033_v58 = vmul.f32 0.044715, %v1001_v43  ;;  %v2084_v59 = vadd.f32 %v923_v23, %v720_v50  ;;  %v935_v62 = vpop.f32.mrb[28].mxu1 }
 0x21d   : > { %v1154_v63 = vadd.f32 1.0, %v1559_v8  ;;  %v1094_v34 = vmul.f32 0.7978846, %v1062_v51  ;;  %v1063_v0 = vadd.f32 %v1031_v52, %v2053_v14  ;;  %v1207_v4 = vmul.f32 %v1175_v46, %v1922_v60  ;;  %v937_v3 = vpop.f32.mrb[29].mxu1 }
 0x21e   : > { %v2088_v35 = vpop.eup %1560  ;;  %v1064_v20 = vadd.f32 %v1032_v2, %v2057_v21  ;;  %v1065_v7 = vadd.f32 %v1033_v58, %v2059_v22  ;;  %v1209_v5 = vmul.f32 %v1177_v19, %v1934_v11  ;;  %v970_v23 = vmul.f32 %v2084_v59, %v2084_v59  ;;  %v730_v19 = vpop.permute.xlu0 %729 }
 0x21f   : > { %v1186_v10 = vmul.f32 0.5, %v1154_v63  ;;  %1566 = vtanh.f32 %v1094_v34  ;;  %v1095_v12 = vmul.f32 0.7978846, %v1063_v0  ;;  %v2095_v13 = vadd.f32 %v925_v16, %v720_v50  ;;  %v735_v0 = vpop.permute.xlu1 %734 }
 0x220   : > { %v1096_v57 = vmul.f32 0.7978846, %v1064_v20  ;;  %v1097_v60 = vmul.f32 0.7978846, %v1065_v7  ;;  %v1460_v40 = vpack.c.bf16 %v1209_v5, %v1207_v4  ;;  %v1002_v48 = vmul.f32 %v970_v23, %v2084_v59  ;;  %v941_v25 = vpop.f32.mrb[30].mxu1 }
 0x221   : > { %v1563_v26 = vpop.eup %1562  ;;  %v2099_v32 = vmul.f32 %v1184_v45, %v1985_v24  ;;  %v2102_v11 = vmul.f32 %v1186_v10, %v1999_v47  ;;  %v971_v33 = vmul.f32 %v2095_v13, %v2095_v13  ;;  %v2106_v36 = vadd.f32 %v929_v38, %v725_v18  ;;  %v943_v16 = vpop.f32.mrb[31].mxu1 }
 0x222   : > { %v1156_v37 = vadd.f32 1.0, %v1563_v26  ;;  %1568 = vtanh.f32 %v1096_v57  ;;  %1461 = vmatprep.subr.bf16.mxu0 %v1460_v40  ;;  %v1034_v54 = vmul.f32 0.044715, %v1002_v48  ;;  %v2108_v41 = vadd.f32 %v931_v39, %v725_v18 }
 0x223   : > { %1570 = vtanh.f32 %v1095_v12  ;;  %1463 = vmatpush1.bf16.msra.mxu0 %v1462_v49  ;;  %v1003_v24 = vmul.f32 %v971_v33, %v2095_v13  ;;  %v972_v47 = vmul.f32 %v2106_v36, %v2106_v36  ;;  %v1147_v61 = vadd.f32 1.0, %v2028_v29 }
 0x224   : > { %1572 = vtanh.f32 %v1097_v60  ;;  %v1066_v38 = vadd.f32 %v1034_v54, %v2084_v59  ;;  %v973_v43 = vmul.f32 %v2108_v41, %v2108_v41  ;;  %v1149_v46 = vadd.f32 1.0, %v2040_v55 }
 0x225   : > { %v2118_v50 = vpop.eup %1564  ;;  %v1035_v39 = vmul.f32 0.044715, %v1003_v24  ;;  %v1004_v49 = vmul.f32 %v972_v47, %v2106_v36  ;;  %v1179_v51 = vmul.f32 0.5, %v1147_v61  ;;  %v1466_v52 = vpack.c.bf16 %v2066_v28, %v2043_v56 }
 0x226   : > { %v1188_v8 = vmul.f32 0.5, %v1156_v37  ;;  %v1098_v29 = vmul.f32 0.7978846, %v1066_v38  ;;  %v1005_v45 = vmul.f32 %v973_v43, %v2108_v41  ;;  %v1181_v2 = vmul.f32 0.5, %v1149_v46 }
 0x227   : > { %v1067_v58 = vadd.f32 %v1035_v39, %v2095_v13  ;;  %v1036_v63 = vmul.f32 0.044715, %v1004_v49  ;;  %v1211_v55 = vmul.f32 %v1179_v51, %v1947_v27  ;;  %v2126_v34 = vadd.f32 %v935_v62, %v730_v19 }
 0x228   : > { %1574 = vtanh.f32 %v1098_v29  ;;  %v1037_v4 = vmul.f32 0.044715, %v1005_v45  ;;  %v1213_v20 = vmul.f32 %v1181_v2, %v1959_v44  ;;  %v2129_v7 = vadd.f32 %v937_v3, %v730_v19 }
 0x229   : > { %v1567_v56 = vpop.eup %1566  ;;  %v1099_v28 = vmul.f32 0.7978846, %v1067_v58  ;;  %v1068_v5 = vadd.f32 %v1036_v63, %v2106_v36  ;;  %v974_v23 = vmul.f32 %v2126_v34, %v2126_v34  ;;  %v2134_v10 = vadd.f32 %v941_v25, %v735_v0 }
 0x22a   : > { %v1158_v12 = vadd.f32 1.0, %v1567_v56  ;;  %v1069_v27 = vadd.f32 %v1037_v4, %v2108_v41  ;;  %v1464_v62 = vpack.c.bf16 %v1213_v20, %v1211_v55  ;;  %v975_v18 = vmul.f32 %v2129_v7, %v2129_v7 }
 0x22b   : > { %v2140_v44 = vmul.f32 %v1188_v8, %v2018_v9  ;;  %v1100_v3 = vmul.f32 0.7978846, %v1068_v5  ;;  %v1006_v57 = vmul.f32 %v974_v23, %v2126_v34  ;;  %v976_v60 = vmul.f32 %v2134_v10, %v2134_v10 }
 0x22c   : > { %v1569_v40 = vpop.eup %1568  ;;  %1576 = vtanh.f32 %v1099_v28  ;;  %v1101_v48 = vmul.f32 0.7978846, %v1069_v27  ;;  %1465 = vmatprep.subr.bf16.mxu0 %v1464_v62  ;;  %v1007_v25 = vmul.f32 %v975_v18, %v2129_v7  ;;  %v2146_v26 = vadd.f32 %v943_v16, %v735_v0 }
 0x22d   : > { %v1571_v33 = vpop.eup %1570  ;;  %v1160_v37 = vadd.f32 1.0, %v1569_v40  ;;  %1578 = vtanh.f32 %v1100_v3  ;;  %1467 = vmatpush1.bf16.msra.mxu0 %v1466_v52  ;;  %v1038_v9 = vmul.f32 0.044715, %v1006_v57  ;;  %v1008_v54 = vmul.f32 %v976_v60, %v2134_v10 }
 0x22e   : > { %v1573_v24 = vpop.eup %1572  ;;  %v1190_v47 = vmul.f32 0.5, %v1158_v12  ;;  %1580 = vtanh.f32 %v1101_v48  ;;  %v1039_v61 = vmul.f32 0.044715, %v1007_v25  ;;  %v977_v38 = vmul.f32 %v2146_v26, %v2146_v26 }
 0x22f   : > { %v1192_v43 = vmul.f32 0.5, %v1160_v37  ;;  %v1070_v46 = vadd.f32 %v1038_v9, %v2126_v34  ;;  %v1040_v39 = vmul.f32 0.044715, %v1008_v54  ;;  %v1151_v16 = vadd.f32 1.0, %v2055_v17 }
 0x230   : > { %v1071_v49 = vadd.f32 %v1039_v61, %v2129_v7  ;;  %v1009_v51 = vmul.f32 %v977_v38, %v2146_v26  ;;  %v1153_v52 = vadd.f32 1.0, %v2077_v42  ;;  %v1470_v19 = vpack.c.bf16 %v2099_v32, %v2069_v31 }
 0x231   : > { %v2159_v8 = vmul.f32 %v1192_v43, %v2057_v21  ;;  %v1102_v29 = vmul.f32 0.7978846, %v1070_v46  ;;  %v1072_v45 = vadd.f32 %v1040_v39, %v2134_v10  ;;  %v1183_v2 = vmul.f32 0.5, %v1151_v16 }
 0x232   : > { %v1575_v58 = vpop.eup %1574  ;;  %v1103_v63 = vmul.f32 0.7978846, %v1071_v49  ;;  %v1041_v55 = vmul.f32 0.044715, %v1009_v51  ;;  %v1185_v17 = vmul.f32 0.5, %v1153_v52  ;;  %v1155_v0 = vadd.f32 1.0, %v2088_v35 }
 0x233   : > { %v1162_v4 = vadd.f32 1.0, %v1575_v58  ;;  %1582 = vtanh.f32 %v1102_v29  ;;  %v1104_v20 = vmul.f32 0.7978846, %v1072_v45  ;;  %v1215_v42 = vmul.f32 %v1183_v2, %v1973_v6 }
 0x234   : > { %1584 = vtanh.f32 %v1103_v63  ;;  %v1073_v31 = vadd.f32 %v1041_v55, %v2146_v26  ;;  %v1217_v21 = vmul.f32 %v1185_v17, %v1988_v30  ;;  %v1157_v32 = vadd.f32 1.0, %v2118_v50  ;;  %v1234_v55 = vld [vmem:[%s2200_s7] sm:$0x7]  ;;  %v1239_v17 = vpop.permute.xlu0 %1238 }
 0x235   : > { %v1222_v56 = vmul.f32 %v1190_v47, %v2047_v1  ;;  %1586 = vtanh.f32 %v1104_v20  ;;  %v1187_v28 = vmul.f32 0.5, %v1155_v0  ;;  %v1474_v5 = vpack.c.bf16 %v2140_v44, %v2102_v11 }
 0x236   : > { %v1577_v35 = vpop.eup %1576  ;;  %v1105_v23 = vmul.f32 0.7978846, %v1073_v31  ;;  %v1468_v12 = vpack.c.bf16 %v1217_v21, %v1215_v42  ;;  %v1189_v27 = vmul.f32 0.5, %v1157_v32  ;;  %v1159_v62 = vadd.f32 1.0, %v1571_v33 }
 0x237   : > { %v1579_v6 = vpop.eup %1578  ;;  %v1194_v18 = vmul.f32 0.5, %v1162_v4  ;;  %v1219_v3 = vmul.f32 %v1187_v28, %v2003_v53  ;;  %v1161_v57 = vadd.f32 1.0, %v1573_v24  ;;  %v1478_v30 = vpack.c.bf16 %v2159_v8, %v1222_v56 }
 0x238   : > { %v1581_v50 = vpop.eup %1580  ;;  %v1164_v60 = vadd.f32 1.0, %v1579_v6  ;;  %1588 = vtanh.f32 %v1105_v23  ;;  %1469 = vmatprep.subr.bf16.mxu0 %v1468_v12  ;;  %v1221_v1 = vmul.f32 %v1189_v27, %v2022_v15  ;;  %v1191_v40 = vmul.f32 0.5, %v1159_v62 }
 0x239   : > { %1471 = vmatpush1.bf16.msra.mxu0 %v1470_v19  ;;  %v1193_v11 = vmul.f32 0.5, %v1161_v57  ;;  %v1163_v44 = vadd.f32 1.0, %v1577_v35  ;;  %v1165_v48 = vadd.f32 1.0, %v1581_v50  ;;  %v1226_v24 = vmul.f32 %v1194_v18, %v2084_v59 }
 0x23a   : > { %v1196_v25 = vmul.f32 0.5, %v1164_v60  ;;  %v1472_v33 = vpack.c.bf16 %v1221_v1, %v1219_v3  ;;  %v1223_v37 = vmul.f32 %v1191_v40, %v2053_v14 }
 0x23b   : > { %v1225_v53 = vmul.f32 %v1193_v11, %v2059_v22  ;;  %v1195_v9 = vmul.f32 0.5, %v1163_v44  ;;  %v1197_v54 = vmul.f32 0.5, %v1165_v48 }
 0x23c   : > { %v1228_v47 = vmul.f32 %v1196_v25, %v2106_v36  ;;  %1473 = vmatprep.subr.bf16.mxu0 %v1472_v33 }
 0x23d   : > { %v1583_v61 = vpop.eup %1582  ;;  %1475 = vmatpush1.bf16.msra.mxu0 %v1474_v5  ;;  %v1476_v15 = vpack.c.bf16 %v1225_v53, %v1223_v37  ;;  %v1227_v38 = vmul.f32 %v1195_v9, %v2095_v13  ;;  %v1229_v43 = vmul.f32 %v1197_v54, %v2108_v41 }
 0x23e   : > { %v1585_v46 = vpop.eup %1584  ;;  %v1166_v39 = vadd.f32 1.0, %v1583_v61  ;;  %v1482_v16 = vpack.c.bf16 %v1228_v47, %v1226_v24 }
 0x23f   : > { %v1587_v14 = vpop.eup %1586  ;;  %1477 = vmatprep.subr.bf16.mxu0 %v1476_v15  ;;  %v1480_v22 = vpack.c.bf16 %v1229_v43, %v1227_v38  ;;  %v1167_v49 = vadd.f32 1.0, %v1585_v46 }
 0x240   : > { %v1198_v51 = vmul.f32 0.5, %v1166_v39  ;;  %v1168_v52 = vadd.f32 1.0, %v1587_v14 }
 0x241   : > { %1479 = vmatpush1.bf16.msra.mxu0 %v1478_v30  ;;  %v1199_v8 = vmul.f32 0.5, %v1167_v49 }
 0x242   : > { %v1589_v59 = vpop.eup %1588  ;;  %v1200_v36 = vmul.f32 0.5, %v1168_v52  ;;  %1481 = vmatprep.subr.bf16.mxu0 %v1480_v22  ;;  %v1230_v13 = vmul.f32 %v1198_v51, %v2126_v34 }
 0x243   : > { %v1169_v19 = vadd.f32 1.0, %v1589_v59  ;;  %v1231_v2 = vmul.f32 %v1199_v8, %v2129_v7 }
 0x244   : > { %v1232_v41 = vmul.f32 %v1200_v36, %v2134_v10 }
 0x245   : > { %1483 = vmatpush1.bf16.msra.mxu0 %v1482_v16  ;;  %v1201_v29 = vmul.f32 0.5, %v1169_v19 }
 0x246   : > { %v1486_v45 = vpack.c.bf16 %v1232_v41, %v1230_v13 }
 0x247   : > { %v1233_v58 = vmul.f32 %v1201_v29, %v2146_v26 }
 0x249   : > { %v1484_v63 = vpack.c.bf16 %v1233_v58, %v1231_v2 }
 0x24b   : > { %1485 = vmatprep.subr.bf16.mxu0 %v1484_v63 }
 0x24c   : > { %1487 = vmatpush1.bf16.msra.mxu0 %v1486_v45 }
 0x24f   : > { %1306 = vmatmul.mubr.f32.vlgmr.msra.gmra.mrb[8].mxu0 %v1234_v55 }
 0x322   : > { %v1307_v0 = vpop.f32.mrb[8].mxu0 }
 0x323   : > { %v1308_v34 = vadd.f32 %v1307_v0, %v1239_v17  ;;  %v1309_v10 = vpop.f32.mrb[9].mxu0 }
 0x324   : > { %v1310_v4 = vadd.f32 %v1309_v10, %v1239_v17 }
 0x326   : > { %v1314_v7 = vcombine.low %v1308_v34, %v1310_v4 }
 0x328   : > { %1316 = vst [vmem:[%s352_s24] sm:$0x77] %v1314_v7 }
 0x329 PF: > { %s19_s30 = sadd.s32 1, %s1596_s30  }
 0x32a   : > { %p16_p4 = scmp.ge.s32.totalorder %s19_s30, 4  }
 0x32c   :  { %18 = sbr.rel (!%p16_p4) target bundleno = 1 (0x1), region = 89 }

// kernel: recursive_fno_forward.20
= control target key start
LH: loop header
LB: loop body
LE: loop exit
PB: predicated region body
PF: predicated region fallthrough
CT: control target
= control target key end

     0   :  { %s672_s15 = smov 0   ;;  %s823_s0 = inlined_call_operand.vmem [shape: f32[2,3,256], index: 0, kind: input, shape index: {}]   ;;  %s824_s1 = inlined_call_operand.vmem [shape: f32[32,3], index: 1, kind: input, shape index: {}]   ;;  %s825_s2 = inlined_call_operand.vmem [shape: f32[32,1], index: 2, kind: input, shape index: {}]   ;;  %s826_s3 = inlined_call_operand.vmem [shape: f32[256,64], index: 3, kind: input, shape index: {}]   ;;  %s827_s4 = inlined_call_operand.vmem [shape: f32[2,32,64], index: 4, kind: output, shape index: {}]  }
   0x1 LB: > { %s513_s16 = sadd.s32 4294967295, %s643_s15   ;;  %p517_p0 = scmp.ge.s32.totalorder %s643_s15, 1  ;;  %s643_s15 = sphi %s672_s15, %s14_s15  }
   0x2   : > { %p162_p1 = scmp.lt.s32.totalorder %s643_s15, 3 }
   0x4   : > { %p163_p2 = pnand %p517_p0, %p162_p1 }
   0x5   : > { %p188_p3 = scmp.lt.s32.totalorder (!%p163_p2), %s513_s16, 1  ;;  %v645_v0 = vmov (!%p163_p2), 0.0   ;;  %v203_v1 = vld [vmem:[%s825_s2] sm:$0xff] (!%p163_p2)  ;;  %v646_v2 = vmov (!%p163_p2), 0   ;;  %v204_v3 = vld [vmem:[%s825_s2 + $0x8] sm:$0xff] (!%p163_p2)  ;;  %v205_v4 = vld [vmem:[%s825_s2 + $0x10] sm:$0xff] (!%p163_p2) }
   0x6   : > { %166 = sbr.rel (%p163_p2) target bundleno = 465 (0x1d1), region = 36  ;;  %311 = vmatprep.mubr.f32.mxu0 (!%p163_p2), %v645_v0  ;;  %635 = vset.pattern.permute.xlu1 (!%p163_p2), %v646_v2  ;;  %v206_v5 = vld [vmem:[%s825_s2 + $0x18] sm:$0xff] (!%p163_p2)  ;;  %v352_v6 = vld [vmem:[%s826_s3 + $0x80] sm:$0xff] (!%p163_p2)  ;;  %v353_v7 = vld [vmem:[%s826_s3 + $0x88] sm:$0xff] (!%p163_p2)  ;;  %vm242_vm0 = vcmask (!%p163_p2), 1042432   ;;  %vm229_vm1 = vcmask (!%p163_p2), 23552  }
   0x7   : > { %634 = vset.pattern.permute.xlu0 (!%p163_p2), %v646_v2  ;;  %209 = vperm.xlu1 (!%p163_p2), %635, %v203_v1   ;;  %v336_v8 = vld [vmem:[%s826_s3] sm:$0xff] (!%p163_p2)  ;;  %v576_v9 = vpack.c.bf16 (!%p163_p2), %v353_v7, %v352_v6  ;;  %v337_v10 = vld [vmem:[%s826_s3 + $0x8] sm:$0xff] (!%p163_p2)  ;;  %v354_v11 = vld [vmem:[%s826_s3 + $0x90] sm:$0xff] (!%p163_p2)  ;;  %vm453_vm2 = vcmask (!%p163_p2), 523264  }
   0x8   : > { %214 = vperm.xlu0 (!%p163_p2), %634, %v204_v3   ;;  %v355_v12 = vld [vmem:[%s826_s3 + $0x98] sm:$0xff] (!%p163_p2)  ;;  %v578_v14 = vpack.c.bf16 (!%p163_p2), %v337_v10, %v336_v8  ;;  %v198_v17 = vld [vmem:[%s824_s1] sm:$0xff] (!%p163_p2)  ;;  %v338_v18 = vld [vmem:[%s826_s3 + $0x10] sm:$0xff] (!%p163_p2) }
   0x9   : > { %608 = vmatprep.subr.bf16.mxu1 (!%p163_p2), %v576_v9  ;;  %v580_v16 = vpack.c.bf16 (!%p163_p2), %v355_v12, %v354_v11  ;;  %v339_v19 = vld [vmem:[%s826_s3 + $0x18] sm:$0xff] (!%p163_p2)  ;;  %v356_v20 = vld [vmem:[%s826_s3 + $0xa0] sm:$0xff] (!%p163_p2)  ;;  %v357_v21 = vld [vmem:[%s826_s3 + $0xa8] sm:$0xff] (!%p163_p2) }
   0xa   : > { %616 = vmatpush3.bf16.msra.mxu1 (!%p163_p2), %v578_v14  ;;  %v582_v22 = vpack.c.bf16 (!%p163_p2), %v339_v19, %v338_v18  ;;  %v199_v23 = vld [vmem:[%s824_s1 + $0x8] sm:$0xff] (!%p163_p2)  ;;  %v584_v24 = vpack.c.bf16 (!%p163_p2), %v357_v21, %v356_v20  ;;  %v340_v25 = vld [vmem:[%s826_s3 + $0x20] sm:$0xff] (!%p163_p2)  ;;  %v358_v27 = vld [vmem:[%s826_s3 + $0xb0] sm:$0xff] (!%p163_p2) }
   0xb   : > { %224 = vperm.xlu1 (!%p163_p2), %635, %v206_v5   ;;  %609 = vmatprep.subr.bf16.mxu1 (!%p163_p2), %v580_v16  ;;  %v341_v26 = vld [vmem:[%s826_s3 + $0x28] sm:$0xff] (!%p163_p2)  ;;  %v359_v28 = vld [vmem:[%s826_s3 + $0xb8] sm:$0xff] (!%p163_p2)  ;;  %v200_v30 = vld [vmem:[%s824_s1 + $0x10] sm:$0xff] (!%p163_p2) }
   0xc   : > { %219 = vperm.xlu0 (!%p163_p2), %634, %v205_v4   ;;  %v586_v29 = vpack.c.bf16 (!%p163_p2), %v341_v26, %v340_v25  ;;  %v588_v31 = vpack.c.bf16 (!%p163_p2), %v359_v28, %v358_v27  ;;  %v342_v32 = vld [vmem:[%s826_s3 + $0x30] sm:$0xff] (!%p163_p2)  ;;  %v343_v33 = vld [vmem:[%s826_s3 + $0x38] sm:$0xff] (!%p163_p2)  ;;  %v360_v34 = vld [vmem:[%s826_s3 + $0xc0] sm:$0xff] (!%p163_p2) }
   0xd   : > { %s829_s16 = smov (!%p188_p3, %s513_s16), 1  ;;  %v361_v35 = vld [vmem:[%s826_s3 + $0xc8] sm:$0xff]  ;;  %v590_v36 = vpack.c.bf16 %v343_v33, %v342_v32  ;;  %v201_v37 = vld [vmem:[%s824_s1 + $0x18] sm:$0xff]  ;;  %v344_v39 = vld [vmem:[%s826_s3 + $0x40] sm:$0xff] }
   0xe   : > { %s530_s5 = sshll.u32 %s829_s16, 3  ;;  %617 = vmatpush3.bf16.msra.mxu1 %v582_v22  ;;  %v592_v38 = vpack.c.bf16 %v361_v35, %v360_v34  ;;  %v345_v40 = vld [vmem:[%s826_s3 + $0x48] sm:$0xff]  ;;  %v362_v41 = vld [vmem:[%s826_s3 + $0xd0] sm:$0xff]  ;;  %v363_v42 = vld [vmem:[%s826_s3 + $0xd8] sm:$0xff]  ;;  %s531_s29 = sshll.u32 %s829_s16, 5 }
   0xf   : > { %s192_s14 = scalar_lea.vmem %s823_s0, %s530_s5  ;;  %610 = vmatprep.subr.bf16.mxu1 %v584_v24  ;;  %v594_v43 = vpack.c.bf16 %v345_v40, %v344_v39  ;;  %v596_v44 = vpack.c.bf16 %v363_v42, %v362_v41  ;;  %v346_v45 = vld [vmem:[%s826_s3 + $0x50] sm:$0xff]  ;;  %v347_v46 = vld [vmem:[%s826_s3 + $0x58] sm:$0xff]  ;;  %v364_v47 = vld [vmem:[%s826_s3 + $0xe0] sm:$0xff]  ;;  %s197_s6 = scalar_lea.vmem %s827_s4, %s531_s29 }
  0x10   : > { %v202_v13 = vld [vmem:[%s192_s14] sm:$0x77]  ;;  %v365_v48 = vld [vmem:[%s826_s3 + $0xe8] sm:$0xff]  ;;  %v598_v49 = vpack.c.bf16 %v347_v46, %v346_v45  ;;  %v366_v54 = vld [vmem:[%s826_s3 + $0xf0] sm:$0xff] }
  0x11   : > { %v228_v15 = vcombine.high %v202_v13, %v202_v13  ;;  %v600_v50 = vpack.c.bf16 %v365_v48, %v364_v47  ;;  %v348_v51 = vld [vmem:[%s826_s3 + $0x60] sm:$0xff]  ;;  %v349_v52 = vld [vmem:[%s826_s3 + $0x68] sm:$0xff]  ;;  %v367_v55 = vld [vmem:[%s826_s3 + $0xf8] sm:$0xff] }
  0x12   : > { %618 = vmatpush3.bf16.msra.mxu1 %v586_v29  ;;  %v602_v53 = vpack.c.bf16 %v349_v52, %v348_v51  ;;  %v604_v56 = vpack.c.bf16 %v367_v55, %v366_v54  ;;  %v350_v57 = vld [vmem:[%s826_s3 + $0x70] sm:$0xff]  ;;  %v351_v58 = vld [vmem:[%s826_s3 + $0x78] sm:$0xff] }
  0x13   : > { %522 = vmatprep.subr.msk.mxu0 %vm242_vm0, %v228_v15  ;;  %611 = vmatprep.subr.bf16.mxu1 %v588_v31  ;;  %v606_v59 = vpack.c.bf16 %v351_v58, %v350_v57 }
  0x14   : > { %523 = vmatpush1.msk.msra.mxu0 %vm242_vm0, %v202_v13 }
  0x15   : > { %524 = vmatmul.mubr.msk.f32.vlgmr.msra.gmra.mrb[0].mxu0 %vm229_vm1, %v198_v17  ;;  %577 = vmatprep.subr.bf16.mxu0 %v576_v9 }
  0x16   : > { %317 = vmatprep.mubr.f32.mxu0 %v645_v0  ;;  %579 = vmatpush3.bf16.msra.mxu0 %v578_v14 }
  0x17   : > { %581 = vmatprep.subr.bf16.mxu0 %v580_v16  ;;  %619 = vmatpush3.bf16.msra.mxu1 %v590_v36 }
  0x18   : > { %612 = vmatprep.subr.bf16.mxu1 %v592_v38 }
  0x19   : > { %525 = vmatmul.mubr.msk.f32.gmra.mrb[2].mxu0 %vm229_vm1, %v199_v23 }
  0x1a   : > { %323 = vmatprep.mubr.f32.mxu0 %v645_v0  ;;  %583 = vmatpush3.bf16.msra.mxu0 %v582_v22 }
  0x1b   : > { %585 = vmatprep.subr.bf16.mxu0 %v584_v24  ;;  %620 = vmatpush3.bf16.msra.mxu1 %v594_v43 }
  0x1c   : > { %613 = vmatprep.subr.bf16.mxu1 %v596_v44 }
  0x1d   : > { %526 = vmatmul.mubr.msk.f32.gmra.mrb[4].mxu0 %vm229_vm1, %v200_v30 }
  0x1e   : > { %329 = vmatprep.mubr.f32.mxu0 %v645_v0  ;;  %587 = vmatpush3.bf16.msra.mxu0 %v586_v29 }
  0x1f   : > { %589 = vmatprep.subr.bf16.mxu0 %v588_v31  ;;  %621 = vmatpush3.bf16.msra.mxu1 %v598_v49 }
  0x20   : > { %614 = vmatprep.subr.bf16.mxu1 %v600_v50 }
  0x21   : > { %527 = vmatmul.mubr.msk.f32.gmra.mrb[6].mxu0 %vm229_vm1, %v201_v37 }
  0x22   : > { %591 = vmatpush3.bf16.msra.mxu0 %v590_v36 }
  0x23   : > { %593 = vmatprep.subr.bf16.mxu0 %v592_v38  ;;  %622 = vmatpush3.bf16.msra.mxu1 %v602_v53 }
  0x24   : > { %615 = vmatprep.subr.bf16.mxu1 %v604_v56 }
  0x26   : > { %595 = vmatpush3.bf16.msra.mxu0 %v594_v43 }
  0x27   : > { %597 = vmatprep.subr.bf16.mxu0 %v596_v44  ;;  %623 = vmatpush3.bf16.msra.mxu1 %v606_v59 }
  0x2a   : > { %599 = vmatpush3.bf16.msra.mxu0 %v598_v49 }
  0x2b   : > { %601 = vmatprep.subr.bf16.mxu0 %v600_v50 }
  0x2e   : > { %603 = vmatpush3.bf16.msra.mxu0 %v602_v53 }
  0x2f   : > { %605 = vmatprep.subr.bf16.mxu0 %v604_v56 }
  0x32   : > { %607 = vmatpush3.bf16.msra.mxu0 %v606_v59 }
  0x86   : > { %v210_v60 = vpop.permute.xlu1 %209 }
  0x87   : > { %v215_v1 = vpop.permute.xlu0 %214 }
  0x8a   : > { %v225_v12 = vpop.permute.xlu1 %224 }
  0x8b   : > { %v220_v7 = vpop.permute.xlu0 %219 }
  0xe8   : > { %v313_v61 = vpop.f32.mrb[0].mxu0 }
  0xe9   : > { %v315_v62 = vpop.f32.mrb[1].mxu0  ;;  %v314_v0 = vadd.f32 %v313_v61, %v210_v60 }
  0xea   : > { %v316_v63 = vadd.f32 %v315_v62, %v210_v60 }
  0xec   : > { %v319_v2 = vpop.f32.mrb[2].mxu0  ;;  %432 = vmatprep.mubr.f32.mxu0 %v316_v63 }
  0xed   : > { %v321_v3 = vpop.f32.mrb[3].mxu0  ;;  %433 = vmatmul.mubr.f32.vlgmr.msra.gmra.mrb[8].mxu0 %v314_v0  ;;  %v320_v5 = vadd.f32 %v319_v2, %v215_v1 }
  0xee   : > { %v322_v4 = vadd.f32 %v321_v3, %v215_v1 }
  0xf0   : > { %v325_v6 = vpop.f32.mrb[4].mxu0  ;;  %437 = vmatprep.mubr.f32.mxu1 %v322_v4 }
  0xf1   : > { %v327_v8 = vpop.f32.mrb[5].mxu0  ;;  %438 = vmatmul.mubr.f32.vlgmr.msra.gmra.mrb[0].mxu1 %v320_v5  ;;  %v326_v10 = vadd.f32 %v325_v6, %v220_v7 }
  0xf2   : > { %v328_v9 = vadd.f32 %v327_v8, %v220_v7 }
  0xf4   : > { %v331_v11 = vpop.f32.mrb[6].mxu0  ;;  %442 = vmatprep.mubr.f32.mxu1 %v328_v9 }
  0xf5   : > { %v333_v13 = vpop.f32.mrb[7].mxu0  ;;  %443 = vmatmul.mubr.f32.gmra.mrb[2].mxu1 %v326_v10  ;;  %v332_v15 = vadd.f32 %v331_v11, %v225_v12 }
  0xf6   : > { %v334_v14 = vadd.f32 %v333_v13, %v225_v12 }
  0xf8   : > { %447 = vmatprep.mubr.f32.mxu1 %v334_v14 }
  0xf9   : > { %448 = vmatmul.mubr.f32.gmra.mrb[4].mxu1 %v332_v15 }
 0x1c0   : > { %v564_v16 = vpop.f32.mrb[8].mxu0 }
 0x1c1   : > { %v565_v17 = vpop.f32.mrb[9].mxu0 }
 0x1c2   : > { %v566_v18 = vadd.f32 %v565_v17, %v564_v16 }
 0x1c4   : > { %454 = vst.msk [vmem:[%s197_s6] sm:$0xff] %vm453_vm2, %v566_v18  ;;  %v567_v19 = vpop.f32.mrb[0].mxu1 }
 0x1c5   : > { %v568_v20 = vpop.f32.mrb[1].mxu1 }
 0x1c6   : > { %v569_v21 = vadd.f32 %v568_v20, %v567_v19 }
 0x1c8   : > { %455 = vst.msk [vmem:[%s197_s6 + $0x8] sm:$0xff] %vm453_vm2, %v569_v21  ;;  %v570_v22 = vpop.f32.mrb[2].mxu1 }
 0x1c9   : > { %v571_v23 = vpop.f32.mrb[3].mxu1 }
 0x1ca   : > { %v572_v24 = vadd.f32 %v571_v23, %v570_v22 }
 0x1cc   : > { %456 = vst.msk [vmem:[%s197_s6 + $0x10] sm:$0xff] %vm453_vm2, %v572_v24  ;;  %v573_v25 = vpop.f32.mrb[4].mxu1 }
 0x1cd   : > { %v574_v26 = vpop.f32.mrb[5].mxu1 }
 0x1ce   : > { %v575_v27 = vadd.f32 %v574_v26, %v573_v25 }
 0x1d0   : > { %457 = vst.msk [vmem:[%s197_s6 + $0x18] sm:$0xff] %vm453_vm2, %v575_v27 }
 0x1d1 PF: > { %s14_s15 = sadd.s32 1, %s643_s15  }
 0x1d2   : > { %p11_p4 = scmp.ge.s32.totalorder %s14_s15, 4  }
 0x1d4   :  { %13 = sbr.rel (!%p11_p4) target bundleno = 1 (0x1), region = 66 }

// kernel: recursive_fno_forward.21
= control target key start
LH: loop header
LB: loop body
LE: loop exit
PB: predicated region body
PF: predicated region fallthrough
CT: control target
= control target key end

     0   :  { %s1331_s30 = smov 0   ;;  %s1643_s0 = inlined_call_operand.vmem [shape: f32[2,3,256], index: 0, kind: input, shape index: {}]   ;;  %s1644_s1 = inlined_call_operand.vmem [shape: f32[32,3], index: 1, kind: input, shape index: {}]   ;;  %s1645_s2 = inlined_call_operand.vmem [shape: f32[32,1], index: 2, kind: input, shape index: {}]   ;;  %s1646_s3 = inlined_call_operand.vmem [shape: f32[2,32,64], index: 3, kind: input, shape index: {}]   ;;  %s1647_s4 = inlined_call_operand.vmem [shape: f32[64,256], index: 4, kind: input, shape index: {}]   ;;  %s1648_s5 = inlined_call_operand.vmem [shape: f32[32,32], index: 5, kind: input, shape index: {}]   ;;  %s1649_s6 = inlined_call_operand.vmem [shape: f32[32,1], index: 6, kind: input, shape index: {}]   ;;  %s1650_s7 = inlined_call_operand.vmem [shape: f32[256,64], index: 7, kind: input, shape index: {}]   ;;  %s1651_s8 = inlined_call_operand.vmem [shape: bf16[2,32,256], index: 8, kind: output, shape index: {0}]   ;;  %s1652_s9 = inlined_call_operand.vmem [shape: f32[2,32,64], index: 9, kind: output, shape index: {1}]  }
   0x1 LB: > { %s1085_s10 = sadd.s32 4294967295, %s1277_s30   ;;  %p1089_p0 = scmp.ge.s32.totalorder %s1277_s30, 1  ;;  %s1277_s30 = sphi %s1331_s30, %s20_s30  }
   0x2   : > { %p300_p1 = scmp.lt.s32.totalorder %s1277_s30, 3 }
   0x4   : > { %p301_p2 = pnand %p1089_p0, %p300_p1 }
   0x5   : > { %p346_p3 = scmp.lt.s32.totalorder (!%p301_p2), %s1085_s10, 1  ;;  %v1279_v0 = vmov (!%p301_p2), 0.0   ;;  %v371_v1 = vld [vmem:[%s1645_s2] sm:$0xff] (!%p301_p2)  ;;  %v1280_v2 = vmov (!%p301_p2), 0   ;;  %v373_v3 = vld [vmem:[%s1645_s2 + $0x10] sm:$0xff] (!%p301_p2)  ;;  %v372_v4 = vld [vmem:[%s1645_s2 + $0x8] sm:$0xff] (!%p301_p2) }
   0x6   : > { %304 = sbr.rel (%p301_p2) target bundleno = 725 (0x2d5), region = 52  ;;  %479 = vmatprep.mubr.f32.mxu0 (!%p301_p2), %v1279_v0  ;;  %601 = vmatprep.mubr.f32.mxu1 (!%p301_p2), %v1279_v0  ;;  %v374_v5 = vld [vmem:[%s1645_s2 + $0x18] sm:$0xff] (!%p301_p2)  ;;  %v509_v6 = vld [vmem:[%s1647_s4 + $0x8] sm:$0xff] (!%p301_p2)  ;;  %v508_v9 = vld [vmem:[%s1647_s4] sm:$0xff] (!%p301_p2)  ;;  %vm410_vm0 = vcmask (!%p301_p2), 1042432   ;;  %vm397_vm1 = vcmask (!%p301_p2), 23552  }
   0x7   : > { %1252 = vset.pattern.permute.xlu0 (!%p301_p2), %v1280_v2  ;;  %1253 = vset.pattern.permute.xlu1 (!%p301_p2), %v1280_v2  ;;  %v511_v7 = vld [vmem:[%s1647_s4 + $0x18] sm:$0xff] (!%p301_p2)  ;;  %v510_v10 = vld [vmem:[%s1647_s4 + $0x10] sm:$0xff] (!%p301_p2)  ;;  %v513_v13 = vld [vmem:[%s1647_s4 + $0x28] sm:$0xff] (!%p301_p2)  ;;  %vm524_vm2 = vcmask (!%p301_p2), 523264   ;;  %vm654_vm3 = vcmask (!%p301_p2), 261120  }
   0x8   : > { %377 = vperm.xlu0 (!%p301_p2), %1252, %v371_v1   ;;  %387 = vperm.xlu1 (!%p301_p2), %1253, %v373_v3   ;;  %v1170_v8 = vpack.c.bf16 (!%p301_p2), %v511_v7, %v509_v6  ;;  %v1172_v12 = vpack.c.bf16 (!%p301_p2), %v510_v10, %v508_v9  ;;  %v515_v14 = vld [vmem:[%s1647_s4 + $0x38] sm:$0xff] (!%p301_p2)  ;;  %v512_v17 = vld [vmem:[%s1647_s4 + $0x20] sm:$0xff] (!%p301_p2)  ;;  %v514_v18 = vld [vmem:[%s1647_s4 + $0x30] sm:$0xff] (!%p301_p2) }
   0x9   : > { %v1174_v16 = vpack.c.bf16 (!%p301_p2), %v515_v14, %v513_v13  ;;  %v366_v19 = vld [vmem:[%s1644_s1] sm:$0xff] (!%p301_p2)  ;;  %v631_v21 = vld [vmem:[%s1649_s6 + $0x8] sm:$0xff] (!%p301_p2)  ;;  %v1176_v22 = vpack.c.bf16 (!%p301_p2), %v514_v18, %v512_v17  ;;  %v519_v24 = vld [vmem:[%s1647_s4 + $0x58] sm:$0xff] (!%p301_p2) }
   0xa   : > { %v630_v20 = vld [vmem:[%s1649_s6] sm:$0xff] (!%p301_p2)  ;;  %1171 = vmatprep.subr.bf16.mxu1 (!%p301_p2), %v1170_v8  ;;  %v517_v23 = vld [vmem:[%s1647_s4 + $0x48] sm:$0xff] (!%p301_p2)  ;;  %v518_v27 = vld [vmem:[%s1647_s4 + $0x50] sm:$0xff] (!%p301_p2) }
   0xb   : > { %1173 = vmatpush1.bf16.msra.mxu1 (!%p301_p2), %v1172_v12  ;;  %v516_v25 = vld [vmem:[%s1647_s4 + $0x40] sm:$0xff] (!%p301_p2)  ;;  %v1178_v26 = vpack.c.bf16 (!%p301_p2), %v519_v24, %v517_v23  ;;  %v367_v28 = vld [vmem:[%s1644_s1 + $0x8] sm:$0xff] (!%p301_p2)  ;;  %v632_v29 = vld [vmem:[%s1649_s6 + $0x10] sm:$0xff] (!%p301_p2) }
   0xc   : > { %382 = vperm.xlu0 (!%p301_p2), %1252, %v372_v4   ;;  %392 = vperm.xlu1 (!%p301_p2), %1253, %v374_v5   ;;  %v633_v30 = vld [vmem:[%s1649_s6 + $0x18] sm:$0xff] (!%p301_p2)  ;;  %v1180_v31 = vpack.c.bf16 (!%p301_p2), %v518_v27, %v516_v25  ;;  %v368_v32 = vld [vmem:[%s1644_s1 + $0x10] sm:$0xff] (!%p301_p2)  ;;  %v521_v34 = vld [vmem:[%s1647_s4 + $0x68] sm:$0xff] (!%p301_p2) }
   0xd   : > { %s1654_s10 = smov (!%p346_p3, %s1085_s10), 1  ;;  %1175 = vmatprep.subr.bf16.mxu1 %v1174_v16  ;;  %v369_v33 = vld [vmem:[%s1644_s1 + $0x18] sm:$0xff]  ;;  %v520_v37 = vld [vmem:[%s1647_s4 + $0x60] sm:$0xff]  ;;  %v522_v38 = vld [vmem:[%s1647_s4 + $0x70] sm:$0xff] }
   0xe   : > { %s1118_s17 = sshll.u32 %s1654_s10, 3  ;;  %v523_v35 = vld [vmem:[%s1647_s4 + $0x78] sm:$0xff]  ;;  %s1441_s14 = sshll.u32 %s1654_s10, 5  ;;  %v1184_v39 = vpack.c.bf16 %v522_v38, %v520_v37  ;;  %v626_v5 = vld [vmem:[%s1648_s5] sm:$0xff]  ;;  %v627_v6 = vld [vmem:[%s1648_s5 + $0x8] sm:$0xff] }
   0xf   : > { %s350_s26 = scalar_lea.vmem %s1643_s0, %s1118_s17  ;;  %1177 = vmatpush1.bf16.msra.mxu1 %v1176_v22  ;;  %v1182_v36 = vpack.c.bf16 %v523_v35, %v521_v34  ;;  %s355_s17 = scalar_lea.vmem %s1646_s3, %s1441_s14  ;;  %v628_v7 = vld [vmem:[%s1648_s5 + $0x10] sm:$0xff]  ;;  %v629_v8 = vld [vmem:[%s1648_s5 + $0x18] sm:$0xff]  ;;  %v880_v9 = vld [vmem:[%s1650_s7 + $0x80] sm:$0xff] }
  0x10   : > { %v370_v11 = vld [vmem:[%s350_s26] sm:$0x77]  ;;  %636 = vperm.xlu0 %1252, %v630_v20   ;;  %641 = vperm.xlu1 %1253, %v631_v21   ;;  %v505_v41 = vld [vmem:[%s355_s17 + $0x8] sm:$0xff]  ;;  %v506_v42 = vld [vmem:[%s355_s17 + $0x10] sm:$0xff]  ;;  %s1620_s16 = scalar_lea.vmem %s1651_s8, %s1441_s14  ;;  %s365_s18 = scalar_lea.vmem %s1652_s9, %s1441_s14 }
  0x11   : > { %v396_v15 = vcombine.high %v370_v11, %v370_v11  ;;  %1179 = vmatprep.subr.bf16.mxu1 %v1178_v26  ;;  %v504_v40 = vld [vmem:[%s355_s17] sm:$0xff]  ;;  %v507_v43 = vld [vmem:[%s355_s17 + $0x18] sm:$0xff]  ;;  %v881_v10 = vld [vmem:[%s1650_s7 + $0x88] sm:$0xff] }
  0x12   : > { %v864_v12 = vld [vmem:[%s1650_s7] sm:$0xff]  ;;  %v882_v14 = vld [vmem:[%s1650_s7 + $0x90] sm:$0xff]  ;;  %v867_v18 = vld [vmem:[%s1650_s7 + $0x18] sm:$0xff] }
  0x13   : > { %1098 = vmatprep.subr.msk.mxu0 %vm410_vm0, %v396_v15  ;;  %1181 = vmatpush1.bf16.msra.mxu1 %v1180_v31  ;;  %v883_v15 = vld [vmem:[%s1650_s7 + $0x98] sm:$0xff]  ;;  %v866_v17 = vld [vmem:[%s1650_s7 + $0x10] sm:$0xff]  ;;  %v884_v20 = vld [vmem:[%s1650_s7 + $0xa0] sm:$0xff] }
  0x14   : > { %1099 = vmatpush1.msk.msra.mxu0 %vm410_vm0, %v370_v11  ;;  %646 = vperm.xlu0 %1252, %v632_v29   ;;  %v1194_v11 = vpack.c.bf16 %v881_v10, %v880_v9  ;;  %v1198_v16 = vpack.c.bf16 %v883_v15, %v882_v14  ;;  %v885_v21 = vld [vmem:[%s1650_s7 + $0xa8] sm:$0xff]  ;;  %v868_v23 = vld [vmem:[%s1650_s7 + $0x20] sm:$0xff]  ;;  %v886_v26 = vld [vmem:[%s1650_s7 + $0xb0] sm:$0xff] }
  0x15   : > { %1100 = vmatmul.mubr.msk.f32.vlgmr.msra.gmra.mrb[0].mxu0 %vm397_vm1, %v366_v19  ;;  %651 = vperm.xlu1 %1253, %v633_v30   ;;  %v1200_v19 = vpack.c.bf16 %v867_v18, %v866_v17  ;;  %v1202_v22 = vpack.c.bf16 %v885_v21, %v884_v20  ;;  %v869_v24 = vld [vmem:[%s1650_s7 + $0x28] sm:$0xff]  ;;  %v887_v27 = vld [vmem:[%s1650_s7 + $0xb8] sm:$0xff]  ;;  %v870_v29 = vld [vmem:[%s1650_s7 + $0x30] sm:$0xff] }
  0x16   : > { %485 = vmatprep.mubr.f32.mxu0 %v1279_v0  ;;  %1183 = vmatprep.subr.bf16.mxu1 %v1182_v36  ;;  %v1204_v25 = vpack.c.bf16 %v869_v24, %v868_v23  ;;  %v871_v30 = vld [vmem:[%s1650_s7 + $0x38] sm:$0xff]  ;;  %v872_v35 = vld [vmem:[%s1650_s7 + $0x40] sm:$0xff]  ;;  %v873_v36 = vld [vmem:[%s1650_s7 + $0x48] sm:$0xff] }
  0x17   : > { %1185 = vmatpush1.bf16.msra.mxu1 %v1184_v39  ;;  %1195 = vmatprep.subr.bf16.mxu0 %v1194_v11  ;;  %v1208_v31 = vpack.c.bf16 %v871_v30, %v870_v29  ;;  %v1212_v37 = vpack.c.bf16 %v873_v36, %v872_v35  ;;  %v890_v38 = vld [vmem:[%s1650_s7 + $0xd0] sm:$0xff]  ;;  %v891_v39 = vld [vmem:[%s1650_s7 + $0xd8] sm:$0xff] }
  0x19   : > { %1101 = vmatmul.mubr.msk.f32.gmra.mrb[2].mxu0 %vm397_vm1, %v367_v28  ;;  %v1206_v28 = vpack.c.bf16 %v887_v27, %v886_v26 }
  0x1a   : > { %491 = vmatprep.mubr.f32.mxu0 %v1279_v0  ;;  %1104 = vmatmul.mubr.msk.f32.vlgmr.msra.gmra.mrb[0].mxu1 %vm524_vm2, %v504_v40  ;;  %v1214_v40 = vpack.c.bf16 %v891_v39, %v890_v38 }
  0x1b   : > { %607 = vmatprep.mubr.f32.mxu1 %v1279_v0 }
  0x1d   : > { %1102 = vmatmul.mubr.msk.f32.gmra.mrb[4].mxu0 %vm397_vm1, %v368_v32  ;;  %v888_v32 = vld [vmem:[%s1650_s7 + $0xc0] sm:$0xff] }
  0x1e   : > { %497 = vmatprep.mubr.f32.mxu0 %v1279_v0  ;;  %1105 = vmatmul.mubr.msk.f32.gmra.mrb[2].mxu1 %vm524_vm2, %v505_v41  ;;  %v874_v41 = vld [vmem:[%s1650_s7 + $0x50] sm:$0xff] }
  0x1f   : > { %613 = vmatprep.mubr.f32.mxu1 %v1279_v0 }
  0x21   : > { %1103 = vmatmul.mubr.msk.f32.gmra.mrb[6].mxu0 %vm397_vm1, %v369_v33  ;;  %v889_v33 = vld [vmem:[%s1650_s7 + $0xc8] sm:$0xff] }
  0x22   : > { %1106 = vmatmul.mubr.msk.f32.gmra.mrb[4].mxu1 %vm524_vm2, %v506_v42  ;;  %v1210_v34 = vpack.c.bf16 %v889_v33, %v888_v32  ;;  %v875_v42 = vld [vmem:[%s1650_s7 + $0x58] sm:$0xff] }
  0x23   : > { %619 = vmatprep.mubr.f32.mxu1 %v1279_v0 }
  0x26   : > { %1107 = vmatmul.mubr.msk.f32.gmra.mrb[6].mxu1 %vm524_vm2, %v507_v43  ;;  %v1216_v43 = vpack.c.bf16 %v875_v42, %v874_v41 }
  0x27   : > { %731 = vmatprep.mubr.f32.mxu1 %v1279_v0 }
  0x87   : > { %v378_v44 = vpop.permute.xlu0 %377  ;;  %v388_v52 = vpop.permute.xlu1 %387 }
  0x8b   : > { %v383_v47 = vpop.permute.xlu0 %382  ;;  %v393_v59 = vpop.permute.xlu1 %392 }
  0xe8   : > { %v481_v45 = vpop.f32.mrb[0].mxu0 }
  0xe9   : > { %v483_v46 = vpop.f32.mrb[1].mxu0  ;;  %v482_v49 = vadd.f32 %v481_v45, %v378_v44  ;;  %v893_v45 = vld [vmem:[%s1650_s7 + $0xe8] sm:$0xff] }
  0xea   : > { %v484_v53 = vadd.f32 %v483_v46, %v378_v44  ;;  %v892_v44 = vld [vmem:[%s1650_s7 + $0xe0] sm:$0xff] }
  0xeb   : > { %v1218_v46 = vpack.c.bf16 %v893_v45, %v892_v44 }
  0xec   : > { %v487_v48 = vpop.f32.mrb[2].mxu0 }
  0xed   : > { %v488_v50 = vadd.f32 %v487_v48, %v383_v47  ;;  %v489_v51 = vpop.f32.mrb[3].mxu0  ;;  %v877_v48 = vld [vmem:[%s1650_s7 + $0x68] sm:$0xff] }
  0xee   : > { %v490_v54 = vadd.f32 %v489_v51, %v383_v47  ;;  %v876_v47 = vld [vmem:[%s1650_s7 + $0x60] sm:$0xff]  ;;  %v895_v51 = vld [vmem:[%s1650_s7 + $0xf8] sm:$0xff] }
  0xef   : > { %v1188_v55 = vpack.c.bf16 %v488_v50, %v482_v49  ;;  %v1220_v49 = vpack.c.bf16 %v877_v48, %v876_v47  ;;  %v894_v50 = vld [vmem:[%s1650_s7 + $0xf0] sm:$0xff] }
  0xf0   : > { %v1186_v56 = vpack.c.bf16 %v490_v54, %v484_v53  ;;  %v493_v57 = vpop.f32.mrb[4].mxu0  ;;  %v1222_v53 = vpack.c.bf16 %v895_v51, %v894_v50  ;;  %v879_v54 = vld [vmem:[%s1650_s7 + $0x78] sm:$0xff] }
  0xf1   : > { %v495_v58 = vpop.f32.mrb[5].mxu0  ;;  %v494_v61 = vadd.f32 %v493_v57, %v388_v52 }
  0xf2   : > { %1187 = vmatprep.subr.bf16.mxu1 %v1186_v56  ;;  %v496_v1 = vadd.f32 %v495_v58, %v388_v52  ;;  %v878_v52 = vld [vmem:[%s1650_s7 + $0x70] sm:$0xff]  ;;  %v637_v56 = vpop.permute.xlu0 %636 }
  0xf3   : > { %1189 = vmatpush1.bf16.msra.mxu1 %v1188_v55  ;;  %v1224_v55 = vpack.c.bf16 %v879_v54, %v878_v52 }
  0xf4   : > { %v499_v60 = vpop.f32.mrb[6].mxu0 }
  0xf5   : > { %v500_v62 = vadd.f32 %v499_v60, %v393_v59  ;;  %v501_v63 = vpop.f32.mrb[7].mxu0 }
  0xf6   : > { %v502_v2 = vadd.f32 %v501_v63, %v393_v59  ;;  %v647_v9 = vpop.permute.xlu0 %646 }
  0xf7   : > { %v1192_v3 = vpack.c.bf16 %v500_v62, %v494_v61  ;;  %v642_v62 = vpop.permute.xlu1 %641 }
  0xf8   : > { %v1190_v4 = vpack.c.bf16 %v502_v2, %v496_v1 }
  0xfa   : > { %1191 = vmatprep.subr.bf16.mxu1 %v1190_v4 }
  0xfb   : > { %1193 = vmatpush1.bf16.msra.mxu1 %v1192_v3 }
  0xfe   : > { %1108 = vmatmul.mubr.msk.f32.vlgmr.msra.gmra.mrb[0].mxu1 %vm654_vm3, %v626_v5 }
  0xff   : > { %737 = vmatprep.mubr.f32.mxu1 %v1279_v0 }
 0x102   : > { %1109 = vmatmul.mubr.msk.f32.gmra.mrb[2].mxu1 %vm654_vm3, %v627_v6 }
 0x103   : > { %743 = vmatprep.mubr.f32.mxu1 %v1279_v0 }
 0x106   : > { %1110 = vmatmul.mubr.msk.f32.gmra.mrb[4].mxu1 %vm654_vm3, %v628_v7 }
 0x107   : > { %749 = vmatprep.mubr.f32.mxu1 %v1279_v0  ;;  %v865_v0 = vld [vmem:[%s1650_s7 + $0x8] sm:$0xff] }
 0x108   : > { %v1196_v13 = vpack.c.bf16 %v865_v0, %v864_v12 }
 0x10a   : > { %1111 = vmatmul.mubr.msk.f32.gmra.mrb[6].mxu1 %vm654_vm3, %v629_v8  ;;  %1197 = vmatpush3.bf16.msra.mxu0 %v1196_v13 }
 0x10b   : > { %1199 = vmatprep.subr.bf16.mxu0 %v1198_v16 }
 0x10e   : > { %1201 = vmatpush3.bf16.msra.mxu0 %v1200_v19 }
 0x10f   : > { %1203 = vmatprep.subr.bf16.mxu0 %v1202_v22  ;;  %v652_v22 = vpop.permute.xlu1 %651 }
 0x112   : > { %1205 = vmatpush3.bf16.msra.mxu0 %v1204_v25 }
 0x113   : > { %1207 = vmatprep.subr.bf16.mxu0 %v1206_v28 }
 0x116   : > { %1209 = vmatpush3.bf16.msra.mxu0 %v1208_v31 }
 0x117   : > { %1211 = vmatprep.subr.bf16.mxu0 %v1210_v34 }
 0x11a   : > { %1213 = vmatpush3.bf16.msra.mxu0 %v1212_v37 }
 0x11b   : > { %1215 = vmatprep.subr.bf16.mxu0 %v1214_v40 }
 0x11e   : > { %1217 = vmatpush3.bf16.msra.mxu0 %v1216_v43 }
 0x11f   : > { %1219 = vmatprep.subr.bf16.mxu0 %v1218_v46 }
 0x122   : > { %1221 = vmatpush3.bf16.msra.mxu0 %v1220_v49 }
 0x123   : > { %1223 = vmatprep.subr.bf16.mxu0 %v1222_v53 }
 0x126   : > { %1225 = vmatpush3.bf16.msra.mxu0 %v1224_v55 }
 0x1d1   : > { %v733_v57 = vpop.f32.mrb[0].mxu1 }
 0x1d2   : > { %v1566_v58 = vadd.f32 %v733_v57, %v637_v56  ;;  %v735_v59 = vpop.f32.mrb[1].mxu1 }
 0x1d3   : > { %v1568_v60 = vadd.f32 %v735_v59, %v637_v56 }
 0x1d4   : > { %v764_v61 = vmul.f32 %v1566_v58, %v1566_v58 }
 0x1d5   : > { %v765_v63 = vmul.f32 %v1568_v60, %v1568_v60  ;;  %v739_v1 = vpop.f32.mrb[2].mxu1 }
 0x1d6   : > { %v772_v2 = vmul.f32 %v764_v61, %v1566_v58  ;;  %v1575_v3 = vadd.f32 %v739_v1, %v642_v62  ;;  %v741_v4 = vpop.f32.mrb[3].mxu1 }
 0x1d7   : > { %v773_v5 = vmul.f32 %v765_v63, %v1568_v60  ;;  %v1578_v6 = vadd.f32 %v741_v4, %v642_v62 }
 0x1d8   : > { %v780_v7 = vmul.f32 0.044715, %v772_v2  ;;  %v766_v8 = vmul.f32 %v1575_v3, %v1575_v3 }
 0x1d9   : > { %v781_v10 = vmul.f32 0.044715, %v773_v5  ;;  %v767_v11 = vmul.f32 %v1578_v6, %v1578_v6  ;;  %v745_v12 = vpop.f32.mrb[4].mxu1 }
 0x1da   : > { %v788_v0 = vadd.f32 %v780_v7, %v1566_v58  ;;  %v774_v13 = vmul.f32 %v766_v8, %v1575_v3  ;;  %v1586_v14 = vadd.f32 %v745_v12, %v647_v9  ;;  %v747_v15 = vpop.f32.mrb[5].mxu1 }
 0x1db   : > { %v789_v16 = vadd.f32 %v781_v10, %v1568_v60  ;;  %v775_v17 = vmul.f32 %v767_v11, %v1578_v6  ;;  %v1590_v18 = vadd.f32 %v747_v15, %v647_v9 }
 0x1dc   : > { %v796_v19 = vmul.f32 0.7978846, %v788_v0  ;;  %v782_v20 = vmul.f32 0.044715, %v774_v13  ;;  %v768_v21 = vmul.f32 %v1586_v14, %v1586_v14 }
 0x1dd   : > { %v797_v23 = vmul.f32 0.7978846, %v789_v16  ;;  %v783_v24 = vmul.f32 0.044715, %v775_v17  ;;  %v769_v25 = vmul.f32 %v1590_v18, %v1590_v18  ;;  %v751_v26 = vpop.f32.mrb[6].mxu1 }
 0x1de   : > { %1255 = vtanh.f32 %v796_v19  ;;  %v790_v27 = vadd.f32 %v782_v20, %v1575_v3  ;;  %v776_v28 = vmul.f32 %v768_v21, %v1586_v14  ;;  %v1598_v29 = vadd.f32 %v751_v26, %v652_v22  ;;  %v753_v30 = vpop.f32.mrb[7].mxu1 }
 0x1df   : > { %v791_v31 = vadd.f32 %v783_v24, %v1578_v6  ;;  %v777_v32 = vmul.f32 %v769_v25, %v1590_v18  ;;  %v1602_v33 = vadd.f32 %v753_v30, %v652_v22  ;;  %1257 = vtanh.f32 %v797_v23 }
 0x1e0   : > { %v798_v34 = vmul.f32 0.7978846, %v790_v27  ;;  %v784_v35 = vmul.f32 0.044715, %v776_v28  ;;  %v770_v36 = vmul.f32 %v1598_v29, %v1598_v29 }
 0x1e1   : > { %v799_v37 = vmul.f32 0.7978846, %v791_v31  ;;  %v785_v38 = vmul.f32 0.044715, %v777_v32  ;;  %v771_v39 = vmul.f32 %v1602_v33, %v1602_v33 }
 0x1e2   : > { %v792_v40 = vadd.f32 %v784_v35, %v1586_v14  ;;  %v778_v41 = vmul.f32 %v770_v36, %v1598_v29  ;;  %1259 = vtanh.f32 %v798_v34 }
 0x1e3   : > { %v793_v42 = vadd.f32 %v785_v38, %v1590_v18  ;;  %v779_v43 = vmul.f32 %v771_v39, %v1602_v33  ;;  %1261 = vtanh.f32 %v799_v37 }
 0x1e4   : > { %v800_v44 = vmul.f32 0.7978846, %v792_v40  ;;  %v786_v45 = vmul.f32 0.044715, %v778_v41 }
 0x1e5   : > { %v801_v46 = vmul.f32 0.7978846, %v793_v42  ;;  %v787_v47 = vmul.f32 0.044715, %v779_v43 }
 0x1e6   : > { %v794_v48 = vadd.f32 %v786_v45, %v1598_v29  ;;  %1263 = vtanh.f32 %v800_v44 }
 0x1e7   : > { %v795_v49 = vadd.f32 %v787_v47, %v1602_v33  ;;  %1265 = vtanh.f32 %v801_v46 }
 0x1e8   : > { %v1256_v50 = vpop.eup %1255  ;;  %v802_v51 = vmul.f32 0.7978846, %v794_v48 }
 0x1e9   : > { %v1258_v52 = vpop.eup %1257  ;;  %v803_v53 = vmul.f32 0.7978846, %v795_v49  ;;  %v812_v54 = vadd.f32 1.0, %v1256_v50 }
 0x1ea   : > { %v813_v55 = vadd.f32 1.0, %v1258_v52  ;;  %1267 = vtanh.f32 %v802_v51 }
 0x1eb   : > { %v820_v56 = vmul.f32 0.5, %v812_v54  ;;  %1269 = vtanh.f32 %v803_v53 }
 0x1ec   : > { %v1260_v57 = vpop.eup %1259  ;;  %v821_v59 = vmul.f32 0.5, %v813_v55 }
 0x1ed   : > { %v1262_v61 = vpop.eup %1261  ;;  %v828_v62 = vmul.f32 %v820_v56, %v1566_v58  ;;  %v814_v63 = vadd.f32 1.0, %v1260_v57 }
 0x1ee   : > { %v829_v1 = vmul.f32 %v821_v59, %v1568_v60  ;;  %v815_v2 = vadd.f32 1.0, %v1262_v61 }
 0x1ef   : > { %v822_v4 = vmul.f32 0.5, %v814_v63 }
 0x1f0   : > { %v1264_v5 = vpop.eup %1263  ;;  %v1122_v7 = vpack.c.bf16 %v829_v1, %v828_v62  ;;  %960 = vmatprep.mubr.f32.mxu0 %v829_v1  ;;  %v823_v8 = vmul.f32 0.5, %v815_v2 }
 0x1f1   : > { %v1266_v9 = vpop.eup %1265  ;;  %961 = vmatmul.mubr.f32.vlgmr.msra.gmra.mrb[8].mxu0 %v828_v62  ;;  %v830_v58 = vmul.f32 %v822_v4, %v1575_v3  ;;  %v816_v10 = vadd.f32 1.0, %v1264_v5 }
 0x1f2   : > { %860 = vst [vmem:[%s1620_s16] sm:$0xff] %v1122_v7  ;;  %v831_v60 = vmul.f32 %v823_v8, %v1578_v6  ;;  %v817_v11 = vadd.f32 1.0, %v1266_v9 }
 0x1f3   : > { %v824_v12 = vmul.f32 0.5, %v816_v10 }
 0x1f4   : > { %v1268_v0 = vpop.eup %1267  ;;  %965 = vmatprep.mubr.f32.mxu0 %v831_v60  ;;  %v1123_v13 = vpack.c.bf16 %v831_v60, %v830_v58  ;;  %v825_v15 = vmul.f32 0.5, %v817_v11 }
 0x1f5   : > { %v1270_v16 = vpop.eup %1269  ;;  %966 = vmatmul.mubr.f32.gmra.mrb[10].mxu0 %v830_v58  ;;  %v832_v17 = vmul.f32 %v824_v12, %v1586_v14  ;;  %v818_v19 = vadd.f32 1.0, %v1268_v0 }
 0x1f6   : > { %861 = vst [vmem:[%s1620_s16 + $0x8] sm:$0xff] %v1123_v13  ;;  %v833_v3 = vmul.f32 %v825_v15, %v1590_v18  ;;  %v819_v20 = vadd.f32 1.0, %v1270_v16 }
 0x1f7   : > { %v826_v21 = vmul.f32 0.5, %v818_v19 }
 0x1f8   : > { %970 = vmatprep.mubr.f32.mxu0 %v833_v3  ;;  %v1124_v6 = vpack.c.bf16 %v833_v3, %v832_v17  ;;  %v827_v22 = vmul.f32 0.5, %v819_v20 }
 0x1f9   : > { %971 = vmatmul.mubr.f32.gmra.mrb[12].mxu0 %v832_v17  ;;  %v834_v23 = vmul.f32 %v826_v21, %v1598_v29 }
 0x1fa   : > { %862 = vst [vmem:[%s1620_s16 + $0x10] sm:$0xff] %v1124_v6  ;;  %v835_v24 = vmul.f32 %v827_v22, %v1602_v33 }
 0x1fc   : > { %975 = vmatprep.mubr.f32.mxu0 %v835_v24  ;;  %v1125_v25 = vpack.c.bf16 %v835_v24, %v834_v23 }
 0x1fd   : > { %976 = vmatmul.mubr.f32.gmra.mrb[14].mxu0 %v834_v23 }
 0x1fe   : > { %863 = vst [vmem:[%s1620_s16 + $0x18] sm:$0xff] %v1125_v25 }
 0x2c4   : > { %v1158_v14 = vpop.f32.mrb[8].mxu0 }
 0x2c5   : > { %v1159_v18 = vpop.f32.mrb[9].mxu0 }
 0x2c6   : > { %v1160_v26 = vadd.f32 %v1159_v18, %v1158_v14 }
 0x2c8   : > { %981 = vst.msk [vmem:[%s365_s18] sm:$0xff] %vm524_vm2, %v1160_v26  ;;  %v1161_v27 = vpop.f32.mrb[10].mxu0 }
 0x2c9   : > { %v1162_v28 = vpop.f32.mrb[11].mxu0 }
 0x2ca   : > { %v1163_v30 = vadd.f32 %v1162_v28, %v1161_v27 }
 0x2cc   : > { %982 = vst.msk [vmem:[%s365_s18 + $0x8] sm:$0xff] %vm524_vm2, %v1163_v30  ;;  %v1164_v29 = vpop.f32.mrb[12].mxu0 }
 0x2cd   : > { %v1165_v31 = vpop.f32.mrb[13].mxu0 }
 0x2ce   : > { %v1166_v32 = vadd.f32 %v1165_v31, %v1164_v29 }
 0x2d0   : > { %983 = vst.msk [vmem:[%s365_s18 + $0x10] sm:$0xff] %vm524_vm2, %v1166_v32  ;;  %v1167_v33 = vpop.f32.mrb[14].mxu0 }
 0x2d1   : > { %v1168_v34 = vpop.f32.mrb[15].mxu0 }
 0x2d2   : > { %v1169_v35 = vadd.f32 %v1168_v34, %v1167_v33 }
 0x2d4   : > { %984 = vst.msk [vmem:[%s365_s18 + $0x18] sm:$0xff] %vm524_vm2, %v1169_v35 }
 0x2d5 PF: > { %s20_s30 = sadd.s32 1, %s1277_s30  }
 0x2d6   : > { %p17_p4 = scmp.ge.s32.totalorder %s20_s30, 4  }
 0x2d8   :  { %19 = sbr.rel (!%p17_p4) target bundleno = 1 (0x1), region = 97 }

</bundles_post_ra>
